<compile_context>
chip_gen: v7x
topology: tpu7x:2x2x1
jax: 0.10.0
libtpu: 0.0.40
codegen_flags: <defaults>
</compile_context>

<pallas_src>
import jax
import jax.numpy as jnp
from jax import lax
from jax.experimental import pallas as pl
from jax.experimental.pallas import tpu as pltpu

D_MODEL = 32
N_HEADS = 4
D_HEAD = D_MODEL // N_HEADS
D_FF = 64
LN_EPS = 1e-5
_SCALE = 1.0 / float(D_HEAD) ** 0.5
_NEG_INF = -1e9


# ---------------------------- Fused Pallas kernel ----------------------------

def _transformer_kernel(src_ref, z_ref, mask_ref,
                        wqkv_ref, bqkv_ref, wo_ref, bo_ref,
                        w1_ref, b1_ref, w2_ref, b2_ref,
                        ln_g_ref, ln_b_ref, out_ref):
    """One grid step == one batch element; params fully resident in VMEM.

    wqkv: [9, H, D, Dh] bf16   (enc q,k,v | dec-self q,k,v | cross q,k,v)
    bqkv: [9, H, 1, Dh] f32
    wo:   [3, H, Dh, D] bf16   (enc | dec-self | cross)
    bo:   [3, 1, D]     f32
    w1:   [2, D, F] bf16, b1: [2, 1, F] f32   (enc ffn | dec ffn)
    w2:   [2, F, D] bf16, b2: [2, 1, D] f32
    ln_g/ln_b: [5, 1, D] f32   (enc1, enc2, dec1, dec2, dec3)
    """
    S = src_ref.shape[1]

    def qkv_proj(xb, i):
        # xb: [H, S, D] bf16 ; weight: [H, D, Dh] ; bias: [H, 1, Dh]
        y = jnp.einsum("hsd,hdf->hsf", xb, wqkv_ref[i],
                       preferred_element_type=jnp.float32) + bqkv_ref[i]
        return y.astype(jnp.bfloat16)                               # [H, S, Dh]

    def mha(xq, xkv, blk, mask_add):
        # Head-batched attention: single batched einsums, one fused softmax.
        xq_b = jnp.broadcast_to(xq.astype(jnp.bfloat16), (N_HEADS, S, D_MODEL))
        xkv_b = xq_b if xkv is xq else jnp.broadcast_to(
            xkv.astype(jnp.bfloat16), (N_HEADS, S, D_MODEL))
        q = qkv_proj(xq_b, 3 * blk + 0)                             # [H, S, Dh]
        k = qkv_proj(xkv_b, 3 * blk + 1)
        v = qkv_proj(xkv_b, 3 * blk + 2)
        s = jnp.einsum("hqd,hkd->hqk", q, k,
                       preferred_element_type=jnp.float32) * _SCALE  # [H, S, S]
        if mask_add is not None:
            s = s + mask_add                                         # [1,S] bcast
        s = s - jnp.max(s, axis=-1, keepdims=True)
        e = jnp.exp(s)
        p = e * pl.reciprocal(jnp.sum(e, axis=-1, keepdims=True), approx=True)
        ctx = jnp.einsum("hqk,hkd->hqd", p.astype(jnp.bfloat16), v,
                         preferred_element_type=jnp.float32)         # [H, S, Dh]
        # Per-head output projection then head-sum: no [S, H*Dh] concat.
        o = jnp.einsum("hsd,hde->hse", ctx.astype(jnp.bfloat16), wo_ref[blk],
                       preferred_element_type=jnp.float32)           # [H, S, D]
        return jnp.sum(o, axis=0) + bo_ref[blk]                      # [S, D]

    def add_ln(x, resid, i):
        # Single-pass LN statistics: E[h] and E[h*h] (independent reductions).
        h = x + resid
        m1 = jnp.mean(h, axis=-1, keepdims=True)
        m2 = jnp.mean(h * h, axis=-1, keepdims=True)
        inv = lax.rsqrt(m2 - m1 * m1 + LN_EPS)
        return (h - m1) * inv * ln_g_ref[i] + ln_b_ref[i]

    def ffn(x, i):
        h = jnp.dot(x.astype(jnp.bfloat16), w1_ref[i],
                    preferred_element_type=jnp.float32) + b1_ref[i]
        h = jnp.maximum(h, 0.0).astype(jnp.bfloat16)
        return jnp.dot(h, w2_ref[i],
                       preferred_element_type=jnp.float32) + b2_ref[i]

    src = src_ref[0]                                                 # [S, D]
    z = z_ref[0]                                                     # [S, D]
    mask_add = mask_ref[0]                                           # [1, S]

    # ------------------------- encoder layer -------------------------
    x1 = add_ln(mha(src, src, 0, mask_add), src, 0)
    enc = add_ln(ffn(x1, 0), x1, 1)

    # ------------------------- decoder layer -------------------------
    y1 = add_ln(mha(z, z, 1, None), z, 2)          # self-attention (no tgt mask)
    y2 = add_ln(mha(y1, enc, 2, None), y1, 3)      # cross-attention on enc out
    out_ref[0] = add_ln(ffn(y2, 1), y2, 4)


# ---------------------------- Wrapper (plain JAX) ----------------------------

def _resident(arr):
    # Full-array block, constant index map -> fetched once, resident in VMEM.
    nd = arr.ndim
    return pl.BlockSpec(arr.shape, lambda b: (0,) * nd)


def transformer_forward(params, src, z, src_mask):
    """forward(src, z, src_mask) = decoder(z, encoder(src, src_mask)).

    src, z: [B, S, D] f32.  src_mask: [B, S] boolean key-padding keep-mask
    (True = attend).  Returns [B, S, D] f32.
    """
    B, S, D = src.shape
    assert D == D_MODEL
    # Compact additive key-padding mask [B, 1, S] (no [B*S, S] blow-up).
    mask_add = jnp.where(src_mask, 0.0, _NEG_INF).astype(jnp.float32)[:, None, :]

    # bf16 weights feed the MXU; biases / LN params stay f32.
    flat = (
        params["wqkv"].astype(jnp.bfloat16), params["bqkv"],
        params["wo"].astype(jnp.bfloat16), params["bo"],
        params["w1"].astype(jnp.bfloat16), params["b1"],
        params["w2"].astype(jnp.bfloat16), params["b2"],
        params["ln_g"], params["ln_b"],
    )

    per_batch = pl.BlockSpec((1, S, D), lambda b: (b, 0, 0))
    mask_spec = pl.BlockSpec((1, 1, S), lambda b: (b, 0, 0))

    # TODO(synk): at large B*S/S, switch to a flash-style gridded attention and
    # a lane-dense ([B, S*D]) output slab; irrelevant at these shapes.
    out = pl.pallas_call(
        _transformer_kernel,
        grid=(B,),
        out_shape=jax.ShapeDtypeStruct((B, S, D), jnp.float32),
        in_specs=[per_batch, per_batch, mask_spec,
                  *[_resident(a) for a in flat]],
        out_specs=per_batch,
        compiler_params=pltpu.CompilerParams(
            dimension_semantics=("parallel",)),   # shards batch across v7x's 2 TCs
    )(src, z, mask_add, *flat)
    return out


# ---------------------------- Deterministic parameter init ----------------------------

def _head_major_in(w):   # [D, H*Dh] -> [H, D, Dh]
    return w.reshape(D_MODEL, N_HEADS, D_HEAD).transpose(1, 0, 2)


def _head_major_out(w):  # [H*Dh, D] -> [H, Dh, D]
    return w.reshape(N_HEADS, D_HEAD, D_MODEL)


def init_params(key):
    def w(k, shape):
        return 0.02 * jax.random.normal(k, shape, jnp.float32)

    keys = jax.random.split(key, 16)
    D, F, H, Dh = D_MODEL, D_FF, N_HEADS, D_HEAD

    # 9 QKV projections: enc q,k,v | dec-self q,k,v | cross q,k,v.
    wqkv = jnp.stack([_head_major_in(w(keys[i], (D, D))) for i in range(9)])
    bqkv = jnp.zeros((9, H, 1, Dh), jnp.float32)
    # 3 output projections: enc | dec-self | cross.
    wo = jnp.stack([_head_major_out(w(keys[9 + i], (D, D))) for i in range(3)])
    bo = jnp.zeros((3, 1, D), jnp.float32)
    # FFNs: enc | dec.
    w1 = jnp.stack([w(keys[12], (D, F)), w(keys[13], (D, F))])
    b1 = jnp.zeros((2, 1, F), jnp.float32)
    w2 = jnp.stack([w(keys[14], (F, D)), w(keys[15], (F, D))])
    b2 = jnp.zeros((2, 1, D), jnp.float32)
    # LayerNorms: enc1, enc2, dec1, dec2, dec3.
    ln_g = jnp.ones((5, 1, D), jnp.float32)
    ln_b = jnp.zeros((5, 1, D), jnp.float32)
    return dict(wqkv=wqkv, bqkv=bqkv, wo=wo, bo=bo,
                w1=w1, b1=b1, w2=w2, b2=b2, ln_g=ln_g, ln_b=ln_b)


# ---------------------------- Main ----------------------------

if __name__ == "__main__":
    B, S = 2, 8
    root = jax.random.PRNGKey(0)
    k_src, k_z, k_par = jax.random.split(root, 3)

    src = jax.random.normal(k_src, (B, S, D_MODEL), jnp.float32)
    z = jax.random.normal(k_z, (B, S, D_MODEL), jnp.float32)

    # Key-padding keep-mask [B, S]: mask out the last source position of the
    # second batch element to exercise masking.
    src_mask = jnp.ones((B, S), dtype=bool).at[1, S - 1].set(False)

    params = init_params(k_par)

    fwd = jax.jit(transformer_forward)
    out = fwd(params, src, z, src_mask)
    jax.block_until_ready(out)

    assert out.shape == (B, S, D_MODEL) and out.dtype == jnp.float32
    assert bool(jnp.all(jnp.isfinite(out)))
    print("KERNEL_OK")
</pallas_src>

<mosaic_0001>
module attributes {stable_mosaic.version = 11 : i64} {
  func.func @_transformer_kernel(%arg0: i32, %arg1: memref<1x8x32xf32, #tpu.memory_space<vmem>>, %arg2: memref<1x8x32xf32, #tpu.memory_space<vmem>>, %arg3: memref<1x1x8xf32, #tpu.memory_space<vmem>>, %arg4: memref<9x4x32x8xbf16, #tpu.memory_space<vmem>>, %arg5: memref<9x4x1x8xf32, #tpu.memory_space<vmem>>, %arg6: memref<3x4x8x32xbf16, #tpu.memory_space<vmem>>, %arg7: memref<3x1x32xf32, #tpu.memory_space<vmem>>, %arg8: memref<2x32x64xbf16, #tpu.memory_space<vmem>>, %arg9: memref<2x1x64xf32, #tpu.memory_space<vmem>>, %arg10: memref<2x64x32xbf16, #tpu.memory_space<vmem>>, %arg11: memref<2x1x32xf32, #tpu.memory_space<vmem>>, %arg12: memref<5x1x32xf32, #tpu.memory_space<vmem>>, %arg13: memref<5x1x32xf32, #tpu.memory_space<vmem>>, %arg14: memref<1x8x32xf32, #tpu.memory_space<vmem>>) attributes {dimension_semantics = [#tpu.dimension_semantics<parallel>], iteration_bounds = array<i64: 2>, scalar_prefetch = 0 : i64, scratch_operands = 0 : i64, tpu.core_type = #tpu.core_type<tc>, window_params = [{transform_indices = @transform_0, window_bounds = array<i64: 1, 8, 32>}, {transform_indices = @transform_1, window_bounds = array<i64: 1, 8, 32>}, {transform_indices = @transform_2, window_bounds = array<i64: 1, 1, 8>}, {pipeline_mode = #tpu.pipeline_mode<synchronous>, transform_indices = @transform_3, window_bounds = array<i64: 9, 4, 32, 8>}, {pipeline_mode = #tpu.pipeline_mode<synchronous>, transform_indices = @transform_4, window_bounds = array<i64: 9, 4, 1, 8>}, {pipeline_mode = #tpu.pipeline_mode<synchronous>, transform_indices = @transform_5, window_bounds = array<i64: 3, 4, 8, 32>}, {pipeline_mode = #tpu.pipeline_mode<synchronous>, transform_indices = @transform_6, window_bounds = array<i64: 3, 1, 32>}, {pipeline_mode = #tpu.pipeline_mode<synchronous>, transform_indices = @transform_7, window_bounds = array<i64: 2, 32, 64>}, {pipeline_mode = #tpu.pipeline_mode<synchronous>, transform_indices = @transform_8, window_bounds = array<i64: 2, 1, 64>}, {pipeline_mode = #tpu.pipeline_mode<synchronous>, transform_indices = @transform_9, window_bounds = array<i64: 2, 64, 32>}, {pipeline_mode = #tpu.pipeline_mode<synchronous>, transform_indices = @transform_10, window_bounds = array<i64: 2, 1, 32>}, {pipeline_mode = #tpu.pipeline_mode<synchronous>, transform_indices = @transform_11, window_bounds = array<i64: 5, 1, 32>}, {pipeline_mode = #tpu.pipeline_mode<synchronous>, transform_indices = @transform_12, window_bounds = array<i64: 5, 1, 32>}, {transform_indices = @transform_13, window_bounds = array<i64: 1, 8, 32>}]} {
    %c0 = arith.constant 0 : index
    %c0_0 = arith.constant 0 : index
    %c0_1 = arith.constant 0 : index
    %0 = vector.load %arg1[%c0, %c0_0, %c0_1] : memref<1x8x32xf32, #tpu.memory_space<vmem>>, vector<1x8x32xf32>
    %1 = vector.shape_cast %0 : vector<1x8x32xf32> to vector<8x32xf32>
    %c0_2 = arith.constant 0 : index
    %c0_3 = arith.constant 0 : index
    %c0_4 = arith.constant 0 : index
    %2 = vector.load %arg2[%c0_2, %c0_3, %c0_4] : memref<1x8x32xf32, #tpu.memory_space<vmem>>, vector<1x8x32xf32>
    %3 = vector.shape_cast %2 : vector<1x8x32xf32> to vector<8x32xf32>
    %c0_5 = arith.constant 0 : index
    %c0_6 = arith.constant 0 : index
    %c0_7 = arith.constant 0 : index
    %4 = vector.load %arg3[%c0_5, %c0_6, %c0_7] : memref<1x1x8xf32, #tpu.memory_space<vmem>>, vector<1x1x8xf32>
    %5 = vector.shape_cast %4 : vector<1x1x8xf32> to vector<1x8xf32>
    %6 = arith.truncf %1 : vector<8x32xf32> to vector<8x32xbf16>
    %7 = vector.shape_cast %6 : vector<8x32xbf16> to vector<1x8x32xbf16>
    %8 = vector.broadcast %7 : vector<1x8x32xbf16> to vector<4x8x32xbf16>
    %c0_8 = arith.constant 0 : index
    %c0_9 = arith.constant 0 : index
    %c0_10 = arith.constant 0 : index
    %c0_11 = arith.constant 0 : index
    %9 = vector.load %arg4[%c0_8, %c0_9, %c0_10, %c0_11] : memref<9x4x32x8xbf16, #tpu.memory_space<vmem>>, vector<1x4x32x8xbf16>
    %10 = vector.shape_cast %9 : vector<1x4x32x8xbf16> to vector<4x32x8xbf16>
    "tpu.trace_start"() <{level = 10 : i32, message = "hsd,hdf->hsf"}> : () -> ()
    %cst = arith.constant dense<0.000000e+00> : vector<4x8x8xf32>
    %11 = tpu.matmul %8, %10, %cst {dimension_numbers = #tpu.dot_dimension_numbers<[2], [1], [1], [2], [0, 0, 0, 1, 1, 2], [0], [0]>} : vector<4x8x32xbf16>, vector<4x32x8xbf16>, vector<4x8x8xf32> -> vector<4x8x8xf32>
    "tpu.trace_stop"() : () -> ()
    %c0_12 = arith.constant 0 : index
    %c0_13 = arith.constant 0 : index
    %c0_14 = arith.constant 0 : index
    %c0_15 = arith.constant 0 : index
    %12 = vector.load %arg5[%c0_12, %c0_13, %c0_14, %c0_15] : memref<9x4x1x8xf32, #tpu.memory_space<vmem>>, vector<1x4x1x8xf32>
    %13 = vector.shape_cast %12 : vector<1x4x1x8xf32> to vector<4x1x8xf32>
    %14 = vector.broadcast %13 : vector<4x1x8xf32> to vector<4x8x8xf32>
    %15 = arith.addf %11, %14 : vector<4x8x8xf32>
    %16 = arith.truncf %15 : vector<4x8x8xf32> to vector<4x8x8xbf16>
    %c1 = arith.constant 1 : index
    %c0_16 = arith.constant 0 : index
    %c0_17 = arith.constant 0 : index
    %c0_18 = arith.constant 0 : index
    %17 = vector.load %arg4[%c1, %c0_16, %c0_17, %c0_18] : memref<9x4x32x8xbf16, #tpu.memory_space<vmem>>, vector<1x4x32x8xbf16>
    %18 = vector.shape_cast %17 : vector<1x4x32x8xbf16> to vector<4x32x8xbf16>
    "tpu.trace_start"() <{level = 10 : i32, message = "hsd,hdf->hsf"}> : () -> ()
    %cst_19 = arith.constant dense<0.000000e+00> : vector<4x8x8xf32>
    %19 = tpu.matmul %8, %18, %cst_19 {dimension_numbers = #tpu.dot_dimension_numbers<[2], [1], [1], [2], [0, 0, 0, 1, 1, 2], [0], [0]>} : vector<4x8x32xbf16>, vector<4x32x8xbf16>, vector<4x8x8xf32> -> vector<4x8x8xf32>
    "tpu.trace_stop"() : () -> ()
    %c1_20 = arith.constant 1 : index
    %c0_21 = arith.constant 0 : index
    %c0_22 = arith.constant 0 : index
    %c0_23 = arith.constant 0 : index
    %20 = vector.load %arg5[%c1_20, %c0_21, %c0_22, %c0_23] : memref<9x4x1x8xf32, #tpu.memory_space<vmem>>, vector<1x4x1x8xf32>
    %21 = vector.shape_cast %20 : vector<1x4x1x8xf32> to vector<4x1x8xf32>
    %22 = vector.broadcast %21 : vector<4x1x8xf32> to vector<4x8x8xf32>
    %23 = arith.addf %19, %22 : vector<4x8x8xf32>
    %24 = arith.truncf %23 : vector<4x8x8xf32> to vector<4x8x8xbf16>
    %c2 = arith.constant 2 : index
    %c0_24 = arith.constant 0 : index
    %c0_25 = arith.constant 0 : index
    %c0_26 = arith.constant 0 : index
    %25 = vector.load %arg4[%c2, %c0_24, %c0_25, %c0_26] : memref<9x4x32x8xbf16, #tpu.memory_space<vmem>>, vector<1x4x32x8xbf16>
    %26 = vector.shape_cast %25 : vector<1x4x32x8xbf16> to vector<4x32x8xbf16>
    "tpu.trace_start"() <{level = 10 : i32, message = "hsd,hdf->hsf"}> : () -> ()
    %cst_27 = arith.constant dense<0.000000e+00> : vector<4x8x8xf32>
    %27 = tpu.matmul %8, %26, %cst_27 {dimension_numbers = #tpu.dot_dimension_numbers<[2], [1], [1], [2], [0, 0, 0, 1, 1, 2], [0], [0]>} : vector<4x8x32xbf16>, vector<4x32x8xbf16>, vector<4x8x8xf32> -> vector<4x8x8xf32>
    "tpu.trace_stop"() : () -> ()
    %c2_28 = arith.constant 2 : index
    %c0_29 = arith.constant 0 : index
    %c0_30 = arith.constant 0 : index
    %c0_31 = arith.constant 0 : index
    %28 = vector.load %arg5[%c2_28, %c0_29, %c0_30, %c0_31] : memref<9x4x1x8xf32, #tpu.memory_space<vmem>>, vector<1x4x1x8xf32>
    %29 = vector.shape_cast %28 : vector<1x4x1x8xf32> to vector<4x1x8xf32>
    %30 = vector.broadcast %29 : vector<4x1x8xf32> to vector<4x8x8xf32>
    %31 = arith.addf %27, %30 : vector<4x8x8xf32>
    %32 = arith.truncf %31 : vector<4x8x8xf32> to vector<4x8x8xbf16>
    "tpu.trace_start"() <{level = 10 : i32, message = "hqd,hkd->hqk"}> : () -> ()
    %cst_32 = arith.constant dense<0.000000e+00> : vector<4x8x8xf32>
    %33 = tpu.matmul %16, %24, %cst_32 {dimension_numbers = #tpu.dot_dimension_numbers<[2], [2], [1], [1], [0, 0, 0, 1, 1, 1], [0], [0]>} : vector<4x8x8xbf16>, vector<4x8x8xbf16>, vector<4x8x8xf32> -> vector<4x8x8xf32>
    "tpu.trace_stop"() : () -> ()
    %cst_33 = arith.constant 0.353553385 : f32
    %34 = vector.broadcast %cst_33 : f32 to vector<4x8x8xf32>
    %35 = arith.mulf %33, %34 : vector<4x8x8xf32>
    %36 = vector.shape_cast %5 : vector<1x8xf32> to vector<1x1x8xf32>
    %37 = vector.broadcast %36 : vector<1x1x8xf32> to vector<4x8x8xf32>
    %38 = arith.addf %35, %37 : vector<4x8x8xf32>
    %cst_34 = arith.constant dense<0xFF800000> : vector<4x8xf32>
    %39 = vector.multi_reduction <maximumf>, %38, %cst_34 [2] : vector<4x8x8xf32> to vector<4x8xf32>
    %40 = vector.shape_cast %39 : vector<4x8xf32> to vector<4x8x1xf32>
    %41 = vector.broadcast %40 : vector<4x8x1xf32> to vector<4x8x8xf32>
    %42 = arith.subf %38, %41 : vector<4x8x8xf32>
    %43 = math.exp %42 : vector<4x8x8xf32>
    %cst_35 = arith.constant dense<0.000000e+00> : vector<4x8xf32>
    %44 = vector.multi_reduction <add>, %43, %cst_35 [2] : vector<4x8x8xf32> to vector<4x8xf32>
    %45 = vector.shape_cast %44 : vector<4x8xf32> to vector<4x8x1xf32>
    %46 = tpu.reciprocal %45 {approx = true} : vector<4x8x1xf32> -> vector<4x8x1xf32>
    %47 = vector.broadcast %46 : vector<4x8x1xf32> to vector<4x8x8xf32>
    %48 = arith.mulf %43, %47 : vector<4x8x8xf32>
    %49 = arith.truncf %48 : vector<4x8x8xf32> to vector<4x8x8xbf16>
    "tpu.trace_start"() <{level = 10 : i32, message = "hqk,hkd->hqd"}> : () -> ()
    %cst_36 = arith.constant dense<0.000000e+00> : vector<4x8x8xf32>
    %50 = tpu.matmul %49, %32, %cst_36 {dimension_numbers = #tpu.dot_dimension_numbers<[2], [1], [1], [2], [0, 0, 0, 1, 1, 2], [0], [0]>} : vector<4x8x8xbf16>, vector<4x8x8xbf16>, vector<4x8x8xf32> -> vector<4x8x8xf32>
    "tpu.trace_stop"() : () -> ()
    %51 = arith.truncf %50 : vector<4x8x8xf32> to vector<4x8x8xbf16>
    %c0_37 = arith.constant 0 : index
    %c0_38 = arith.constant 0 : index
    %c0_39 = arith.constant 0 : index
    %c0_40 = arith.constant 0 : index
    %52 = vector.load %arg6[%c0_37, %c0_38, %c0_39, %c0_40] : memref<3x4x8x32xbf16, #tpu.memory_space<vmem>>, vector<1x4x8x32xbf16>
    %53 = vector.shape_cast %52 : vector<1x4x8x32xbf16> to vector<4x8x32xbf16>
    "tpu.trace_start"() <{level = 10 : i32, message = "hsd,hde->hse"}> : () -> ()
    %cst_41 = arith.constant dense<0.000000e+00> : vector<4x8x32xf32>
    %54 = tpu.matmul %51, %53, %cst_41 {dimension_numbers = #tpu.dot_dimension_numbers<[2], [1], [1], [2], [0, 0, 0, 1, 1, 2], [0], [0]>} : vector<4x8x8xbf16>, vector<4x8x32xbf16>, vector<4x8x32xf32> -> vector<4x8x32xf32>
    "tpu.trace_stop"() : () -> ()
    %cst_42 = arith.constant dense<0.000000e+00> : vector<8x32xf32>
    %55 = vector.multi_reduction <add>, %54, %cst_42 [0] : vector<4x8x32xf32> to vector<8x32xf32>
    %c0_43 = arith.constant 0 : index
    %c0_44 = arith.constant 0 : index
    %c0_45 = arith.constant 0 : index
    %56 = vector.load %arg7[%c0_43, %c0_44, %c0_45] : memref<3x1x32xf32, #tpu.memory_space<vmem>>, vector<1x1x32xf32>
    %57 = vector.shape_cast %56 : vector<1x1x32xf32> to vector<1x32xf32>
    %58 = vector.broadcast %57 : vector<1x32xf32> to vector<8x32xf32>
    %59 = arith.addf %55, %58 : vector<8x32xf32>
    %60 = arith.addf %59, %1 : vector<8x32xf32>
    %cst_46 = arith.constant dense<0.000000e+00> : vector<8xf32>
    %61 = vector.multi_reduction <add>, %60, %cst_46 [1] : vector<8x32xf32> to vector<8xf32>
    %62 = vector.shape_cast %61 : vector<8xf32> to vector<8x1xf32>
    %cst_47 = arith.constant 3.200000e+01 : f32
    %63 = vector.broadcast %cst_47 : f32 to vector<8x1xf32>
    %64 = arith.divf %62, %63 : vector<8x1xf32>
    %65 = arith.mulf %60, %60 : vector<8x32xf32>
    %cst_48 = arith.constant dense<0.000000e+00> : vector<8xf32>
    %66 = vector.multi_reduction <add>, %65, %cst_48 [1] : vector<8x32xf32> to vector<8xf32>
    %67 = vector.shape_cast %66 : vector<8xf32> to vector<8x1xf32>
    %cst_49 = arith.constant 3.200000e+01 : f32
    %68 = vector.broadcast %cst_49 : f32 to vector<8x1xf32>
    %69 = arith.divf %67, %68 : vector<8x1xf32>
    %70 = arith.mulf %64, %64 : vector<8x1xf32>
    %71 = arith.subf %69, %70 : vector<8x1xf32>
    %cst_50 = arith.constant 9.99999974E-6 : f32
    %72 = vector.broadcast %cst_50 : f32 to vector<8x1xf32>
    %73 = arith.addf %71, %72 : vector<8x1xf32>
    %74 = math.rsqrt %73 : vector<8x1xf32>
    %75 = vector.broadcast %64 : vector<8x1xf32> to vector<8x32xf32>
    %76 = arith.subf %60, %75 : vector<8x32xf32>
    %77 = vector.broadcast %74 : vector<8x1xf32> to vector<8x32xf32>
    %78 = arith.mulf %76, %77 : vector<8x32xf32>
    %c0_51 = arith.constant 0 : index
    %c0_52 = arith.constant 0 : index
    %c0_53 = arith.constant 0 : index
    %79 = vector.load %arg12[%c0_51, %c0_52, %c0_53] : memref<5x1x32xf32, #tpu.memory_space<vmem>>, vector<1x1x32xf32>
    %80 = vector.shape_cast %79 : vector<1x1x32xf32> to vector<1x32xf32>
    %81 = vector.broadcast %80 : vector<1x32xf32> to vector<8x32xf32>
    %82 = arith.mulf %78, %81 : vector<8x32xf32>
    %c0_54 = arith.constant 0 : index
    %c0_55 = arith.constant 0 : index
    %c0_56 = arith.constant 0 : index
    %83 = vector.load %arg13[%c0_54, %c0_55, %c0_56] : memref<5x1x32xf32, #tpu.memory_space<vmem>>, vector<1x1x32xf32>
    %84 = vector.shape_cast %83 : vector<1x1x32xf32> to vector<1x32xf32>
    %85 = vector.broadcast %84 : vector<1x32xf32> to vector<8x32xf32>
    %86 = arith.addf %82, %85 : vector<8x32xf32>
    %87 = arith.truncf %86 : vector<8x32xf32> to vector<8x32xbf16>
    %c0_57 = arith.constant 0 : index
    %c0_58 = arith.constant 0 : index
    %c0_59 = arith.constant 0 : index
    %88 = vector.load %arg8[%c0_57, %c0_58, %c0_59] : memref<2x32x64xbf16, #tpu.memory_space<vmem>>, vector<1x32x64xbf16>
    %89 = vector.shape_cast %88 : vector<1x32x64xbf16> to vector<32x64xbf16>
    %cst_60 = arith.constant dense<0.000000e+00> : vector<8x64xf32>
    %90 = tpu.matmul %87, %89, %cst_60 {dimension_numbers = #tpu.dot_dimension_numbers<[1], [0], [0], [1], [0, 0, 1, 1], [], []>} : vector<8x32xbf16>, vector<32x64xbf16>, vector<8x64xf32> -> vector<8x64xf32>
    %c0_61 = arith.constant 0 : index
    %c0_62 = arith.constant 0 : index
    %c0_63 = arith.constant 0 : index
    %91 = vector.load %arg9[%c0_61, %c0_62, %c0_63] : memref<2x1x64xf32, #tpu.memory_space<vmem>>, vector<1x1x64xf32>
    %92 = vector.shape_cast %91 : vector<1x1x64xf32> to vector<1x64xf32>
    %93 = vector.broadcast %92 : vector<1x64xf32> to vector<8x64xf32>
    %94 = arith.addf %90, %93 : vector<8x64xf32>
    %cst_64 = arith.constant 0.000000e+00 : f32
    %95 = vector.broadcast %cst_64 : f32 to vector<8x64xf32>
    %96 = arith.maximumf %94, %95 : vector<8x64xf32>
    %97 = arith.truncf %96 : vector<8x64xf32> to vector<8x64xbf16>
    %c0_65 = arith.constant 0 : index
    %c0_66 = arith.constant 0 : index
    %c0_67 = arith.constant 0 : index
    %98 = vector.load %arg10[%c0_65, %c0_66, %c0_67] : memref<2x64x32xbf16, #tpu.memory_space<vmem>>, vector<1x64x32xbf16>
    %99 = vector.shape_cast %98 : vector<1x64x32xbf16> to vector<64x32xbf16>
    %cst_68 = arith.constant dense<0.000000e+00> : vector<8x32xf32>
    %100 = tpu.matmul %97, %99, %cst_68 {dimension_numbers = #tpu.dot_dimension_numbers<[1], [0], [0], [1], [0, 0, 1, 1], [], []>} : vector<8x64xbf16>, vector<64x32xbf16>, vector<8x32xf32> -> vector<8x32xf32>
    %c0_69 = arith.constant 0 : index
    %c0_70 = arith.constant 0 : index
    %c0_71 = arith.constant 0 : index
    %101 = vector.load %arg11[%c0_69, %c0_70, %c0_71] : memref<2x1x32xf32, #tpu.memory_space<vmem>>, vector<1x1x32xf32>
    %102 = vector.shape_cast %101 : vector<1x1x32xf32> to vector<1x32xf32>
    %103 = vector.broadcast %102 : vector<1x32xf32> to vector<8x32xf32>
    %104 = arith.addf %100, %103 : vector<8x32xf32>
    %105 = arith.addf %104, %86 : vector<8x32xf32>
    %cst_72 = arith.constant dense<0.000000e+00> : vector<8xf32>
    %106 = vector.multi_reduction <add>, %105, %cst_72 [1] : vector<8x32xf32> to vector<8xf32>
    %107 = vector.shape_cast %106 : vector<8xf32> to vector<8x1xf32>
    %cst_73 = arith.constant 3.200000e+01 : f32
    %108 = vector.broadcast %cst_73 : f32 to vector<8x1xf32>
    %109 = arith.divf %107, %108 : vector<8x1xf32>
    %110 = arith.mulf %105, %105 : vector<8x32xf32>
    %cst_74 = arith.constant dense<0.000000e+00> : vector<8xf32>
    %111 = vector.multi_reduction <add>, %110, %cst_74 [1] : vector<8x32xf32> to vector<8xf32>
    %112 = vector.shape_cast %111 : vector<8xf32> to vector<8x1xf32>
    %cst_75 = arith.constant 3.200000e+01 : f32
    %113 = vector.broadcast %cst_75 : f32 to vector<8x1xf32>
    %114 = arith.divf %112, %113 : vector<8x1xf32>
    %115 = arith.mulf %109, %109 : vector<8x1xf32>
    %116 = arith.subf %114, %115 : vector<8x1xf32>
    %cst_76 = arith.constant 9.99999974E-6 : f32
    %117 = vector.broadcast %cst_76 : f32 to vector<8x1xf32>
    %118 = arith.addf %116, %117 : vector<8x1xf32>
    %119 = math.rsqrt %118 : vector<8x1xf32>
    %120 = vector.broadcast %109 : vector<8x1xf32> to vector<8x32xf32>
    %121 = arith.subf %105, %120 : vector<8x32xf32>
    %122 = vector.broadcast %119 : vector<8x1xf32> to vector<8x32xf32>
    %123 = arith.mulf %121, %122 : vector<8x32xf32>
    %c1_77 = arith.constant 1 : index
    %c0_78 = arith.constant 0 : index
    %c0_79 = arith.constant 0 : index
    %124 = vector.load %arg12[%c1_77, %c0_78, %c0_79] : memref<5x1x32xf32, #tpu.memory_space<vmem>>, vector<1x1x32xf32>
    %125 = vector.shape_cast %124 : vector<1x1x32xf32> to vector<1x32xf32>
    %126 = vector.broadcast %125 : vector<1x32xf32> to vector<8x32xf32>
    %127 = arith.mulf %123, %126 : vector<8x32xf32>
    %c1_80 = arith.constant 1 : index
    %c0_81 = arith.constant 0 : index
    %c0_82 = arith.constant 0 : index
    %128 = vector.load %arg13[%c1_80, %c0_81, %c0_82] : memref<5x1x32xf32, #tpu.memory_space<vmem>>, vector<1x1x32xf32>
    %129 = vector.shape_cast %128 : vector<1x1x32xf32> to vector<1x32xf32>
    %130 = vector.broadcast %129 : vector<1x32xf32> to vector<8x32xf32>
    %131 = arith.addf %127, %130 : vector<8x32xf32>
    %132 = arith.truncf %3 : vector<8x32xf32> to vector<8x32xbf16>
    %133 = vector.shape_cast %132 : vector<8x32xbf16> to vector<1x8x32xbf16>
    %134 = vector.broadcast %133 : vector<1x8x32xbf16> to vector<4x8x32xbf16>
    %c3 = arith.constant 3 : index
    %c0_83 = arith.constant 0 : index
    %c0_84 = arith.constant 0 : index
    %c0_85 = arith.constant 0 : index
    %135 = vector.load %arg4[%c3, %c0_83, %c0_84, %c0_85] : memref<9x4x32x8xbf16, #tpu.memory_space<vmem>>, vector<1x4x32x8xbf16>
    %136 = vector.shape_cast %135 : vector<1x4x32x8xbf16> to vector<4x32x8xbf16>
    "tpu.trace_start"() <{level = 10 : i32, message = "hsd,hdf->hsf"}> : () -> ()
    %cst_86 = arith.constant dense<0.000000e+00> : vector<4x8x8xf32>
    %137 = tpu.matmul %134, %136, %cst_86 {dimension_numbers = #tpu.dot_dimension_numbers<[2], [1], [1], [2], [0, 0, 0, 1, 1, 2], [0], [0]>} : vector<4x8x32xbf16>, vector<4x32x8xbf16>, vector<4x8x8xf32> -> vector<4x8x8xf32>
    "tpu.trace_stop"() : () -> ()
    %c3_87 = arith.constant 3 : index
    %c0_88 = arith.constant 0 : index
    %c0_89 = arith.constant 0 : index
    %c0_90 = arith.constant 0 : index
    %138 = vector.load %arg5[%c3_87, %c0_88, %c0_89, %c0_90] : memref<9x4x1x8xf32, #tpu.memory_space<vmem>>, vector<1x4x1x8xf32>
    %139 = vector.shape_cast %138 : vector<1x4x1x8xf32> to vector<4x1x8xf32>
    %140 = vector.broadcast %139 : vector<4x1x8xf32> to vector<4x8x8xf32>
    %141 = arith.addf %137, %140 : vector<4x8x8xf32>
    %142 = arith.truncf %141 : vector<4x8x8xf32> to vector<4x8x8xbf16>
    %c4 = arith.constant 4 : index
    %c0_91 = arith.constant 0 : index
    %c0_92 = arith.constant 0 : index
    %c0_93 = arith.constant 0 : index
    %143 = vector.load %arg4[%c4, %c0_91, %c0_92, %c0_93] : memref<9x4x32x8xbf16, #tpu.memory_space<vmem>>, vector<1x4x32x8xbf16>
    %144 = vector.shape_cast %143 : vector<1x4x32x8xbf16> to vector<4x32x8xbf16>
    "tpu.trace_start"() <{level = 10 : i32, message = "hsd,hdf->hsf"}> : () -> ()
    %cst_94 = arith.constant dense<0.000000e+00> : vector<4x8x8xf32>
    %145 = tpu.matmul %134, %144, %cst_94 {dimension_numbers = #tpu.dot_dimension_numbers<[2], [1], [1], [2], [0, 0, 0, 1, 1, 2], [0], [0]>} : vector<4x8x32xbf16>, vector<4x32x8xbf16>, vector<4x8x8xf32> -> vector<4x8x8xf32>
    "tpu.trace_stop"() : () -> ()
    %c4_95 = arith.constant 4 : index
    %c0_96 = arith.constant 0 : index
    %c0_97 = arith.constant 0 : index
    %c0_98 = arith.constant 0 : index
    %146 = vector.load %arg5[%c4_95, %c0_96, %c0_97, %c0_98] : memref<9x4x1x8xf32, #tpu.memory_space<vmem>>, vector<1x4x1x8xf32>
    %147 = vector.shape_cast %146 : vector<1x4x1x8xf32> to vector<4x1x8xf32>
    %148 = vector.broadcast %147 : vector<4x1x8xf32> to vector<4x8x8xf32>
    %149 = arith.addf %145, %148 : vector<4x8x8xf32>
    %150 = arith.truncf %149 : vector<4x8x8xf32> to vector<4x8x8xbf16>
    %c5 = arith.constant 5 : index
    %c0_99 = arith.constant 0 : index
    %c0_100 = arith.constant 0 : index
    %c0_101 = arith.constant 0 : index
    %151 = vector.load %arg4[%c5, %c0_99, %c0_100, %c0_101] : memref<9x4x32x8xbf16, #tpu.memory_space<vmem>>, vector<1x4x32x8xbf16>
    %152 = vector.shape_cast %151 : vector<1x4x32x8xbf16> to vector<4x32x8xbf16>
    "tpu.trace_start"() <{level = 10 : i32, message = "hsd,hdf->hsf"}> : () -> ()
    %cst_102 = arith.constant dense<0.000000e+00> : vector<4x8x8xf32>
    %153 = tpu.matmul %134, %152, %cst_102 {dimension_numbers = #tpu.dot_dimension_numbers<[2], [1], [1], [2], [0, 0, 0, 1, 1, 2], [0], [0]>} : vector<4x8x32xbf16>, vector<4x32x8xbf16>, vector<4x8x8xf32> -> vector<4x8x8xf32>
    "tpu.trace_stop"() : () -> ()
    %c5_103 = arith.constant 5 : index
    %c0_104 = arith.constant 0 : index
    %c0_105 = arith.constant 0 : index
    %c0_106 = arith.constant 0 : index
    %154 = vector.load %arg5[%c5_103, %c0_104, %c0_105, %c0_106] : memref<9x4x1x8xf32, #tpu.memory_space<vmem>>, vector<1x4x1x8xf32>
    %155 = vector.shape_cast %154 : vector<1x4x1x8xf32> to vector<4x1x8xf32>
    %156 = vector.broadcast %155 : vector<4x1x8xf32> to vector<4x8x8xf32>
    %157 = arith.addf %153, %156 : vector<4x8x8xf32>
    %158 = arith.truncf %157 : vector<4x8x8xf32> to vector<4x8x8xbf16>
    "tpu.trace_start"() <{level = 10 : i32, message = "hqd,hkd->hqk"}> : () -> ()
    %cst_107 = arith.constant dense<0.000000e+00> : vector<4x8x8xf32>
    %159 = tpu.matmul %142, %150, %cst_107 {dimension_numbers = #tpu.dot_dimension_numbers<[2], [2], [1], [1], [0, 0, 0, 1, 1, 1], [0], [0]>} : vector<4x8x8xbf16>, vector<4x8x8xbf16>, vector<4x8x8xf32> -> vector<4x8x8xf32>
    "tpu.trace_stop"() : () -> ()
    %cst_108 = arith.constant 0.353553385 : f32
    %160 = vector.broadcast %cst_108 : f32 to vector<4x8x8xf32>
    %161 = arith.mulf %159, %160 : vector<4x8x8xf32>
    %cst_109 = arith.constant dense<0xFF800000> : vector<4x8xf32>
    %162 = vector.multi_reduction <maximumf>, %161, %cst_109 [2] : vector<4x8x8xf32> to vector<4x8xf32>
    %163 = vector.shape_cast %162 : vector<4x8xf32> to vector<4x8x1xf32>
    %164 = vector.broadcast %163 : vector<4x8x1xf32> to vector<4x8x8xf32>
    %165 = arith.subf %161, %164 : vector<4x8x8xf32>
    %166 = math.exp %165 : vector<4x8x8xf32>
    %cst_110 = arith.constant dense<0.000000e+00> : vector<4x8xf32>
    %167 = vector.multi_reduction <add>, %166, %cst_110 [2] : vector<4x8x8xf32> to vector<4x8xf32>
    %168 = vector.shape_cast %167 : vector<4x8xf32> to vector<4x8x1xf32>
    %169 = tpu.reciprocal %168 {approx = true} : vector<4x8x1xf32> -> vector<4x8x1xf32>
    %170 = vector.broadcast %169 : vector<4x8x1xf32> to vector<4x8x8xf32>
    %171 = arith.mulf %166, %170 : vector<4x8x8xf32>
    %172 = arith.truncf %171 : vector<4x8x8xf32> to vector<4x8x8xbf16>
    "tpu.trace_start"() <{level = 10 : i32, message = "hqk,hkd->hqd"}> : () -> ()
    %cst_111 = arith.constant dense<0.000000e+00> : vector<4x8x8xf32>
    %173 = tpu.matmul %172, %158, %cst_111 {dimension_numbers = #tpu.dot_dimension_numbers<[2], [1], [1], [2], [0, 0, 0, 1, 1, 2], [0], [0]>} : vector<4x8x8xbf16>, vector<4x8x8xbf16>, vector<4x8x8xf32> -> vector<4x8x8xf32>
    "tpu.trace_stop"() : () -> ()
    %174 = arith.truncf %173 : vector<4x8x8xf32> to vector<4x8x8xbf16>
    %c1_112 = arith.constant 1 : index
    %c0_113 = arith.constant 0 : index
    %c0_114 = arith.constant 0 : index
    %c0_115 = arith.constant 0 : index
    %175 = vector.load %arg6[%c1_112, %c0_113, %c0_114, %c0_115] : memref<3x4x8x32xbf16, #tpu.memory_space<vmem>>, vector<1x4x8x32xbf16>
    %176 = vector.shape_cast %175 : vector<1x4x8x32xbf16> to vector<4x8x32xbf16>
    "tpu.trace_start"() <{level = 10 : i32, message = "hsd,hde->hse"}> : () -> ()
    %cst_116 = arith.constant dense<0.000000e+00> : vector<4x8x32xf32>
    %177 = tpu.matmul %174, %176, %cst_116 {dimension_numbers = #tpu.dot_dimension_numbers<[2], [1], [1], [2], [0, 0, 0, 1, 1, 2], [0], [0]>} : vector<4x8x8xbf16>, vector<4x8x32xbf16>, vector<4x8x32xf32> -> vector<4x8x32xf32>
    "tpu.trace_stop"() : () -> ()
    %cst_117 = arith.constant dense<0.000000e+00> : vector<8x32xf32>
    %178 = vector.multi_reduction <add>, %177, %cst_117 [0] : vector<4x8x32xf32> to vector<8x32xf32>
    %c1_118 = arith.constant 1 : index
    %c0_119 = arith.constant 0 : index
    %c0_120 = arith.constant 0 : index
    %179 = vector.load %arg7[%c1_118, %c0_119, %c0_120] : memref<3x1x32xf32, #tpu.memory_space<vmem>>, vector<1x1x32xf32>
    %180 = vector.shape_cast %179 : vector<1x1x32xf32> to vector<1x32xf32>
    %181 = vector.broadcast %180 : vector<1x32xf32> to vector<8x32xf32>
    %182 = arith.addf %178, %181 : vector<8x32xf32>
    %183 = arith.addf %182, %3 : vector<8x32xf32>
    %cst_121 = arith.constant dense<0.000000e+00> : vector<8xf32>
    %184 = vector.multi_reduction <add>, %183, %cst_121 [1] : vector<8x32xf32> to vector<8xf32>
    %185 = vector.shape_cast %184 : vector<8xf32> to vector<8x1xf32>
    %cst_122 = arith.constant 3.200000e+01 : f32
    %186 = vector.broadcast %cst_122 : f32 to vector<8x1xf32>
    %187 = arith.divf %185, %186 : vector<8x1xf32>
    %188 = arith.mulf %183, %183 : vector<8x32xf32>
    %cst_123 = arith.constant dense<0.000000e+00> : vector<8xf32>
    %189 = vector.multi_reduction <add>, %188, %cst_123 [1] : vector<8x32xf32> to vector<8xf32>
    %190 = vector.shape_cast %189 : vector<8xf32> to vector<8x1xf32>
    %cst_124 = arith.constant 3.200000e+01 : f32
    %191 = vector.broadcast %cst_124 : f32 to vector<8x1xf32>
    %192 = arith.divf %190, %191 : vector<8x1xf32>
    %193 = arith.mulf %187, %187 : vector<8x1xf32>
    %194 = arith.subf %192, %193 : vector<8x1xf32>
    %cst_125 = arith.constant 9.99999974E-6 : f32
    %195 = vector.broadcast %cst_125 : f32 to vector<8x1xf32>
    %196 = arith.addf %194, %195 : vector<8x1xf32>
    %197 = math.rsqrt %196 : vector<8x1xf32>
    %198 = vector.broadcast %187 : vector<8x1xf32> to vector<8x32xf32>
    %199 = arith.subf %183, %198 : vector<8x32xf32>
    %200 = vector.broadcast %197 : vector<8x1xf32> to vector<8x32xf32>
    %201 = arith.mulf %199, %200 : vector<8x32xf32>
    %c2_126 = arith.constant 2 : index
    %c0_127 = arith.constant 0 : index
    %c0_128 = arith.constant 0 : index
    %202 = vector.load %arg12[%c2_126, %c0_127, %c0_128] : memref<5x1x32xf32, #tpu.memory_space<vmem>>, vector<1x1x32xf32>
    %203 = vector.shape_cast %202 : vector<1x1x32xf32> to vector<1x32xf32>
    %204 = vector.broadcast %203 : vector<1x32xf32> to vector<8x32xf32>
    %205 = arith.mulf %201, %204 : vector<8x32xf32>
    %c2_129 = arith.constant 2 : index
    %c0_130 = arith.constant 0 : index
    %c0_131 = arith.constant 0 : index
    %206 = vector.load %arg13[%c2_129, %c0_130, %c0_131] : memref<5x1x32xf32, #tpu.memory_space<vmem>>, vector<1x1x32xf32>
    %207 = vector.shape_cast %206 : vector<1x1x32xf32> to vector<1x32xf32>
    %208 = vector.broadcast %207 : vector<1x32xf32> to vector<8x32xf32>
    %209 = arith.addf %205, %208 : vector<8x32xf32>
    %210 = arith.truncf %209 : vector<8x32xf32> to vector<8x32xbf16>
    %211 = vector.shape_cast %210 : vector<8x32xbf16> to vector<1x8x32xbf16>
    %212 = vector.broadcast %211 : vector<1x8x32xbf16> to vector<4x8x32xbf16>
    %213 = arith.truncf %131 : vector<8x32xf32> to vector<8x32xbf16>
    %214 = vector.shape_cast %213 : vector<8x32xbf16> to vector<1x8x32xbf16>
    %215 = vector.broadcast %214 : vector<1x8x32xbf16> to vector<4x8x32xbf16>
    %c6 = arith.constant 6 : index
    %c0_132 = arith.constant 0 : index
    %c0_133 = arith.constant 0 : index
    %c0_134 = arith.constant 0 : index
    %216 = vector.load %arg4[%c6, %c0_132, %c0_133, %c0_134] : memref<9x4x32x8xbf16, #tpu.memory_space<vmem>>, vector<1x4x32x8xbf16>
    %217 = vector.shape_cast %216 : vector<1x4x32x8xbf16> to vector<4x32x8xbf16>
    "tpu.trace_start"() <{level = 10 : i32, message = "hsd,hdf->hsf"}> : () -> ()
    %cst_135 = arith.constant dense<0.000000e+00> : vector<4x8x8xf32>
    %218 = tpu.matmul %212, %217, %cst_135 {dimension_numbers = #tpu.dot_dimension_numbers<[2], [1], [1], [2], [0, 0, 0, 1, 1, 2], [0], [0]>} : vector<4x8x32xbf16>, vector<4x32x8xbf16>, vector<4x8x8xf32> -> vector<4x8x8xf32>
    "tpu.trace_stop"() : () -> ()
    %c6_136 = arith.constant 6 : index
    %c0_137 = arith.constant 0 : index
    %c0_138 = arith.constant 0 : index
    %c0_139 = arith.constant 0 : index
    %219 = vector.load %arg5[%c6_136, %c0_137, %c0_138, %c0_139] : memref<9x4x1x8xf32, #tpu.memory_space<vmem>>, vector<1x4x1x8xf32>
    %220 = vector.shape_cast %219 : vector<1x4x1x8xf32> to vector<4x1x8xf32>
    %221 = vector.broadcast %220 : vector<4x1x8xf32> to vector<4x8x8xf32>
    %222 = arith.addf %218, %221 : vector<4x8x8xf32>
    %223 = arith.truncf %222 : vector<4x8x8xf32> to vector<4x8x8xbf16>
    %c7 = arith.constant 7 : index
    %c0_140 = arith.constant 0 : index
    %c0_141 = arith.constant 0 : index
    %c0_142 = arith.constant 0 : index
    %224 = vector.load %arg4[%c7, %c0_140, %c0_141, %c0_142] : memref<9x4x32x8xbf16, #tpu.memory_space<vmem>>, vector<1x4x32x8xbf16>
    %225 = vector.shape_cast %224 : vector<1x4x32x8xbf16> to vector<4x32x8xbf16>
    "tpu.trace_start"() <{level = 10 : i32, message = "hsd,hdf->hsf"}> : () -> ()
    %cst_143 = arith.constant dense<0.000000e+00> : vector<4x8x8xf32>
    %226 = tpu.matmul %215, %225, %cst_143 {dimension_numbers = #tpu.dot_dimension_numbers<[2], [1], [1], [2], [0, 0, 0, 1, 1, 2], [0], [0]>} : vector<4x8x32xbf16>, vector<4x32x8xbf16>, vector<4x8x8xf32> -> vector<4x8x8xf32>
    "tpu.trace_stop"() : () -> ()
    %c7_144 = arith.constant 7 : index
    %c0_145 = arith.constant 0 : index
    %c0_146 = arith.constant 0 : index
    %c0_147 = arith.constant 0 : index
    %227 = vector.load %arg5[%c7_144, %c0_145, %c0_146, %c0_147] : memref<9x4x1x8xf32, #tpu.memory_space<vmem>>, vector<1x4x1x8xf32>
    %228 = vector.shape_cast %227 : vector<1x4x1x8xf32> to vector<4x1x8xf32>
    %229 = vector.broadcast %228 : vector<4x1x8xf32> to vector<4x8x8xf32>
    %230 = arith.addf %226, %229 : vector<4x8x8xf32>
    %231 = arith.truncf %230 : vector<4x8x8xf32> to vector<4x8x8xbf16>
    %c8 = arith.constant 8 : index
    %c0_148 = arith.constant 0 : index
    %c0_149 = arith.constant 0 : index
    %c0_150 = arith.constant 0 : index
    %232 = vector.load %arg4[%c8, %c0_148, %c0_149, %c0_150] : memref<9x4x32x8xbf16, #tpu.memory_space<vmem>>, vector<1x4x32x8xbf16>
    %233 = vector.shape_cast %232 : vector<1x4x32x8xbf16> to vector<4x32x8xbf16>
    "tpu.trace_start"() <{level = 10 : i32, message = "hsd,hdf->hsf"}> : () -> ()
    %cst_151 = arith.constant dense<0.000000e+00> : vector<4x8x8xf32>
    %234 = tpu.matmul %215, %233, %cst_151 {dimension_numbers = #tpu.dot_dimension_numbers<[2], [1], [1], [2], [0, 0, 0, 1, 1, 2], [0], [0]>} : vector<4x8x32xbf16>, vector<4x32x8xbf16>, vector<4x8x8xf32> -> vector<4x8x8xf32>
    "tpu.trace_stop"() : () -> ()
    %c8_152 = arith.constant 8 : index
    %c0_153 = arith.constant 0 : index
    %c0_154 = arith.constant 0 : index
    %c0_155 = arith.constant 0 : index
    %235 = vector.load %arg5[%c8_152, %c0_153, %c0_154, %c0_155] : memref<9x4x1x8xf32, #tpu.memory_space<vmem>>, vector<1x4x1x8xf32>
    %236 = vector.shape_cast %235 : vector<1x4x1x8xf32> to vector<4x1x8xf32>
    %237 = vector.broadcast %236 : vector<4x1x8xf32> to vector<4x8x8xf32>
    %238 = arith.addf %234, %237 : vector<4x8x8xf32>
    %239 = arith.truncf %238 : vector<4x8x8xf32> to vector<4x8x8xbf16>
    "tpu.trace_start"() <{level = 10 : i32, message = "hqd,hkd->hqk"}> : () -> ()
    %cst_156 = arith.constant dense<0.000000e+00> : vector<4x8x8xf32>
    %240 = tpu.matmul %223, %231, %cst_156 {dimension_numbers = #tpu.dot_dimension_numbers<[2], [2], [1], [1], [0, 0, 0, 1, 1, 1], [0], [0]>} : vector<4x8x8xbf16>, vector<4x8x8xbf16>, vector<4x8x8xf32> -> vector<4x8x8xf32>
    "tpu.trace_stop"() : () -> ()
    %cst_157 = arith.constant 0.353553385 : f32
    %241 = vector.broadcast %cst_157 : f32 to vector<4x8x8xf32>
    %242 = arith.mulf %240, %241 : vector<4x8x8xf32>
    %cst_158 = arith.constant dense<0xFF800000> : vector<4x8xf32>
    %243 = vector.multi_reduction <maximumf>, %242, %cst_158 [2] : vector<4x8x8xf32> to vector<4x8xf32>
    %244 = vector.shape_cast %243 : vector<4x8xf32> to vector<4x8x1xf32>
    %245 = vector.broadcast %244 : vector<4x8x1xf32> to vector<4x8x8xf32>
    %246 = arith.subf %242, %245 : vector<4x8x8xf32>
    %247 = math.exp %246 : vector<4x8x8xf32>
    %cst_159 = arith.constant dense<0.000000e+00> : vector<4x8xf32>
    %248 = vector.multi_reduction <add>, %247, %cst_159 [2] : vector<4x8x8xf32> to vector<4x8xf32>
    %249 = vector.shape_cast %248 : vector<4x8xf32> to vector<4x8x1xf32>
    %250 = tpu.reciprocal %249 {approx = true} : vector<4x8x1xf32> -> vector<4x8x1xf32>
    %251 = vector.broadcast %250 : vector<4x8x1xf32> to vector<4x8x8xf32>
    %252 = arith.mulf %247, %251 : vector<4x8x8xf32>
    %253 = arith.truncf %252 : vector<4x8x8xf32> to vector<4x8x8xbf16>
    "tpu.trace_start"() <{level = 10 : i32, message = "hqk,hkd->hqd"}> : () -> ()
    %cst_160 = arith.constant dense<0.000000e+00> : vector<4x8x8xf32>
    %254 = tpu.matmul %253, %239, %cst_160 {dimension_numbers = #tpu.dot_dimension_numbers<[2], [1], [1], [2], [0, 0, 0, 1, 1, 2], [0], [0]>} : vector<4x8x8xbf16>, vector<4x8x8xbf16>, vector<4x8x8xf32> -> vector<4x8x8xf32>
    "tpu.trace_stop"() : () -> ()
    %255 = arith.truncf %254 : vector<4x8x8xf32> to vector<4x8x8xbf16>
    %c2_161 = arith.constant 2 : index
    %c0_162 = arith.constant 0 : index
    %c0_163 = arith.constant 0 : index
    %c0_164 = arith.constant 0 : index
    %256 = vector.load %arg6[%c2_161, %c0_162, %c0_163, %c0_164] : memref<3x4x8x32xbf16, #tpu.memory_space<vmem>>, vector<1x4x8x32xbf16>
    %257 = vector.shape_cast %256 : vector<1x4x8x32xbf16> to vector<4x8x32xbf16>
    "tpu.trace_start"() <{level = 10 : i32, message = "hsd,hde->hse"}> : () -> ()
    %cst_165 = arith.constant dense<0.000000e+00> : vector<4x8x32xf32>
    %258 = tpu.matmul %255, %257, %cst_165 {dimension_numbers = #tpu.dot_dimension_numbers<[2], [1], [1], [2], [0, 0, 0, 1, 1, 2], [0], [0]>} : vector<4x8x8xbf16>, vector<4x8x32xbf16>, vector<4x8x32xf32> -> vector<4x8x32xf32>
    "tpu.trace_stop"() : () -> ()
    %cst_166 = arith.constant dense<0.000000e+00> : vector<8x32xf32>
    %259 = vector.multi_reduction <add>, %258, %cst_166 [0] : vector<4x8x32xf32> to vector<8x32xf32>
    %c2_167 = arith.constant 2 : index
    %c0_168 = arith.constant 0 : index
    %c0_169 = arith.constant 0 : index
    %260 = vector.load %arg7[%c2_167, %c0_168, %c0_169] : memref<3x1x32xf32, #tpu.memory_space<vmem>>, vector<1x1x32xf32>
    %261 = vector.shape_cast %260 : vector<1x1x32xf32> to vector<1x32xf32>
    %262 = vector.broadcast %261 : vector<1x32xf32> to vector<8x32xf32>
    %263 = arith.addf %259, %262 : vector<8x32xf32>
    %264 = arith.addf %263, %209 : vector<8x32xf32>
    %cst_170 = arith.constant dense<0.000000e+00> : vector<8xf32>
    %265 = vector.multi_reduction <add>, %264, %cst_170 [1] : vector<8x32xf32> to vector<8xf32>
    %266 = vector.shape_cast %265 : vector<8xf32> to vector<8x1xf32>
    %cst_171 = arith.constant 3.200000e+01 : f32
    %267 = vector.broadcast %cst_171 : f32 to vector<8x1xf32>
    %268 = arith.divf %266, %267 : vector<8x1xf32>
    %269 = arith.mulf %264, %264 : vector<8x32xf32>
    %cst_172 = arith.constant dense<0.000000e+00> : vector<8xf32>
    %270 = vector.multi_reduction <add>, %269, %cst_172 [1] : vector<8x32xf32> to vector<8xf32>
    %271 = vector.shape_cast %270 : vector<8xf32> to vector<8x1xf32>
    %cst_173 = arith.constant 3.200000e+01 : f32
    %272 = vector.broadcast %cst_173 : f32 to vector<8x1xf32>
    %273 = arith.divf %271, %272 : vector<8x1xf32>
    %274 = arith.mulf %268, %268 : vector<8x1xf32>
    %275 = arith.subf %273, %274 : vector<8x1xf32>
    %cst_174 = arith.constant 9.99999974E-6 : f32
    %276 = vector.broadcast %cst_174 : f32 to vector<8x1xf32>
    %277 = arith.addf %275, %276 : vector<8x1xf32>
    %278 = math.rsqrt %277 : vector<8x1xf32>
    %279 = vector.broadcast %268 : vector<8x1xf32> to vector<8x32xf32>
    %280 = arith.subf %264, %279 : vector<8x32xf32>
    %281 = vector.broadcast %278 : vector<8x1xf32> to vector<8x32xf32>
    %282 = arith.mulf %280, %281 : vector<8x32xf32>
    %c3_175 = arith.constant 3 : index
    %c0_176 = arith.constant 0 : index
    %c0_177 = arith.constant 0 : index
    %283 = vector.load %arg12[%c3_175, %c0_176, %c0_177] : memref<5x1x32xf32, #tpu.memory_space<vmem>>, vector<1x1x32xf32>
    %284 = vector.shape_cast %283 : vector<1x1x32xf32> to vector<1x32xf32>
    %285 = vector.broadcast %284 : vector<1x32xf32> to vector<8x32xf32>
    %286 = arith.mulf %282, %285 : vector<8x32xf32>
    %c3_178 = arith.constant 3 : index
    %c0_179 = arith.constant 0 : index
    %c0_180 = arith.constant 0 : index
    %287 = vector.load %arg13[%c3_178, %c0_179, %c0_180] : memref<5x1x32xf32, #tpu.memory_space<vmem>>, vector<1x1x32xf32>
    %288 = vector.shape_cast %287 : vector<1x1x32xf32> to vector<1x32xf32>
    %289 = vector.broadcast %288 : vector<1x32xf32> to vector<8x32xf32>
    %290 = arith.addf %286, %289 : vector<8x32xf32>
    %291 = arith.truncf %290 : vector<8x32xf32> to vector<8x32xbf16>
    %c1_181 = arith.constant 1 : index
    %c0_182 = arith.constant 0 : index
    %c0_183 = arith.constant 0 : index
    %292 = vector.load %arg8[%c1_181, %c0_182, %c0_183] : memref<2x32x64xbf16, #tpu.memory_space<vmem>>, vector<1x32x64xbf16>
    %293 = vector.shape_cast %292 : vector<1x32x64xbf16> to vector<32x64xbf16>
    %cst_184 = arith.constant dense<0.000000e+00> : vector<8x64xf32>
    %294 = tpu.matmul %291, %293, %cst_184 {dimension_numbers = #tpu.dot_dimension_numbers<[1], [0], [0], [1], [0, 0, 1, 1], [], []>} : vector<8x32xbf16>, vector<32x64xbf16>, vector<8x64xf32> -> vector<8x64xf32>
    %c1_185 = arith.constant 1 : index
    %c0_186 = arith.constant 0 : index
    %c0_187 = arith.constant 0 : index
    %295 = vector.load %arg9[%c1_185, %c0_186, %c0_187] : memref<2x1x64xf32, #tpu.memory_space<vmem>>, vector<1x1x64xf32>
    %296 = vector.shape_cast %295 : vector<1x1x64xf32> to vector<1x64xf32>
    %297 = vector.broadcast %296 : vector<1x64xf32> to vector<8x64xf32>
    %298 = arith.addf %294, %297 : vector<8x64xf32>
    %cst_188 = arith.constant 0.000000e+00 : f32
    %299 = vector.broadcast %cst_188 : f32 to vector<8x64xf32>
    %300 = arith.maximumf %298, %299 : vector<8x64xf32>
    %301 = arith.truncf %300 : vector<8x64xf32> to vector<8x64xbf16>
    %c1_189 = arith.constant 1 : index
    %c0_190 = arith.constant 0 : index
    %c0_191 = arith.constant 0 : index
    %302 = vector.load %arg10[%c1_189, %c0_190, %c0_191] : memref<2x64x32xbf16, #tpu.memory_space<vmem>>, vector<1x64x32xbf16>
    %303 = vector.shape_cast %302 : vector<1x64x32xbf16> to vector<64x32xbf16>
    %cst_192 = arith.constant dense<0.000000e+00> : vector<8x32xf32>
    %304 = tpu.matmul %301, %303, %cst_192 {dimension_numbers = #tpu.dot_dimension_numbers<[1], [0], [0], [1], [0, 0, 1, 1], [], []>} : vector<8x64xbf16>, vector<64x32xbf16>, vector<8x32xf32> -> vector<8x32xf32>
    %c1_193 = arith.constant 1 : index
    %c0_194 = arith.constant 0 : index
    %c0_195 = arith.constant 0 : index
    %305 = vector.load %arg11[%c1_193, %c0_194, %c0_195] : memref<2x1x32xf32, #tpu.memory_space<vmem>>, vector<1x1x32xf32>
    %306 = vector.shape_cast %305 : vector<1x1x32xf32> to vector<1x32xf32>
    %307 = vector.broadcast %306 : vector<1x32xf32> to vector<8x32xf32>
    %308 = arith.addf %304, %307 : vector<8x32xf32>
    %309 = arith.addf %308, %290 : vector<8x32xf32>
    %cst_196 = arith.constant dense<0.000000e+00> : vector<8xf32>
    %310 = vector.multi_reduction <add>, %309, %cst_196 [1] : vector<8x32xf32> to vector<8xf32>
    %311 = vector.shape_cast %310 : vector<8xf32> to vector<8x1xf32>
    %cst_197 = arith.constant 3.200000e+01 : f32
    %312 = vector.broadcast %cst_197 : f32 to vector<8x1xf32>
    %313 = arith.divf %311, %312 : vector<8x1xf32>
    %314 = arith.mulf %309, %309 : vector<8x32xf32>
    %cst_198 = arith.constant dense<0.000000e+00> : vector<8xf32>
    %315 = vector.multi_reduction <add>, %314, %cst_198 [1] : vector<8x32xf32> to vector<8xf32>
    %316 = vector.shape_cast %315 : vector<8xf32> to vector<8x1xf32>
    %cst_199 = arith.constant 3.200000e+01 : f32
    %317 = vector.broadcast %cst_199 : f32 to vector<8x1xf32>
    %318 = arith.divf %316, %317 : vector<8x1xf32>
    %319 = arith.mulf %313, %313 : vector<8x1xf32>
    %320 = arith.subf %318, %319 : vector<8x1xf32>
    %cst_200 = arith.constant 9.99999974E-6 : f32
    %321 = vector.broadcast %cst_200 : f32 to vector<8x1xf32>
    %322 = arith.addf %320, %321 : vector<8x1xf32>
    %323 = math.rsqrt %322 : vector<8x1xf32>
    %324 = vector.broadcast %313 : vector<8x1xf32> to vector<8x32xf32>
    %325 = arith.subf %309, %324 : vector<8x32xf32>
    %326 = vector.broadcast %323 : vector<8x1xf32> to vector<8x32xf32>
    %327 = arith.mulf %325, %326 : vector<8x32xf32>
    %c4_201 = arith.constant 4 : index
    %c0_202 = arith.constant 0 : index
    %c0_203 = arith.constant 0 : index
    %328 = vector.load %arg12[%c4_201, %c0_202, %c0_203] : memref<5x1x32xf32, #tpu.memory_space<vmem>>, vector<1x1x32xf32>
    %329 = vector.shape_cast %328 : vector<1x1x32xf32> to vector<1x32xf32>
    %330 = vector.broadcast %329 : vector<1x32xf32> to vector<8x32xf32>
    %331 = arith.mulf %327, %330 : vector<8x32xf32>
    %c4_204 = arith.constant 4 : index
    %c0_205 = arith.constant 0 : index
    %c0_206 = arith.constant 0 : index
    %332 = vector.load %arg13[%c4_204, %c0_205, %c0_206] : memref<5x1x32xf32, #tpu.memory_space<vmem>>, vector<1x1x32xf32>
    %333 = vector.shape_cast %332 : vector<1x1x32xf32> to vector<1x32xf32>
    %334 = vector.broadcast %333 : vector<1x32xf32> to vector<8x32xf32>
    %335 = arith.addf %331, %334 : vector<8x32xf32>
    %c0_207 = arith.constant 0 : index
    %c0_208 = arith.constant 0 : index
    %c0_209 = arith.constant 0 : index
    %336 = vector.load %arg14[%c0_207, %c0_208, %c0_209] : memref<1x8x32xf32, #tpu.memory_space<vmem>>, vector<1x8x32xf32>
    %337 = vector.shape_cast %336 : vector<1x8x32xf32> to vector<8x32xf32>
    %338 = vector.shape_cast %335 : vector<8x32xf32> to vector<1x8x32xf32>
    tpu.vector_store %arg14[%c0_207, %c0_208, %c0_209], %338 {strides = array<i32>} : memref<1x8x32xf32, #tpu.memory_space<vmem>>, vector<1x8x32xf32>,
    return
  }
  func.func @transform_0(%arg0: i32) -> (i32, i32, i32) {
    %c0_i32 = arith.constant 0 : i32
    %c0_i32_0 = arith.constant 0 : i32
    %c0_i32_1 = arith.constant 0 : i32
    return %arg0, %c0_i32, %c0_i32_0 : i32, i32, i32
  }
  func.func @transform_1(%arg0: i32) -> (i32, i32, i32) {
    %c0_i32 = arith.constant 0 : i32
    %c0_i32_0 = arith.constant 0 : i32
    %c0_i32_1 = arith.constant 0 : i32
    return %arg0, %c0_i32, %c0_i32_0 : i32, i32, i32
  }
  func.func @transform_2(%arg0: i32) -> (i32, i32, i32) {
    %c0_i32 = arith.constant 0 : i32
    %c0_i32_0 = arith.constant 0 : i32
    %c0_i32_1 = arith.constant 0 : i32
    return %arg0, %c0_i32, %c0_i32_0 : i32, i32, i32
  }
  func.func @transform_3(%arg0: i32) -> (i32, i32, i32, i32) {
    %c0_i32 = arith.constant 0 : i32
    %c0_i32_0 = arith.constant 0 : i32
    %c0_i32_1 = arith.constant 0 : i32
    %c0_i32_2 = arith.constant 0 : i32
    %c0_i32_3 = arith.constant 0 : i32
    return %c0_i32, %c0_i32_0, %c0_i32_1, %c0_i32_2 : i32, i32, i32, i32
  }
  func.func @transform_4(%arg0: i32) -> (i32, i32, i32, i32) {
    %c0_i32 = arith.constant 0 : i32
    %c0_i32_0 = arith.constant 0 : i32
    %c0_i32_1 = arith.constant 0 : i32
    %c0_i32_2 = arith.constant 0 : i32
    %c0_i32_3 = arith.constant 0 : i32
    return %c0_i32, %c0_i32_0, %c0_i32_1, %c0_i32_2 : i32, i32, i32, i32
  }
  func.func @transform_5(%arg0: i32) -> (i32, i32, i32, i32) {
    %c0_i32 = arith.constant 0 : i32
    %c0_i32_0 = arith.constant 0 : i32
    %c0_i32_1 = arith.constant 0 : i32
    %c0_i32_2 = arith.constant 0 : i32
    %c0_i32_3 = arith.constant 0 : i32
    return %c0_i32, %c0_i32_0, %c0_i32_1, %c0_i32_2 : i32, i32, i32, i32
  }
  func.func @transform_6(%arg0: i32) -> (i32, i32, i32) {
    %c0_i32 = arith.constant 0 : i32
    %c0_i32_0 = arith.constant 0 : i32
    %c0_i32_1 = arith.constant 0 : i32
    %c0_i32_2 = arith.constant 0 : i32
    return %c0_i32, %c0_i32_0, %c0_i32_1 : i32, i32, i32
  }
  func.func @transform_7(%arg0: i32) -> (i32, i32, i32) {
    %c0_i32 = arith.constant 0 : i32
    %c0_i32_0 = arith.constant 0 : i32
    %c0_i32_1 = arith.constant 0 : i32
    %c0_i32_2 = arith.constant 0 : i32
    return %c0_i32, %c0_i32_0, %c0_i32_1 : i32, i32, i32
  }
  func.func @transform_8(%arg0: i32) -> (i32, i32, i32) {
    %c0_i32 = arith.constant 0 : i32
    %c0_i32_0 = arith.constant 0 : i32
    %c0_i32_1 = arith.constant 0 : i32
    %c0_i32_2 = arith.constant 0 : i32
    return %c0_i32, %c0_i32_0, %c0_i32_1 : i32, i32, i32
  }
  func.func @transform_9(%arg0: i32) -> (i32, i32, i32) {
    %c0_i32 = arith.constant 0 : i32
    %c0_i32_0 = arith.constant 0 : i32
    %c0_i32_1 = arith.constant 0 : i32
    %c0_i32_2 = arith.constant 0 : i32
    return %c0_i32, %c0_i32_0, %c0_i32_1 : i32, i32, i32
  }
  func.func @transform_10(%arg0: i32) -> (i32, i32, i32) {
    %c0_i32 = arith.constant 0 : i32
    %c0_i32_0 = arith.constant 0 : i32
    %c0_i32_1 = arith.constant 0 : i32
    %c0_i32_2 = arith.constant 0 : i32
    return %c0_i32, %c0_i32_0, %c0_i32_1 : i32, i32, i32
  }
  func.func @transform_11(%arg0: i32) -> (i32, i32, i32) {
    %c0_i32 = arith.constant 0 : i32
    %c0_i32_0 = arith.constant 0 : i32
    %c0_i32_1 = arith.constant 0 : i32
    %c0_i32_2 = arith.constant 0 : i32
    return %c0_i32, %c0_i32_0, %c0_i32_1 : i32, i32, i32
  }
  func.func @transform_12(%arg0: i32) -> (i32, i32, i32) {
    %c0_i32 = arith.constant 0 : i32
    %c0_i32_0 = arith.constant 0 : i32
    %c0_i32_1 = arith.constant 0 : i32
    %c0_i32_2 = arith.constant 0 : i32
    return %c0_i32, %c0_i32_0, %c0_i32_1 : i32, i32, i32
  }
  func.func @transform_13(%arg0: i32) -> (i32, i32, i32) {
    %c0_i32 = arith.constant 0 : i32
    %c0_i32_0 = arith.constant 0 : i32
    %c0_i32_1 = arith.constant 0 : i32
    return %arg0, %c0_i32, %c0_i32_0 : i32, i32, i32
  }
}

</mosaic_0001>

<bundles_post_ra>
// kernel: transformer_forward.1
= control target key start
LH: loop header
LB: loop body
LE: loop exit
PB: predicated region body
PF: predicated region fallthrough
CT: control target
= control target key end

     0   :  { %s7817_s0 = inlined_call_operand.vmem [shape: f32[2,8,32], index: 0, kind: input, shape index: {}]   ;;  %s7818_s1 = inlined_call_operand.vmem [shape: f32[2,8,32], index: 1, kind: input, shape index: {}]   ;;  %s7819_s2 = inlined_call_operand.vmem [shape: f32[2,1,8], index: 2, kind: input, shape index: {}]   ;;  %s7820_s3 = inlined_call_operand.vmem [shape: bf16[9,4,32,8], index: 3, kind: input, shape index: {}]   ;;  %s7821_s4 = inlined_call_operand.vmem [shape: f32[9,4,1,8], index: 4, kind: input, shape index: {}]   ;;  %s7822_s5 = inlined_call_operand.vmem [shape: bf16[3,4,8,32], index: 5, kind: input, shape index: {}]   ;;  %s7823_s6 = inlined_call_operand.vmem [shape: f32[3,1,32], index: 6, kind: input, shape index: {}]   ;;  %s7824_s7 = inlined_call_operand.vmem [shape: bf16[2,32,64], index: 7, kind: input, shape index: {}]   ;;  %s7825_s8 = inlined_call_operand.vmem [shape: f32[2,1,64], index: 8, kind: input, shape index: {}]   ;;  %s7826_s9 = inlined_call_operand.vmem [shape: bf16[2,64,32], index: 9, kind: input, shape index: {}]   ;;  %s7827_s10 = inlined_call_operand.vmem [shape: f32[2,1,32], index: 10, kind: input, shape index: {}]   ;;  %s7828_s11 = inlined_call_operand.vmem [shape: f32[5,1,32], index: 11, kind: input, shape index: {}]   ;;  %s7829_s12 = inlined_call_operand.vmem [shape: f32[5,1,32], index: 12, kind: input, shape index: {}]   ;;  %s7830_s13 = inlined_call_operand.hbm [shape: f32[2,8,32], index: 13, kind: output, shape index: {}]  }
   0x1   :  { %7832 = sst [smem:[#allocation6_spill]] %s7817_s0 }
   0x2   :  { %7833 = sst [smem:[#allocation7_spill]] %s7818_s1 }
   0x3   :  { %7834 = sst [smem:[#allocation8_spill]] %s7819_s2 }
   0x4   :  { %18 = vsyncpa [#allocation3], 0 }
   0x5   :  { %20 = vsyncpa [#allocation3 + $0x1], 0  ;;  %s6754_s25 = smov 0   ;;  %s6756_s26 = smov 0  }
   0x6   :  { %s6758_s27 = smov 0   ;;  %s6760_s28 = smov 0  }
   0x7 LB: > { %s6775_s29 = sadd.s32 4294967295, %s6679_s28   ;;  %s5276_s30 = sadd.s32 4294967294, %s6679_s28   ;;  %s6679_s28 = sphi %s6760_s28, %s7846_s28   ;;  %s6675_s27 = sphi %s6758_s27, %s7845_s27   ;;  %s6671_s26 = sphi %s6756_s26, %s7844_s26   ;;  %s6667_s25 = sphi %s6754_s25, %s7843_s25  }
   0x8   : > { %s6779_s14 = sadd.s32 1, %s6679_s28   ;;  %s321_s15 = sadd.s32 1, %s6675_s27 }
   0x9   : > { %s318_s16 = ssub.s32 %s6679_s28, %s6779_s14  ;;  %p331_p0 = scmp.ne.s32.totalorder %s6675_s27, %s6671_s26 }
   0xa   : > { %p319_p1 = scmp.eq.s32.totalorder %s318_s16, 0  ;;  %p332_p2 = scmp.eq.s32.totalorder %s6775_s29, 1 }
   0xb   : > { %p337_p3 = scmp.ne.s32.totalorder %s6671_s26, %s6667_s25  ;;  %p338_p4 = scmp.eq.s32.totalorder %s5276_s30, 1 }
   0xc   : > { %s6790_s17 = scalar_select %p319_p1, %s6675_s27, %s321_s15  }
   0xd   : > { %p6792_p5 = por %p332_p2, %p331_p0  ;;  %p6796_p6 = por %p338_p4, %p337_p3 }
   0xe   : > { %7835 = sst [smem:[#allocation5_spill]] %s6790_s17  ;;  %p5279_p7 = scmp.ge.s32.totalorder %s6679_s28, 1 }
   0xf   : > { %p406_p8 = scmp.lt.s32.totalorder %s6679_s28, 3 }
  0x11   : > { %p407_p9 = pnand %p5279_p7, %p406_p8 }
  0x12   : > { %v6474_v0 = vld [vmem:[%s7820_s3] sm:$0xff] (!%p407_p9)   ;;  %v6681_v1 = vmov (!%p407_p9), 0.0   ;;  %v6476_v3 = vld [vmem:[%s7820_s3 + $0x8] sm:$0xff] (!%p407_p9)   ;;  %vm6682_vm0 = vmmov (!%p407_p9), 0   ;;  %p456_p10 = scmp.lt.s32.totalorder (!%p407_p9), %s6775_s29, 1  ;;  %v6478_v5 = vld [vmem:[%s7820_s3 + $0x10] sm:$0xff] (!%p407_p9)  }
  0x13   : > { %410 = sbr.rel (%p407_p9) target bundleno = 5025 (0x13a1), region = 72  ;;  %5889 = vmatprep.subr.bf16.mxu1 (!%p407_p9), %v6681_v1  ;;  %5905 = vmatprep.subr.bf16.mxu0 (!%p407_p9), %v6681_v1  ;;  %v6475_v2 = vld [vmem:[%s7820_s3 + $0x20] sm:$0xff] (!%p407_p9)   ;;  %v6477_v4 = vld [vmem:[%s7820_s3 + $0x28] sm:$0xff] (!%p407_p9)   ;;  %s7838_s0 = sld [smem:[#allocation6_spill]] (!%p407_p9)  ;;  %vm528_vm1 = vcmask (!%p407_p9), 261120   ;;  %v6480_v9 = vld [vmem:[%s7820_s3 + $0x18] sm:$0xff] (!%p407_p9)  }
  0x14   : > { %5890 = vmatpush3.bf16.msra.mxu1 (!%p407_p9), %v6474_v0  ;;  %5893 = vmatprep.mubr.msk.bf16.mxu1 (!%p407_p9), %vm6682_vm0, %v6681_v1  ;;  %v6479_v6 = vld [vmem:[%s7820_s3 + $0x40] sm:$0xff] (!%p407_p9)   ;;  %v6481_v10 = vld [vmem:[%s7820_s3 + $0x48] sm:$0xff] (!%p407_p9)   ;;  %v6482_v11 = vld [vmem:[%s7820_s3 + $0x30] sm:$0xff] (!%p407_p9)   ;;  %vm1248_vm2 = vcmask (!%p407_p9), 64512   ;;  %vm1498_vm3 = vcmask (!%p407_p9), 1043456   ;;  %s7839_s2 = sld [smem:[#allocation8_spill]] (!%p407_p9) }
  0x15   : > { %5906 = vmatpush3.bf16.msra.mxu0 (!%p407_p9), %v6475_v2  ;;  %5891 = vmatprep.subr.bf16.mxu1 (!%p407_p9), %v6681_v1  ;;  %v6483_v12 = vld [vmem:[%s7820_s3 + $0x60] sm:$0xff] (!%p407_p9)   ;;  %v6484_v13 = vld [vmem:[%s7820_s3 + $0x38] sm:$0xff] (!%p407_p9)   ;;  %v6485_v14 = vld [vmem:[%s7820_s3 + $0x68] sm:$0xff] (!%p407_p9)   ;;  %s7841_s1 = sld [smem:[#allocation7_spill]] (!%p407_p9)  ;;  %vm2028_vm4 = vcmask (!%p407_p9), 523264   ;;  %s453_s16 = sand.u32 (!%p407_p9), 1, %s6671_s26  }
  0x16   : > { %5907 = vmatprep.subr.bf16.mxu0 (!%p407_p9), %v6681_v1  ;;  %5909 = vmatprep.mubr.msk.bf16.mxu0 (!%p407_p9), %vm6682_vm0, %v6681_v1  ;;  %v6486_v15 = vld [vmem:[%s7820_s3 + $0x50] sm:$0xff] (!%p407_p9)   ;;  %v6490_v16 = vld [vmem:[%s7820_s3 + $0x80] sm:$0xff] (!%p407_p9)   ;;  %v6487_v17 = vld [vmem:[%s7820_s3 + $0x58] sm:$0xff] (!%p407_p9)   ;;  %s5183_s23 = scalar_lea.sflag (!%p407_p9), [#allocation3], %s453_s16 }
  0x17   : > { %v6491_v18 = vld [vmem:[%s7820_s3 + $0x88] sm:$0xff] (!%p407_p9)   ;;  %v6488_v19 = vld [vmem:[%s7820_s3 + $0x70] sm:$0xff] (!%p407_p9)   ;;  %v6489_v20 = vld [vmem:[%s7820_s3 + $0x78] sm:$0xff] (!%p407_p9)  }
  0x18   : > { %5892 = vmatpush3.bf16.msra.mxu1 (!%p407_p9), %v6476_v3  ;;  %v6492_v21 = vld [vmem:[%s7820_s3 + $0xa0] sm:$0xff] (!%p407_p9)   ;;  %v6493_v22 = vld [vmem:[%s7820_s3 + $0xa8] sm:$0xff] (!%p407_p9)   ;;  %v6494_v23 = vld [vmem:[%s7820_s3 + $0x90] sm:$0xff] (!%p407_p9)  }
  0x19   : > { %5908 = vmatpush3.bf16.msra.mxu0 (!%p407_p9), %v6477_v4  ;;  %5897 = vmatprep.subr.bf16.mxu1 (!%p407_p9), %v6681_v1  ;;  %v6495_v24 = vld [vmem:[%s7820_s3 + $0x98] sm:$0xff] (!%p407_p9)   ;;  %v6496_v25 = vld [vmem:[%s7820_s3 + $0xb0] sm:$0xff] (!%p407_p9)   ;;  %v5319_v35 = vld [vmem:[%s7821_s4 + $0x4] ss:$0 sm:$0xff] (!%p407_p9) }
  0x1a   : > { %s6824_s20 = scalar_select %p456_p10, %s6775_s29, 1  ;;  %5921 = vmatprep.subr.bf16.mxu0 %v6681_v1  ;;  %v6497_v26 = vld [vmem:[%s7820_s3 + $0xb8] sm:$0xff]   ;;  %v5283_v46 = vld [vmem:[%s7821_s4] ss:$0 sm:$0xff]  ;;  %v5321_v48 = vld [vmem:[%s7821_s4 + $0x6] ss:$0 sm:$0xff] }
  0x1b   : > { %v5285_v61 = vld [vmem:[%s7821_s4 + $0x2] ss:$0 sm:$0xff]  ;;  %v5320_v63 = vld [vmem:[%s7821_s4 + $0x5] ss:$0 sm:$0xff]  ;;  %v5355_v3 = vld [vmem:[%s7821_s4 + $0x8] ss:$0 sm:$0xff] }
  0x1c   : > { %s7831_s21 = sshll.u32 %s6824_s20, 3  ;;  %s466_s17 = scalar_lea.vmem %s7839_s2, %s6824_s20 }
  0x1d   : > { %s6835_s15 = scalar_lea.vmem %s7838_s0, %s7831_s21  ;;  %s7840_s21 = sshll.u32 %s6824_s20, 3 }
  0x1e   : > { %v468_v7 = vld [vmem:[%s6835_s15] sm:$0xff]  ;;  %s463_s22 = scalar_lea.vmem %s7841_s1, %s7840_s21  ;;  %s5690_s0 = sshll.u32 %s6775_s29, 7 }
  0x1f   : > { %v6843_v8 = vpack.c.bf16 %v468_v7, %v468_v7  ;;  %s7774_s2 = scalar_lea.hbm %s7830_s13, %s5690_s0  ;;  %s6683_s29 = smov [#allocation2]  }
  0x21   : > { %5894 = vmatmul.mubr.msk.bf16.vlgmr.msra.gmra.mrb[0].mxu1 %vm528_vm1, %v6843_v8  ;;  %5910 = vmatmul.mubr.msk.bf16.vlgmr.msra.gmra.mrb[0].mxu0 %vm528_vm1, %v6843_v8 }
  0x22   : > { %5898 = vmatpush3.bf16.msra.mxu1 %v6478_v5  ;;  %5922 = vmatpush3.bf16.msra.mxu0 %v6479_v6 }
  0x23   : > { %5899 = vmatprep.subr.bf16.mxu1 %v6681_v1  ;;  %5923 = vmatprep.subr.bf16.mxu0 %v6681_v1 }
  0x24   : > { %5901 = vmatprep.mubr.msk.bf16.mxu1 %vm6682_vm0, %v6681_v1  ;;  %5925 = vmatprep.mubr.msk.bf16.mxu0 %vm6682_vm0, %v6681_v1 }
  0x26   : > { %5900 = vmatpush3.bf16.msra.mxu1 %v6480_v9  ;;  %5924 = vmatpush3.bf16.msra.mxu0 %v6481_v10 }
  0x27   : > { %5913 = vmatprep.subr.bf16.mxu1 %v6681_v1  ;;  %5937 = vmatprep.subr.bf16.mxu0 %v6681_v1 }
  0x29   : > { %5902 = vmatmul.mubr.msk.bf16.vlgmr.msra.gmra.mrb[4].mxu1 %vm528_vm1, %v6843_v8  ;;  %5926 = vmatmul.mubr.msk.bf16.vlgmr.msra.gmra.mrb[4].mxu0 %vm528_vm1, %v6843_v8 }
  0x2a   : > { %5914 = vmatpush3.bf16.msra.mxu1 %v6482_v11  ;;  %5938 = vmatpush3.bf16.msra.mxu0 %v6483_v12 }
  0x2b   : > { %5915 = vmatprep.subr.bf16.mxu1 %v6681_v1  ;;  %5939 = vmatprep.subr.bf16.mxu0 %v6681_v1 }
  0x2c   : > { %5917 = vmatprep.mubr.msk.bf16.mxu1 %vm6682_vm0, %v6681_v1  ;;  %5941 = vmatprep.mubr.msk.bf16.mxu0 %vm6682_vm0, %v6681_v1 }
  0x2e   : > { %5916 = vmatpush3.bf16.msra.mxu1 %v6484_v13  ;;  %5940 = vmatpush3.bf16.msra.mxu0 %v6485_v14  ;;  %v5284_v13 = vld [vmem:[%s7821_s4 + $0x1] ss:$0 sm:$0xff] }
  0x2f   : > { %5929 = vmatprep.subr.bf16.mxu1 %v6681_v1  ;;  %5953 = vmatprep.subr.bf16.mxu0 %v6681_v1 }
  0x31   : > { %5918 = vmatmul.mubr.msk.bf16.vlgmr.msra.gmra.mrb[8].mxu1 %vm528_vm1, %v6843_v8  ;;  %5942 = vmatmul.mubr.msk.bf16.vlgmr.msra.gmra.mrb[8].mxu0 %vm528_vm1, %v6843_v8 }
  0x32   : > { %5930 = vmatpush3.bf16.msra.mxu1 %v6486_v15  ;;  %5933 = vmatprep.mubr.msk.bf16.mxu1 %vm6682_vm0, %v6681_v1 }
  0x33   : > { %5931 = vmatprep.subr.bf16.mxu1 %v6681_v1  ;;  %5954 = vmatpush3.bf16.msra.mxu0 %v6490_v16 }
  0x34   : > { %5955 = vmatprep.subr.bf16.mxu0 %v6681_v1  ;;  %5957 = vmatprep.mubr.msk.bf16.mxu0 %vm6682_vm0, %v6681_v1 }
  0x36   : > { %5932 = vmatpush3.bf16.msra.mxu1 %v6487_v17 }
  0x37   : > { %5945 = vmatprep.subr.bf16.mxu1 %v6681_v1  ;;  %5956 = vmatpush3.bf16.msra.mxu0 %v6491_v18  ;;  %v5322_v18 = vld [vmem:[%s7821_s4 + $0x7] ss:$0 sm:$0xff] }
  0x38   : > { %5969 = vmatprep.subr.bf16.mxu0 %v6681_v1 }
  0x39   : > { %5934 = vmatmul.mubr.msk.bf16.vlgmr.msra.gmra.mrb[12].mxu1 %vm528_vm1, %v6843_v8 }
  0x3a   : > { %5946 = vmatpush3.bf16.msra.mxu1 %v6488_v19  ;;  %5949 = vmatprep.mubr.msk.bf16.mxu1 %vm6682_vm0, %v6681_v1 }
  0x3b   : > { %5947 = vmatprep.subr.bf16.mxu1 %v6681_v1  ;;  %5958 = vmatmul.mubr.msk.bf16.vlgmr.msra.gmra.mrb[12].mxu0 %vm528_vm1, %v6843_v8 }
  0x3c   : > { %5973 = vmatprep.mubr.msk.bf16.mxu0 %vm6682_vm0, %v6681_v1  ;;  %5970 = vmatpush3.bf16.msra.mxu0 %v6492_v21 }
  0x3d   : > { %5971 = vmatprep.subr.bf16.mxu0 %v6681_v1 }
  0x3e   : > { %5948 = vmatpush3.bf16.msra.mxu1 %v6489_v20 }
  0x3f   : > { %5961 = vmatprep.subr.bf16.mxu1 %v6681_v1 }
  0x40   : > { %5972 = vmatpush3.bf16.msra.mxu0 %v6493_v22 }
  0x41   : > { %5950 = vmatmul.mubr.msk.bf16.vlgmr.msra.gmra.mrb[16].mxu1 %vm528_vm1, %v6843_v8  ;;  %5985 = vmatprep.subr.bf16.mxu0 %v6681_v1 }
  0x42   : > { %5965 = vmatprep.mubr.msk.bf16.mxu1 %vm6682_vm0, %v6681_v1  ;;  %5962 = vmatpush3.bf16.msra.mxu1 %v6494_v23 }
  0x43   : > { %5963 = vmatprep.subr.bf16.mxu1 %v6681_v1  ;;  %5974 = vmatmul.mubr.msk.bf16.vlgmr.msra.gmra.mrb[16].mxu0 %vm528_vm1, %v6843_v8 }
  0x44   : > { %5987 = vmatprep.mubr.msk.bf16.mxu0 %vm6682_vm0, %v6681_v1 }
  0x46   : > { %5964 = vmatpush3.bf16.msra.mxu1 %v6495_v24 }
  0x47   : > { %5977 = vmatprep.subr.bf16.mxu1 %v6681_v1 }
  0x49   : > { %5966 = vmatmul.mubr.msk.bf16.vlgmr.msra.gmra.mrb[20].mxu1 %vm528_vm1, %v6843_v8 }
  0x4a   : > { %5981 = vmatprep.mubr.msk.bf16.mxu1 %vm6682_vm0, %v6681_v1  ;;  %5978 = vmatpush3.bf16.msra.mxu1 %v6496_v25 }
  0x4b   : > { %5979 = vmatprep.subr.bf16.mxu1 %v6681_v1 }
  0x4e   : > { %5980 = vmatpush3.bf16.msra.mxu1 %v6497_v26 }
  0x4f   : > { %5991 = vmatprep.subr.bf16.mxu1 %v6681_v1 }
  0x51   : > { %5982 = vmatmul.mubr.msk.bf16.vlgmr.msra.gmra.mrb[24].mxu1 %vm528_vm1, %v6843_v8 }
  0x52   : > { %5993 = vmatprep.mubr.msk.bf16.mxu1 %vm6682_vm0, %v6681_v1 }
  0xf4   : > { %v566_v27 = vpop.f32.mrb[0].mxu1  ;;  %v670_v28 = vpop.f32.mrb[0].mxu0 }
  0xf5   : > { %v5895_v29 = vpop.f32.mrb[1].mxu1  ;;  %v5911_v30 = vpop.f32.mrb[1].mxu0  ;;  %v567_v49 = vadd.f32 %v5283_v46, %v566_v27  ;;  %v671_v0 = vadd.f32 %v5285_v61, %v670_v28  ;;  %v5286_v28 = vld [vmem:[%s7821_s4 + $0x3] ss:$0 sm:$0xff] }
  0xf6   : > { %v569_v31 = vpop.f32.mrb[2].mxu1  ;;  %v673_v32 = vpop.f32.mrb[2].mxu0 }
  0xf7   : > { %v5896_v33 = vpop.f32.mrb[3].mxu1  ;;  %v5912_v34 = vpop.f32.mrb[3].mxu0  ;;  %v728_v57 = vpack.c.bf16 %v567_v49, %v567_v49  ;;  %v730_v8 = vpack.c.bf16 %v671_v0, %v671_v0  ;;  %v5375_v49 = vld [vmem:[%s466_s17] ss:$0 sm:$0xff] }
  0xfc   : > { %v618_v36 = vpop.f32.mrb[4].mxu1  ;;  %v824_v37 = vpop.f32.mrb[4].mxu0 }
  0xfd   : > { %v825_v38 = vadd.f32 %v5319_v35, %v824_v37  ;;  %v5903_v39 = vpop.f32.mrb[5].mxu1  ;;  %v5927_v40 = vpop.f32.mrb[5].mxu0  ;;  %v619_v19 = vadd.f32 %v5284_v13, %v618_v36  ;;  %v5356_v36 = vld [vmem:[%s7821_s4 + $0x9] ss:$0 sm:$0xff] }
  0xfe   : > { %v621_v41 = vpop.f32.mrb[6].mxu1  ;;  %v827_v42 = vpop.f32.mrb[6].mxu0 }
  0xff   : > { %v986_v43 = vpack.c.bf16 %v825_v38, %v825_v38  ;;  %v5904_v44 = vpop.f32.mrb[7].mxu1  ;;  %v5928_v45 = vpop.f32.mrb[7].mxu0  ;;  %v729_v25 = vpack.c.bf16 %v619_v19, %v619_v19 }
 0x101   : > { %v1253_v47 = vsel %vm1248_vm2, %v986_v43, 0 }
 0x102   : > { %5986 = vmatpush3.bf16.xpose.msra.mxu0 %v1253_v47 }
 0x103   : > { %5997 = vmatprep.subr.bf16.mxu0 %v6681_v1 }
 0x104   : > { %v722_v50 = vpop.f32.mrb[8].mxu1  ;;  %v928_v51 = vpop.f32.mrb[8].mxu0 }
 0x105   : > { %v929_v52 = vadd.f32 %v5321_v48, %v928_v51  ;;  %v5919_v53 = vpop.f32.mrb[9].mxu1  ;;  %v5943_v54 = vpop.f32.mrb[9].mxu0  ;;  %v723_v30 = vadd.f32 %v5286_v28, %v722_v50 }
 0x106   : > { %v725_v55 = vpop.f32.mrb[10].mxu1  ;;  %v931_v56 = vpop.f32.mrb[10].mxu0 }
 0x107   : > { %v988_v58 = vpack.c.bf16 %v929_v52, %v929_v52  ;;  %v5920_v59 = vpop.f32.mrb[11].mxu1  ;;  %v5944_v60 = vpop.f32.mrb[11].mxu0  ;;  %v731_v31 = vpack.c.bf16 %v723_v30, %v723_v30 }
 0x109   : > { %v1345_v62 = vsel %vm1248_vm2, %v988_v58, 0  ;;  %5988 = vmatmul.mubr.msk.bf16.vlgmr.msra.gmra.mrb[20].mxu0 %vm1248_vm2, %v728_v57 }
 0x10a   : > { %5998 = vmatpush3.bf16.xpose.msra.mxu0 %v1345_v62  ;;  %5999 = vmatprep.mubr.msk.bf16.mxu0 %vm6682_vm0, %v6681_v1 }
 0x10b   : > { %6009 = vmatprep.subr.bf16.mxu0 %v6681_v1 }
 0x10c   : > { %v876_v2 = vpop.f32.mrb[12].mxu1 }
 0x10d   : > { %v877_v4 = vadd.f32 %v5320_v63, %v876_v2  ;;  %v5935_v5 = vpop.f32.mrb[13].mxu1 }
 0x10e   : > { %v879_v6 = vpop.f32.mrb[14].mxu1  ;;  %v1082_v7 = vpop.f32.mrb[12].mxu0 }
 0x10f   : > { %v987_v9 = vpack.c.bf16 %v877_v4, %v877_v4  ;;  %v5936_v10 = vpop.f32.mrb[15].mxu1  ;;  %v1083_v11 = vadd.f32 %v5355_v3, %v1082_v7  ;;  %v5959_v12 = vpop.f32.mrb[13].mxu0 }
 0x110   : > { %v1085_v14 = vpop.f32.mrb[14].mxu0 }
 0x111   : > { %v1299_v15 = vsel %vm1248_vm2, %v987_v9, 0  ;;  %6000 = vmatmul.mubr.msk.bf16.vlgmr.msra.gmra.mrb[24].mxu0 %vm1248_vm2, %v730_v8  ;;  %v1244_v16 = vpack.c.bf16 %v1083_v11, %v1083_v11  ;;  %v5960_v17 = vpop.f32.mrb[15].mxu0 }
 0x112   : > { %5992 = vmatpush3.bf16.xpose.msra.mxu1 %v1299_v15  ;;  %6011 = vmatprep.mubr.msk.bf16.mxu0 %vm6682_vm0, %v6681_v1 }
 0x113   : > { %6003 = vmatprep.subr.bf16.mxu1 %v6681_v1  ;;  %v1500_v20 = vsel %vm1498_vm3, %v1244_v16, 0 }
 0x114   : > { %v980_v21 = vpop.f32.mrb[16].mxu1  ;;  %6010 = vmatpush3.bf16.msra.mxu0 %v1500_v20 }
 0x115   : > { %v981_v22 = vadd.f32 %v5322_v18, %v980_v21  ;;  %v5951_v23 = vpop.f32.mrb[17].mxu1  ;;  %6021 = vmatprep.subr.bf16.mxu0 %v6681_v1 }
 0x116   : > { %v983_v24 = vpop.f32.mrb[18].mxu1  ;;  %v7016_v32 = vpop.f32.mrb[16].mxu0 }
 0x117   : > { %v989_v26 = vpack.c.bf16 %v981_v22, %v981_v22  ;;  %v5952_v27 = vpop.f32.mrb[19].mxu1  ;;  %v5975_v33 = vpop.f32.mrb[17].mxu0 }
 0x118   : > { %v1189_v34 = vpop.f32.mrb[18].mxu0 }
 0x119   : > { %v1391_v29 = vsel %vm1248_vm2, %v989_v26, 0  ;;  %5994 = vmatmul.mubr.msk.bf16.vlgmr.msra.gmra.mrb[28].mxu1 %vm1248_vm2, %v729_v25  ;;  %v5976_v35 = vpop.f32.mrb[19].mxu0 }
 0x11a   : > { %6004 = vmatpush3.bf16.xpose.msra.mxu1 %v1391_v29  ;;  %6005 = vmatprep.mubr.msk.bf16.mxu1 %vm6682_vm0, %v6681_v1 }
 0x11b   : > { %6015 = vmatprep.subr.bf16.mxu1 %v6681_v1 }
 0x11c   : > { %v1134_v37 = vpop.f32.mrb[20].mxu1 }
 0x11d   : > { %v1135_v38 = vadd.f32 %v5356_v36, %v1134_v37  ;;  %v5967_v39 = vpop.f32.mrb[21].mxu1  ;;  %v5357_v36 = vld [vmem:[%s7821_s4 + $0xa] ss:$0 sm:$0xff] }
 0x11e   : > { %v1137_v40 = vpop.f32.mrb[22].mxu1  ;;  %v1187_v37 = vadd.f32 %v5357_v36, %v7016_v32 }
 0x11f   : > { %v1245_v41 = vpack.c.bf16 %v1135_v38, %v1135_v38  ;;  %v5968_v42 = vpop.f32.mrb[23].mxu1 }
 0x120   : > { %v1246_v40 = vpack.c.bf16 %v1187_v37, %v1187_v37 }
 0x121   : > { %6006 = vmatmul.mubr.msk.bf16.vlgmr.msra.gmra.mrb[32].mxu1 %vm1248_vm2, %v731_v31  ;;  %v1546_v43 = vsel %vm1498_vm3, %v1245_v41, 0 }
 0x122   : > { %6017 = vmatprep.mubr.msk.bf16.mxu1 %vm6682_vm0, %v6681_v1  ;;  %6016 = vmatpush3.bf16.msra.mxu1 %v1546_v43  ;;  %v1592_v43 = vsel %vm1498_vm3, %v1246_v40, 0 }
 0x123   : > { %6027 = vmatprep.subr.bf16.mxu1 %v6681_v1 }
 0x124   : > { %v7023_v44 = vpop.f32.mrb[24].mxu1 }
 0x125   : > { %v5983_v45 = vpop.f32.mrb[25].mxu1 }
 0x126   : > { %v1241_v46 = vpop.f32.mrb[26].mxu1 }
 0x127   : > { %v5984_v47 = vpop.f32.mrb[27].mxu1 }
 0x128   : > { %v5358_v47 = vld [vmem:[%s7821_s4 + $0xb] ss:$0 sm:$0xff] }
 0x1dc   : > { %v1289_v48 = vpop.f32.mrb[20].mxu0 }
 0x1dd   : > { %v1433_v50 = vmul.f32 0.35355338, %v1289_v48  ;;  %v5989_v51 = vpop.f32.mrb[21].mxu0 }
 0x1de   : > { %v1292_v52 = vpop.f32.mrb[22].mxu0 }
 0x1df   : > { %v5990_v53 = vpop.f32.mrb[23].mxu0  ;;  %v1443_v54 = vadd.f32 %v5375_v49, %v1433_v50 }
 0x1e1   : > { %v1447_v55 = vsel %vm1248_vm2, %v1443_v54, -inf }
 0x1e2   : > { %1448 = vmax.xlane.f32.xlu0 %v1447_v55 }
 0x1e4   : > { %v1381_v56 = vpop.f32.mrb[24].mxu0 }
 0x1e5   : > { %v1435_v57 = vmul.f32 0.35355338, %v1381_v56  ;;  %v6001_v58 = vpop.f32.mrb[25].mxu0 }
 0x1e6   : > { %v1384_v59 = vpop.f32.mrb[26].mxu0  ;;  %v1684_v58 = vld [vmem:[%s7822_s5] sm:$0xf] }
 0x1e7   : > { %v6002_v60 = vpop.f32.mrb[27].mxu0  ;;  %v1445_v61 = vadd.f32 %v5375_v49, %v1435_v57  ;;  %v1692_v59 = vsel %vm1498_vm3, %v1684_v58, 0 }
 0x1e8   : > { %v1685_v60 = vld [vmem:[%s7822_s5 + $0x4] sm:$0xf] }
 0x1e9   : > { %v1453_v62 = vsel %vm1248_vm2, %v1445_v61, -inf }
 0x1ea   : > { %1454 = vmax.xlane.f32.xlu1 %v1453_v62  ;;  %v1686_v62 = vld [vmem:[%s7822_s5 + $0x8] sm:$0xf] }
 0x1ec   : > { %v1335_v63 = vpop.f32.mrb[28].mxu1 }
 0x1ed   : > { %v1434_v0 = vmul.f32 0.35355338, %v1335_v63  ;;  %v5995_v2 = vpop.f32.mrb[29].mxu1 }
 0x1ee   : > { %v1338_v3 = vpop.f32.mrb[30].mxu1 }
 0x1ef   : > { %v5996_v4 = vpop.f32.mrb[31].mxu1  ;;  %v1444_v5 = vadd.f32 %v5375_v49, %v1434_v0  ;;  %v1784_v3 = vsel %vm1498_vm3, %v1686_v62, 0 }
 0x1f1   : > { %v1450_v6 = vsel %vm1248_vm2, %v1444_v5, -inf }
 0x1f2   : > { %1451 = vmax.xlane.f32.xlu0 %v1450_v6 }
 0x1f4   : > { %v1427_v7 = vpop.f32.mrb[32].mxu1 }
 0x1f5   : > { %v1436_v8 = vmul.f32 0.35355338, %v1427_v7  ;;  %v6007_v9 = vpop.f32.mrb[33].mxu1 }
 0x1f6   : > { %v1430_v10 = vpop.f32.mrb[34].mxu1 }
 0x1f7   : > { %v6008_v11 = vpop.f32.mrb[35].mxu1  ;;  %v1446_v12 = vadd.f32 %v5375_v49, %v1436_v8  ;;  %v1239_v49 = vadd.f32 %v5358_v47, %v7023_v44 }
 0x1f8   : > { %v1687_v11 = vld [vmem:[%s7822_s5 + $0xc] sm:$0xf] }
 0x1f9   : > { %v1456_v13 = vsel %vm1248_vm2, %v1446_v12, -inf  ;;  %v1247_v52 = vpack.c.bf16 %v1239_v49, %v1239_v49  ;;  %v6616_v49 = vld [vmem:[%s6835_s15] sm:$0xff] }
 0x1fa   : > { %1457 = vmax.xlane.f32.xlu1 %v1456_v13 }
 0x1fb   : > { %v1638_v55 = vsel %vm1498_vm3, %v1247_v52, 0 }
 0x26f   : > { %v1449_v14 = vpop.xlane.xlu0 %1448 }
 0x270   : > { %v1459_v15 = vsub.f32 %v1443_v54, %v1449_v14 }
 0x272   : > { %v1463_v16 = vmul.f32 1.442695, %v1459_v15  ;;  %v1830_v15 = vsel %vm1498_vm3, %v1687_v11, 0  ;;  %v7143_v11 = vld [vmem:[%s463_s22] sm:$0xff]  ;;  %s5280_s22 = sshll.u32 %s453_s16, 3 }
 0x273   : > { %s455_s15 = scalar_lea.vmem [#allocation2], %s5280_s22  ;;  %s6621_s22 = sshll.u32 %s6683_s29, 4  ;;  %s6622_s22 = int_to_ptr.vmem [resolvable:$false] %s6621_s22 }
 0x274   : > { %6558 = vpow2.f32 %v1463_v16  ;;  %s5196_s21 = sshll.u32 %s455_s15, 4  ;;  %s6623_s20 = scalar_lea.vmem %s6622_s22, 256  ;;  %s7776_s21 = int_to_ptr.vmem [resolvable:$true] %s5196_s21 }
 0x275   : > { %s6617_s17 = scalar_lea.vmem %s7776_s21, 128  ;;  %p6624_p0 = scmp.lt.s32.totalorder %s7776_s21, %s6622_s22 }
 0x276   : > { %p6618_p11 = scmp.ne.s32.totalorder %s7776_s21, %s6617_s17  ;;  %p6625_p1 = scmp.lt.s32.totalorder %s6623_s20, %s6617_s17 }
 0x277   : > { %v1455_v17 = vpop.xlane.xlu1 %1454 }
 0x278   : > { %v1461_v18 = vsub.f32 %v1445_v61, %v1455_v17  ;;  %v1738_v61 = vsel %vm1498_vm3, %v1685_v60, 0  ;;  %p6619_p12 = pnand %p6618_p11, %p6792_p5  ;;  %p6626_p2 = por %p6625_p1, %p6624_p0 }
 0x27a   : > { %v1467_v19 = vmul.f32 1.442695, %v1461_v18  ;;  %p6620_p13 = pneg %p6619_p12 }
 0x27c   : > { %6560 = vpow2.f32 %v1467_v19  ;;  %p6627_p3 = pnand %p6626_p2, %p6620_p13 }
 0x27e   : > { %v6559_v20 = vpop.eup %6558 }
 0x27f   : > { %v1452_v21 = vpop.xlane.xlu0 %1451  ;;  %v1471_v22 = vsel %vm1248_vm2, %v6559_v20, 0.0 }
 0x280   : > { %v1460_v23 = vsub.f32 %v1444_v5, %v1452_v21  ;;  %1472 = vadd.xlane.f32.xlu0 %v1471_v22 }
 0x282   : > { %v1465_v24 = vmul.f32 1.442695, %v1460_v23 }
 0x284   : > { %6562 = vpow2.f32 %v1465_v24 }
 0x286   : > { %v6561_v25 = vpop.eup %6560 }
 0x287   : > { %v1458_v26 = vpop.xlane.xlu1 %1457  ;;  %v1477_v27 = vsel %vm1248_vm2, %v6561_v25, 0.0 }
 0x288   : > { %v1462_v28 = vsub.f32 %v1446_v12, %v1458_v26  ;;  %1478 = vadd.xlane.f32.xlu0 %v1477_v27 }
 0x28a   : > { %v1469_v29 = vmul.f32 1.442695, %v1462_v28 }
 0x28c   : > { %6564 = vpow2.f32 %v1469_v29 }
 0x28e   : > { %v6563_v30 = vpop.eup %6562 }
 0x28f   : > { %v1474_v31 = vsel %vm1248_vm2, %v6563_v30, 0.0 }
 0x290   : > { %1475 = vadd.xlane.f32.xlu1 %v1474_v31 }
 0x296   : > { %v6565_v33 = vpop.eup %6564 }
 0x297   : > { %v1480_v34 = vsel %vm1248_vm2, %v6565_v33, 0.0 }
 0x298   : > { %1481 = vadd.xlane.f32.xlu1 %v1480_v34 }
 0x30d   : > { %v1473_v35 = vpop.xlane.xlu0 %1472 }
 0x30e   : > { %6566 = vrcp.f32 %v1473_v35 }
 0x315   : > { %v1479_v38 = vpop.xlane.xlu0 %1478 }
 0x316   : > { %6568 = vrcp.f32 %v1479_v38 }
 0x318   : > { %v6567_v39 = vpop.eup %6566 }
 0x319   : > { %v1487_v41 = vmul.f32 %v6567_v39, %v6559_v20 }
 0x31b   : > { %v1491_v42 = vpack.c.bf16 %v1487_v41, %v1487_v41 }
 0x31d   : > { %6012 = vmatmul.mubr.msk.bf16.vlgmr.msra.gmra.mrb[28].mxu0 %vm1248_vm2, %v1491_v42  ;;  %v1476_v45 = vpop.xlane.xlu1 %1475 }
 0x31e   : > { %6022 = vmatpush3.bf16.msra.mxu0 %v1592_v43  ;;  %6570 = vrcp.f32 %v1476_v45  ;;  %6023 = vmatprep.mubr.msk.bf16.mxu0 %vm6682_vm0, %v6681_v1  ;;  %v5384_v43 = vld [vmem:[%s7823_s6] ss:$0 sm:$0xff] }
 0x31f   : > { %6033 = vmatprep.subr.bf16.mxu0 %v6681_v1 }
 0x320   : > { %v6569_v46 = vpop.eup %6568 }
 0x321   : > { %v1489_v32 = vmul.f32 %v6569_v46, %v6561_v25 }
 0x323   : > { %v1493_v48 = vpack.c.bf16 %v1489_v32, %v1489_v32 }
 0x325   : > { %6024 = vmatmul.mubr.msk.bf16.vlgmr.msra.gmra.mrb[32].mxu0 %vm1248_vm2, %v1493_v48  ;;  %v1482_v50 = vpop.xlane.xlu1 %1481 }
 0x326   : > { %6572 = vrcp.f32 %v1482_v50  ;;  %6035 = vmatprep.mubr.msk.bf16.mxu0 %vm6682_vm0, %v6681_v1  ;;  %6034 = vmatpush3.bf16.msra.mxu0 %v1692_v59 }
 0x327   : > { %6045 = vmatprep.subr.bf16.mxu0 %v6681_v1 }
 0x328   : > { %v6571_v51 = vpop.eup %6570 }
 0x329   : > { %v1488_v53 = vmul.f32 %v6571_v51, %v6563_v30 }
 0x32b   : > { %v1492_v54 = vpack.c.bf16 %v1488_v53, %v1488_v53 }
 0x32d   : > { %6018 = vmatmul.mubr.msk.bf16.vlgmr.msra.gmra.mrb[36].mxu1 %vm1248_vm2, %v1492_v54  ;;  %v6498_v54 = vld [vmem:[%s7824_s7] sm:$0xff]  }
 0x32e   : > { %6028 = vmatpush3.bf16.msra.mxu1 %v1638_v55  ;;  %6029 = vmatprep.mubr.msk.bf16.mxu1 %vm6682_vm0, %v6681_v1  ;;  %v6499_v55 = vld [vmem:[%s7824_s7 + $0x8] sm:$0xff]  }
 0x32f   : > { %6039 = vmatprep.subr.bf16.mxu1 %v6681_v1 }
 0x330   : > { %v6573_v44 = vpop.eup %6572 }
 0x331   : > { %v1490_v56 = vmul.f32 %v6573_v44, %v6565_v33  ;;  %v6510_v44 = vld [vmem:[%s7826_s9] sm:$0xff]  }
 0x333   : > { %v1494_v57 = vpack.c.bf16 %v1490_v56, %v1490_v56  ;;  %v6511_v56 = vld [vmem:[%s7826_s9 + $0x8] sm:$0xff]  }
 0x335   : > { %6030 = vmatmul.mubr.msk.bf16.vlgmr.msra.gmra.mrb[40].mxu1 %vm1248_vm2, %v1494_v57 }
 0x336   : > { %6041 = vmatprep.mubr.msk.bf16.mxu1 %vm6682_vm0, %v6681_v1  ;;  %6040 = vmatpush3.bf16.msra.mxu1 %v1738_v61 }
 0x337   : > { %6051 = vmatprep.subr.bf16.mxu1 %v6681_v1 }
 0x3f0   : > { %v1536_v63 = vpop.f32.mrb[28].mxu0 }
 0x3f1   : > { %v1680_v0 = vpack.c.bf16 %v1536_v63, %v1536_v63  ;;  %v6013_v2 = vpop.f32.mrb[29].mxu0 }
 0x3f2   : > { %v1539_v4 = vpop.f32.mrb[30].mxu0 }
 0x3f3   : > { %v6014_v5 = vpop.f32.mrb[31].mxu0  ;;  %6036 = vmatmul.mubr.msk.bf16.vlgmr.msra.gmra.mrb[36].mxu0 %vm1248_vm2, %v1680_v0 }
 0x3f4   : > { %6046 = vmatpush3.bf16.msra.mxu0 %v1784_v3  ;;  %6047 = vmatprep.mubr.msk.bf16.mxu0 %vm6682_vm0, %v6681_v1  ;;  %v5385_v3 = vld [vmem:[%s7828_s11] ss:$0 sm:$0xff] }
 0x3f5   : > { %6057 = vmatprep.subr.bf16.mxu0 %v6681_v1  ;;  %v5386_v5 = vld [vmem:[%s7829_s12] ss:$0 sm:$0xff] }
 0x3f8   : > { %v1628_v6 = vpop.f32.mrb[32].mxu0 }
 0x3f9   : > { %v1682_v7 = vpack.c.bf16 %v1628_v6, %v1628_v6  ;;  %v6025_v8 = vpop.f32.mrb[33].mxu0 }
 0x3fa   : > { %v1631_v9 = vpop.f32.mrb[34].mxu0  ;;  %v6500_v8 = vld [vmem:[%s7820_s3 + $0xc0] sm:$0xff]  }
 0x3fb   : > { %v6026_v10 = vpop.f32.mrb[35].mxu0  ;;  %6048 = vmatmul.mubr.msk.bf16.vlgmr.msra.gmra.mrb[40].mxu0 %vm1248_vm2, %v1682_v7 }
 0x3fc   : > { %6061 = vmatprep.mubr.msk.bf16.mxu0 %vm6682_vm0, %v6681_v1  ;;  %6058 = vmatpush3.bf16.msra.mxu0 %v6498_v54  ;;  %v6501_v10 = vld [vmem:[%s7820_s3 + $0xc8] sm:$0xff]   ;;  %v6524_v54 = vld [vmem:[%s7820_s3 + $0x140] sm:$0xff]  }
 0x3fd   : > { %6059 = vmatprep.subr.bf16.mxu0 %v6681_v1 }
 0x400   : > { %v1582_v12 = vpop.f32.mrb[36].mxu1  ;;  %6060 = vmatpush3.bf16.msra.mxu0 %v6499_v55  ;;  %v5458_v55 = vld [vmem:[%s7821_s4 + $0x11] ss:$0 sm:$0xff] }
 0x401   : > { %v1681_v13 = vpack.c.bf16 %v1582_v12, %v1582_v12  ;;  %v6019_v14 = vpop.f32.mrb[37].mxu1  ;;  %6077 = vmatprep.subr.bf16.mxu0 %v6681_v1  ;;  %v7148_v12 = vpack.c.bf16 %v7143_v11, %v7143_v11 }
 0x402   : > { %v1585_v16 = vpop.f32.mrb[38].mxu1  ;;  %v6503_v14 = vld [vmem:[%s7820_s3 + $0xd8] sm:$0xff]  }
 0x403   : > { %v6020_v17 = vpop.f32.mrb[39].mxu1  ;;  %6042 = vmatmul.mubr.msk.bf16.vlgmr.msra.gmra.mrb[44].mxu1 %vm1248_vm2, %v1681_v13  ;;  %v6502_v13 = vld [vmem:[%s7820_s3 + $0xd0] sm:$0xff]   ;;  %v6505_v16 = vld [vmem:[%s7820_s3 + $0xf8] sm:$0xff]  }
 0x404   : > { %6052 = vmatpush3.bf16.msra.mxu1 %v1830_v15  ;;  %6053 = vmatprep.mubr.msk.bf16.mxu1 %vm6682_vm0, %v6681_v1  ;;  %v6504_v15 = vld [vmem:[%s7820_s3 + $0xf0] sm:$0xff]  }
 0x405   : > { %6065 = vmatprep.subr.bf16.mxu1 %v6681_v1  ;;  %v6506_v17 = vld [vmem:[%s7820_s3 + $0x110] sm:$0xff]  }
 0x408   : > { %v1674_v18 = vpop.f32.mrb[40].mxu1 }
 0x409   : > { %v1683_v19 = vpack.c.bf16 %v1674_v18, %v1674_v18  ;;  %v6031_v20 = vpop.f32.mrb[41].mxu1  ;;  %v6507_v18 = vld [vmem:[%s7820_s3 + $0x118] sm:$0xff]  }
 0x40a   : > { %v1677_v21 = vpop.f32.mrb[42].mxu1  ;;  %v6509_v20 = vld [vmem:[%s7820_s3 + $0x138] sm:$0xff]  }
 0x40b   : > { %v6032_v22 = vpop.f32.mrb[43].mxu1  ;;  %6054 = vmatmul.mubr.msk.bf16.vlgmr.msra.gmra.mrb[48].mxu1 %vm1248_vm2, %v1683_v19  ;;  %v6508_v19 = vld [vmem:[%s7820_s3 + $0x130] sm:$0xff]  }
 0x40c   : > { %6073 = vmatprep.mubr.msk.bf16.mxu1 %vm6682_vm0, %v6681_v1  ;;  %6066 = vmatpush3.bf16.msra.mxu1 %v6510_v44  ;;  %v6512_v21 = vld [vmem:[%s7826_s9 + $0x10] sm:$0xff]   ;;  %v6513_v22 = vld [vmem:[%s7826_s9 + $0x18] sm:$0xff]  }
 0x40d   : > { %6067 = vmatprep.subr.bf16.mxu1 %v6681_v1 }
 0x410   : > { %6068 = vmatpush3.bf16.msra.mxu1 %v6511_v56 }
 0x411   : > { %6069 = vmatprep.subr.bf16.mxu1 %v6681_v1 }
 0x414   : > { %6070 = vmatpush3.bf16.msra.mxu1 %v6512_v21 }
 0x415   : > { %6071 = vmatprep.subr.bf16.mxu1 %v6681_v1 }
 0x418   : > { %6072 = vmatpush3.bf16.msra.mxu1 %v6513_v22 }
 0x419   : > { %6093 = vmatprep.subr.bf16.mxu1 %v6681_v1 }
 0x4c6   : > { %v1728_v23 = vpop.f32.mrb[36].mxu0 }
 0x4c7   : > { %v6037_v24 = vpop.f32.mrb[37].mxu0  ;;  %v1872_v33 = vsel %vm528_vm1, %v1728_v23, 0.0  ;;  %v6517_v23 = vld [vmem:[%s7820_s3 + $0x150] sm:$0xff]  }
 0x4c8   : > { %v1731_v25 = vpop.f32.mrb[38].mxu0  ;;  %v6519_v24 = vld [vmem:[%s7820_s3 + $0x158] sm:$0xff]  }
 0x4c9   : > { %v6038_v26 = vpop.f32.mrb[39].mxu0  ;;  %v6521_v25 = vld [vmem:[%s7820_s3 + $0x170] sm:$0xff]  }
 0x4ca   : > { %v6523_v26 = vld [vmem:[%s7820_s3 + $0x178] sm:$0xff]  }
 0x4ce   : > { %v1820_v27 = vpop.f32.mrb[40].mxu0 }
 0x4cf   : > { %v6049_v28 = vpop.f32.mrb[41].mxu0  ;;  %v1875_v38 = vsel %vm528_vm1, %v1820_v27, 0.0  ;;  %v5387_v27 = vld [vmem:[%s7825_s8] ss:$0 sm:$0xff] }
 0x4d0   : > { %v1823_v29 = vpop.f32.mrb[42].mxu0 }
 0x4d1   : > { %v6050_v30 = vpop.f32.mrb[43].mxu0 }
 0x4d6   : > { %v1774_v31 = vpop.f32.mrb[44].mxu1 }
 0x4d7   : > { %v1873_v34 = vsel %vm528_vm1, %v1774_v31, 0.0  ;;  %v6043_v35 = vpop.f32.mrb[45].mxu1 }
 0x4d8   : > { %v1874_v36 = vadd.f32 %v1873_v34, %v1872_v33  ;;  %v1777_v37 = vpop.f32.mrb[46].mxu1  ;;  %v6514_v35 = vld [vmem:[%s7820_s3 + $0xe0] sm:$0xff]  }
 0x4d9   : > { %v6044_v39 = vpop.f32.mrb[47].mxu1  ;;  %v6515_v37 = vld [vmem:[%s7820_s3 + $0xe8] sm:$0xff]  }
 0x4da   : > { %v1876_v40 = vadd.f32 %v1875_v38, %v1874_v36 }
 0x4de   : > { %v1866_v41 = vpop.f32.mrb[48].mxu1 }
 0x4df   : > { %v1877_v42 = vsel %vm528_vm1, %v1866_v41, 0.0  ;;  %v6055_v45 = vpop.f32.mrb[49].mxu1 }
 0x4e0   : > { %v1878_v46 = vadd.f32 %v1877_v42, %v1876_v40  ;;  %v1869_v32 = vpop.f32.mrb[50].mxu1  ;;  %v6516_v42 = vld [vmem:[%s7820_s3 + $0x100] sm:$0xff]  }
 0x4e1   : > { %v6056_v47 = vpop.f32.mrb[51].mxu1 }
 0x4e2   : > { %v1886_v48 = vadd.f32 %v5384_v43, %v1878_v46  ;;  %v6518_v43 = vld [vmem:[%s7820_s3 + $0x108] sm:$0xff]  }
 0x4e4   : > { %v1887_v50 = vadd.f32 %v6616_v49, %v1886_v48  ;;  %v6520_v48 = vld [vmem:[%s7820_s3 + $0x120] sm:$0xff]  }
 0x4e6   : > { %v1888_v51 = vsel %vm528_vm1, %v1887_v50, 0.0  ;;  %v1893_v52 = vmul.f32 %v1887_v50, %v1887_v50 }
 0x4e7   : > { %1889 = vadd.xlane.f32.xlu0 %v1888_v51 }
 0x4e8   : > { %v1894_v53 = vsel %vm528_vm1, %v1893_v52, 0.0 }
 0x4e9   : > { %1895 = vadd.xlane.f32.xlu1 %v1894_v53 }
 0x574   : > { %v1890_v57 = vpop.xlane.xlu0 %1889 }
 0x575   : > { %v1892_v58 = vmul.f32 0.03125, %v1890_v57 }
 0x576   : > { %v1896_v59 = vpop.xlane.xlu1 %1895 }
 0x577   : > { %v1898_v60 = vmul.f32 %v1892_v58, %v1892_v58  ;;  %v1897_v61 = vmul.f32 0.03125, %v1896_v59  ;;  %v1902_v0 = vsub.f32 %v1887_v50, %v1892_v58  ;;  %v6522_v50 = vld [vmem:[%s7820_s3 + $0x128] sm:$0xff]  }
 0x578   : > { %v5422_v58 = vld [vmem:[%s7821_s4 + $0xd] ss:$0 sm:$0xff] }
 0x579   : > { %v1899_v62 = vsub.f32 %v1897_v61, %v1898_v60 }
 0x57b   : > { %v1900_v63 = vadd.f32 1e-05, %v1899_v62 }
 0x57d   : > { %6574 = vrsqrt.f32 %v1900_v63 }
 0x587   : > { %v6575_v2 = vpop.eup %6574 }
 0x588   : > { %v1903_v4 = vmul.f32 %v6575_v2, %v1902_v0  ;;  %v5460_v0 = vld [vmem:[%s7821_s4 + $0x13] ss:$0 sm:$0xff] }
 0x58a   : > { %v1911_v6 = vmul.f32 %v5385_v3, %v1903_v4 }
 0x58c   : > { %v7125_v7 = vadd.f32 %v5386_v5, %v1911_v6  ;;  %v5424_v6 = vld [vmem:[%s7821_s4 + $0xf] ss:$0 sm:$0xff] }
 0x58e   : > { %v1920_v9 = vpack.c.bf16 %v7125_v7, %v7125_v7 }
 0x590   : > { %6062 = vmatmul.mubr.msk.bf16.vlgmr.msra.gmra.mrb[44].mxu0 %vm528_vm1, %v1920_v9 }
 0x591   : > { %6078 = vmatpush3.bf16.msra.mxu0 %v6500_v8  ;;  %6081 = vmatprep.mubr.msk.bf16.mxu0 %vm6682_vm0, %v6681_v1 }
 0x592   : > { %6079 = vmatprep.subr.bf16.mxu0 %v6681_v1 }
 0x595   : > { %6080 = vmatpush3.bf16.msra.mxu0 %v6501_v10 }
 0x596   : > { %6085 = vmatprep.subr.bf16.mxu0 %v6681_v1 }
 0x598   : > { %6082 = vmatmul.mubr.msk.bf16.vlgmr.msra.gmra.mrb[48].mxu0 %vm528_vm1, %v7148_v12 }
 0x599   : > { %6086 = vmatpush3.bf16.msra.mxu0 %v6502_v13  ;;  %6089 = vmatprep.mubr.msk.bf16.mxu0 %vm6682_vm0, %v6681_v1 }
 0x59a   : > { %6087 = vmatprep.subr.bf16.mxu0 %v6681_v1 }
 0x59d   : > { %6088 = vmatpush3.bf16.msra.mxu0 %v6503_v14 }
 0x59e   : > { %6101 = vmatprep.subr.bf16.mxu0 %v6681_v1 }
 0x5a0   : > { %6090 = vmatmul.mubr.msk.bf16.vlgmr.msra.gmra.mrb[52].mxu0 %vm528_vm1, %v7148_v12 }
 0x5a1   : > { %6102 = vmatpush3.bf16.msra.mxu0 %v6504_v15  ;;  %6105 = vmatprep.mubr.msk.bf16.mxu0 %vm6682_vm0, %v6681_v1 }
 0x5a2   : > { %6103 = vmatprep.subr.bf16.mxu0 %v6681_v1 }
 0x5a5   : > { %6104 = vmatpush3.bf16.msra.mxu0 %v6505_v16  ;;  %v6525_v16 = vld [vmem:[%s7820_s3 + $0x148] sm:$0xff]  }
 0x5a6   : > { %6117 = vmatprep.subr.bf16.mxu0 %v6681_v1 }
 0x5a8   : > { %6106 = vmatmul.mubr.msk.bf16.vlgmr.msra.gmra.mrb[56].mxu0 %vm528_vm1, %v7148_v12 }
 0x5a9   : > { %6118 = vmatpush3.bf16.msra.mxu0 %v6506_v17  ;;  %6121 = vmatprep.mubr.msk.bf16.mxu0 %vm6682_vm0, %v6681_v1  ;;  %v6526_v17 = vld [vmem:[%s7820_s3 + $0x160] sm:$0xff]  }
 0x5aa   : > { %6119 = vmatprep.subr.bf16.mxu0 %v6681_v1 }
 0x5ad   : > { %6120 = vmatpush3.bf16.msra.mxu0 %v6507_v18  ;;  %v6527_v18 = vld [vmem:[%s7820_s3 + $0x168] sm:$0xff]  }
 0x5ae   : > { %6133 = vmatprep.subr.bf16.mxu0 %v6681_v1 }
 0x5b0   : > { %6122 = vmatmul.mubr.msk.bf16.vlgmr.msra.gmra.mrb[60].mxu0 %vm528_vm1, %v7148_v12 }
 0x5b1   : > { %6134 = vmatpush3.bf16.msra.mxu0 %v6508_v19  ;;  %6137 = vmatprep.mubr.msk.bf16.mxu0 %vm6682_vm0, %v6681_v1  ;;  %v5494_v19 = vld [vmem:[%s7821_s4 + $0x15] ss:$0 sm:$0xff] }
 0x5b2   : > { %6135 = vmatprep.subr.bf16.mxu0 %v6681_v1 }
 0x5b5   : > { %6136 = vmatpush3.bf16.msra.mxu0 %v6509_v20 }
 0x5b6   : > { %6149 = vmatprep.subr.bf16.mxu0 %v6681_v1 }
 0x5b8   : > { %6138 = vmatmul.mubr.msk.bf16.vlgmr.msra.gmra.mrb[64].mxu0 %vm528_vm1, %v7148_v12 }
 0x5b9   : > { %6153 = vmatprep.mubr.msk.bf16.mxu0 %vm6682_vm0, %v6681_v1  ;;  %6150 = vmatpush3.bf16.msra.mxu0 %v6517_v23 }
 0x5ba   : > { %6151 = vmatprep.subr.bf16.mxu0 %v6681_v1 }
 0x5bd   : > { %6152 = vmatpush3.bf16.msra.mxu0 %v6519_v24 }
 0x5be   : > { %6165 = vmatprep.subr.bf16.mxu0 %v6681_v1 }
 0x5c0   : > { %6154 = vmatmul.mubr.msk.bf16.vlgmr.msra.gmra.mrb[68].mxu0 %vm528_vm1, %v7148_v12 }
 0x5c1   : > { %6166 = vmatpush3.bf16.msra.mxu0 %v6521_v25  ;;  %6169 = vmatprep.mubr.msk.bf16.mxu0 %vm6682_vm0, %v6681_v1 }
 0x5c2   : > { %6167 = vmatprep.subr.bf16.mxu0 %v6681_v1 }
 0x5c5   : > { %6168 = vmatpush3.bf16.msra.mxu0 %v6523_v26 }
 0x5c6   : > { %6179 = vmatprep.subr.bf16.mxu0 %v6681_v1 }
 0x5c8   : > { %6170 = vmatmul.mubr.msk.bf16.vlgmr.msra.gmra.mrb[72].mxu0 %vm528_vm1, %v7148_v12 }
 0x5c9   : > { %6181 = vmatprep.mubr.msk.bf16.mxu0 %vm6682_vm0, %v6681_v1 }
 0x663   : > { %v1981_v28 = vpop.f32.mrb[44].mxu0 }
 0x664   : > { %v1982_v29 = vadd.f32 %v5387_v27, %v1981_v28  ;;  %v6063_v30 = vpop.f32.mrb[45].mxu0 }
 0x665   : > { %v1984_v31 = vpop.f32.mrb[46].mxu0 }
 0x666   : > { %v1987_v33 = vmax.f32 %v1982_v29, 0.0  ;;  %v6064_v34 = vpop.f32.mrb[47].mxu0 }
 0x668   : > { %v1988_v36 = vpack.c.bf16 %v1987_v33, %v1987_v33 }
 0x66a   : > { %6074 = vmatmul.mubr.msk.bf16.vlgmr.msra.gmra.mrb[52].mxu1 %vm2028_vm4, %v1988_v36 }
 0x66b   : > { %6094 = vmatpush3.bf16.msra.mxu1 %v6514_v35  ;;  %6097 = vmatprep.mubr.msk.bf16.mxu1 %vm6682_vm0, %v6681_v1  ;;  %v7247_v38 = vpop.f32.mrb[48].mxu0 }
 0x66c   : > { %6095 = vmatprep.subr.bf16.mxu1 %v6681_v1  ;;  %v6083_v39 = vpop.f32.mrb[49].mxu0 }
 0x66d   : > { %v2205_v40 = vpop.f32.mrb[50].mxu0 }
 0x66e   : > { %v6084_v41 = vpop.f32.mrb[51].mxu0  ;;  %v5457_v40 = vld [vmem:[%s7821_s4 + $0x10] ss:$0 sm:$0xff] }
 0x66f   : > { %6096 = vmatpush3.bf16.msra.mxu1 %v6515_v37 }
 0x670   : > { %6109 = vmatprep.subr.bf16.mxu1 %v6681_v1 }
 0x672   : > { %6098 = vmatmul.mubr.msk.bf16.vlgmr.msra.gmra.mrb[56].mxu1 %vm528_vm1, %v7148_v12 }
 0x673   : > { %6110 = vmatpush3.bf16.msra.mxu1 %v6516_v42  ;;  %6113 = vmatprep.mubr.msk.bf16.mxu1 %vm6682_vm0, %v6681_v1  ;;  %v2254_v45 = vpop.f32.mrb[52].mxu0 }
 0x674   : > { %6111 = vmatprep.subr.bf16.mxu1 %v6681_v1  ;;  %v6091_v46 = vpop.f32.mrb[53].mxu0  ;;  %v2255_v62 = vadd.f32 %v5422_v58, %v2254_v45 }
 0x675   : > { %v2257_v32 = vpop.f32.mrb[54].mxu0 }
 0x676   : > { %v6092_v47 = vpop.f32.mrb[55].mxu0  ;;  %v2365_v3 = vpack.c.bf16 %v2255_v62, %v2255_v62 }
 0x677   : > { %6112 = vmatpush3.bf16.msra.mxu1 %v6518_v43  ;;  %v5421_v47 = vld [vmem:[%s7821_s4 + $0xc] ss:$0 sm:$0xff] }
 0x678   : > { %6125 = vmatprep.subr.bf16.mxu1 %v6681_v1 }
 0x67a   : > { %6114 = vmatmul.mubr.msk.bf16.vlgmr.msra.gmra.mrb[60].mxu1 %vm528_vm1, %v7148_v12 }
 0x67b   : > { %6126 = vmatpush3.bf16.msra.mxu1 %v6520_v48  ;;  %v2358_v49 = vpop.f32.mrb[56].mxu0  ;;  %6129 = vmatprep.mubr.msk.bf16.mxu1 %vm6682_vm0, %v6681_v1 }
 0x67c   : > { %6127 = vmatprep.subr.bf16.mxu1 %v6681_v1  ;;  %v6107_v51 = vpop.f32.mrb[57].mxu0  ;;  %v2359_v13 = vadd.f32 %v5424_v6, %v2358_v49  ;;  %v5459_v49 = vld [vmem:[%s7821_s4 + $0x12] ss:$0 sm:$0xff] }
 0x67d   : > { %v2361_v52 = vpop.f32.mrb[58].mxu0 }
 0x67e   : > { %v6108_v53 = vpop.f32.mrb[59].mxu0  ;;  %v2367_v15 = vpack.c.bf16 %v2359_v13, %v2359_v13 }
 0x67f   : > { %6128 = vmatpush3.bf16.msra.mxu1 %v6522_v50  ;;  %v2203_v50 = vadd.f32 %v5421_v47, %v7247_v38 }
 0x680   : > { %6141 = vmatprep.subr.bf16.mxu1 %v6681_v1 }
 0x682   : > { %6130 = vmatmul.mubr.msk.bf16.vlgmr.msra.gmra.mrb[64].mxu1 %vm528_vm1, %v7148_v12 }
 0x683   : > { %v2512_v44 = vpop.f32.mrb[60].mxu0  ;;  %6142 = vmatpush3.bf16.msra.mxu1 %v6524_v54  ;;  %6145 = vmatprep.mubr.msk.bf16.mxu1 %vm6682_vm0, %v6681_v1 }
 0x684   : > { %v2513_v56 = vadd.f32 %v5458_v55, %v2512_v44  ;;  %v6123_v57 = vpop.f32.mrb[61].mxu0  ;;  %6143 = vmatprep.subr.bf16.mxu1 %v6681_v1  ;;  %v2364_v55 = vpack.c.bf16 %v2203_v50, %v2203_v50  ;;  %v5496_v50 = vld [vmem:[%s7821_s4 + $0x17] ss:$0 sm:$0xff] }
 0x685   : > { %v2515_v59 = vpop.f32.mrb[62].mxu0  ;;  %v5423_v57 = vld [vmem:[%s7821_s4 + $0xe] ss:$0 sm:$0xff] }
 0x686   : > { %v2623_v60 = vpack.c.bf16 %v2513_v56, %v2513_v56  ;;  %v6124_v61 = vpop.f32.mrb[63].mxu0 }
 0x687   : > { %6144 = vmatpush3.bf16.msra.mxu1 %v6525_v16 }
 0x688   : > { %v2934_v63 = vsel %vm1248_vm2, %v2623_v60, 0  ;;  %6157 = vmatprep.subr.bf16.mxu1 %v6681_v1 }
 0x689   : > { %6180 = vmatpush3.bf16.xpose.msra.mxu0 %v2934_v63 }
 0x68a   : > { %6191 = vmatprep.subr.bf16.mxu0 %v6681_v1  ;;  %6146 = vmatmul.mubr.msk.bf16.vlgmr.msra.gmra.mrb[68].mxu1 %vm528_vm1, %v7148_v12 }
 0x68b   : > { %v2616_v2 = vpop.f32.mrb[64].mxu0  ;;  %6161 = vmatprep.mubr.msk.bf16.mxu1 %vm6682_vm0, %v6681_v1  ;;  %6158 = vmatpush3.bf16.msra.mxu1 %v6526_v17 }
 0x68c   : > { %v2617_v4 = vadd.f32 %v5460_v0, %v2616_v2  ;;  %v6139_v5 = vpop.f32.mrb[65].mxu0  ;;  %6159 = vmatprep.subr.bf16.mxu1 %v6681_v1 }
 0x68d   : > { %v2619_v8 = vpop.f32.mrb[66].mxu0 }
 0x68e   : > { %v2625_v9 = vpack.c.bf16 %v2617_v4, %v2617_v4  ;;  %v6140_v10 = vpop.f32.mrb[67].mxu0 }
 0x68f   : > { %6160 = vmatpush3.bf16.msra.mxu1 %v6527_v18  ;;  %v5493_v10 = vld [vmem:[%s7821_s4 + $0x14] ss:$0 sm:$0xff] }
 0x690   : > { %v3026_v14 = vsel %vm1248_vm2, %v2625_v9, 0  ;;  %6182 = vmatmul.mubr.msk.bf16.vlgmr.msra.gmra.mrb[76].mxu0 %vm1248_vm2, %v2365_v3  ;;  %6173 = vmatprep.subr.bf16.mxu1 %v6681_v1 }
 0x691   : > { %6192 = vmatpush3.bf16.xpose.msra.mxu0 %v3026_v14  ;;  %6193 = vmatprep.mubr.msk.bf16.mxu0 %vm6682_vm0, %v6681_v1 }
 0x692   : > { %6203 = vmatprep.subr.bf16.mxu0 %v6681_v1  ;;  %6162 = vmatmul.mubr.msk.bf16.vlgmr.msra.gmra.mrb[72].mxu1 %vm528_vm1, %v7148_v12 }
 0x693   : > { %6175 = vmatprep.mubr.msk.bf16.mxu1 %vm6682_vm0, %v6681_v1  ;;  %v2770_v20 = vpop.f32.mrb[68].mxu0 }
 0x694   : > { %v2771_v21 = vadd.f32 %v5494_v19, %v2770_v20  ;;  %v6155_v22 = vpop.f32.mrb[69].mxu0 }
 0x695   : > { %v2773_v23 = vpop.f32.mrb[70].mxu0 }
 0x696   : > { %v2881_v24 = vpack.c.bf16 %v2771_v21, %v2771_v21  ;;  %v6156_v25 = vpop.f32.mrb[71].mxu0 }
 0x698   : > { %6194 = vmatmul.mubr.msk.bf16.vlgmr.msra.gmra.mrb[80].mxu0 %vm1248_vm2, %v2367_v15  ;;  %v3170_v27 = vsel %vm1498_vm3, %v2881_v24, 0 }
 0x699   : > { %6205 = vmatprep.mubr.msk.bf16.mxu0 %vm6682_vm0, %v6681_v1  ;;  %6204 = vmatpush3.bf16.msra.mxu0 %v3170_v27 }
 0x69a   : > { %6215 = vmatprep.subr.bf16.mxu0 %v6681_v1 }
 0x69b   : > { %v7328_v26 = vpop.f32.mrb[72].mxu0 }
 0x69c   : > { %v6171_v28 = vpop.f32.mrb[73].mxu0 }
 0x69d   : > { %v2877_v29 = vpop.f32.mrb[74].mxu0 }
 0x69e   : > { %v6172_v12 = vpop.f32.mrb[75].mxu0 }
 0x73d   : > { %v7332_v30 = vpop.f32.mrb[52].mxu1 }
 0x73e   : > { %v6075_v31 = vpop.f32.mrb[53].mxu1 }
 0x73f   : > { %v2069_v33 = vpop.f32.mrb[54].mxu1 }
 0x740   : > { %v6076_v34 = vpop.f32.mrb[55].mxu1 }
 0x745   : > { %v2306_v35 = vpop.f32.mrb[56].mxu1 }
 0x746   : > { %v6099_v36 = vpop.f32.mrb[57].mxu1  ;;  %v2307_v38 = vadd.f32 %v5423_v57, %v2306_v35 }
 0x747   : > { %v2309_v37 = vpop.f32.mrb[58].mxu1 }
 0x748   : > { %v6100_v39 = vpop.f32.mrb[59].mxu1  ;;  %v2366_v59 = vpack.c.bf16 %v2307_v38, %v2307_v38 }
 0x74d   : > { %v2460_v41 = vpop.f32.mrb[60].mxu1 }
 0x74e   : > { %v2461_v42 = vadd.f32 %v5457_v40, %v2460_v41  ;;  %v6115_v43 = vpop.f32.mrb[61].mxu1 }
 0x74f   : > { %v2463_v45 = vpop.f32.mrb[62].mxu1 }
 0x750   : > { %v2622_v46 = vpack.c.bf16 %v2461_v42, %v2461_v42  ;;  %v6116_v32 = vpop.f32.mrb[63].mxu1 }
 0x752   : > { %v2888_v48 = vsel %vm1248_vm2, %v2622_v46, 0 }
 0x753   : > { %6174 = vmatpush3.bf16.xpose.msra.mxu1 %v2888_v48 }
 0x754   : > { %6185 = vmatprep.subr.bf16.mxu1 %v6681_v1 }
 0x755   : > { %v2564_v51 = vpop.f32.mrb[64].mxu1 }
 0x756   : > { %v2565_v52 = vadd.f32 %v5459_v49, %v2564_v51  ;;  %v6131_v53 = vpop.f32.mrb[65].mxu1  ;;  %v2875_v51 = vadd.f32 %v5496_v50, %v7328_v26 }
 0x757   : > { %v2567_v54 = vpop.f32.mrb[66].mxu1 }
 0x758   : > { %v2624_v44 = vpack.c.bf16 %v2565_v52, %v2565_v52  ;;  %v6132_v56 = vpop.f32.mrb[67].mxu1  ;;  %v2883_v54 = vpack.c.bf16 %v2875_v51, %v2875_v51 }
 0x75a   : > { %v2980_v58 = vsel %vm1248_vm2, %v2624_v44, 0  ;;  %6176 = vmatmul.mubr.msk.bf16.vlgmr.msra.gmra.mrb[76].mxu1 %vm1248_vm2, %v2364_v55  ;;  %v3262_v56 = vsel %vm1498_vm3, %v2883_v54, 0 }
 0x75b   : > { %6186 = vmatpush3.bf16.xpose.msra.mxu1 %v2980_v58  ;;  %6187 = vmatprep.mubr.msk.bf16.mxu1 %vm6682_vm0, %v6681_v1 }
 0x75c   : > { %6197 = vmatprep.subr.bf16.mxu1 %v6681_v1 }
 0x75d   : > { %v2718_v13 = vpop.f32.mrb[68].mxu1 }
 0x75e   : > { %v2719_v14 = vadd.f32 %v5493_v10, %v2718_v13  ;;  %v6147_v15 = vpop.f32.mrb[69].mxu1 }
 0x75f   : > { %v2721_v16 = vpop.f32.mrb[70].mxu1 }
 0x760   : > { %v2880_v17 = vpack.c.bf16 %v2719_v14, %v2719_v14  ;;  %v6148_v18 = vpop.f32.mrb[71].mxu1 }
 0x762   : > { %6188 = vmatmul.mubr.msk.bf16.vlgmr.msra.gmra.mrb[80].mxu1 %vm1248_vm2, %v2366_v59  ;;  %v3124_v19 = vsel %vm1498_vm3, %v2880_v17, 0 }
 0x763   : > { %v2970_v60 = vpop.f32.mrb[76].mxu0  ;;  %6199 = vmatprep.mubr.msk.bf16.mxu1 %vm6682_vm0, %v6681_v1  ;;  %6198 = vmatpush3.bf16.msra.mxu1 %v3124_v19 }
 0x764   : > { %v3069_v61 = vmul.f32 0.35355338, %v2970_v60  ;;  %v6183_v62 = vpop.f32.mrb[77].mxu0  ;;  %6209 = vmatprep.subr.bf16.mxu1 %v6681_v1 }
 0x765   : > { %v2973_v63 = vpop.f32.mrb[78].mxu0  ;;  %v7364_v20 = vpop.f32.mrb[72].mxu1 }
 0x766   : > { %v3075_v0 = vsel %vm1248_vm2, %v3069_v61, -inf  ;;  %v6184_v2 = vpop.f32.mrb[79].mxu0  ;;  %v6163_v21 = vpop.f32.mrb[73].mxu1 }
 0x767   : > { %3076 = vmax.xlane.f32.xlu1 %v3075_v0  ;;  %v2825_v22 = vpop.f32.mrb[74].mxu1 }
 0x768   : > { %v6164_v23 = vpop.f32.mrb[75].mxu1 }
 0x76b   : > { %v3062_v3 = vpop.f32.mrb[80].mxu0 }
 0x76c   : > { %v3071_v4 = vmul.f32 0.35355338, %v3062_v3  ;;  %v6195_v5 = vpop.f32.mrb[81].mxu0 }
 0x76d   : > { %v3065_v6 = vpop.f32.mrb[82].mxu0  ;;  %v5518_v5 = vld [vmem:[%s7822_s5 + $0x14] sm:$0xf] }
 0x76e   : > { %v3081_v8 = vsel %vm1248_vm2, %v3071_v4, -inf  ;;  %v6196_v9 = vpop.f32.mrb[83].mxu0  ;;  %v3363_v6 = vsel %vm1498_vm3, %v5518_v5, 0 }
 0x76f   : > { %3082 = vmax.xlane.f32.xlu1 %v3081_v8  ;;  %v5495_v9 = vld [vmem:[%s7821_s4 + $0x16] ss:$0 sm:$0xff] }
 0x770   : > { %v2823_v10 = vadd.f32 %v5495_v9, %v7364_v20  ;;  %v5517_v20 = vld [vmem:[%s7822_s5 + $0x10] sm:$0xf] }
 0x771   : > { %v3317_v23 = vsel %vm1498_vm3, %v5517_v20, 0 }
 0x772   : > { %v2882_v15 = vpack.c.bf16 %v2823_v10, %v2823_v10 }
 0x774   : > { %v3216_v18 = vsel %vm1498_vm3, %v2882_v15, 0 }
 0x7f4   : > { %v3077_v24 = vpop.xlane.xlu1 %3076 }
 0x7f5   : > { %v3085_v25 = vsub.f32 %v3069_v61, %v3077_v24  ;;  %v5520_v24 = vld [vmem:[%s7822_s5 + $0x1c] sm:$0xf] }
 0x7f7   : > { %v3090_v27 = vmul.f32 1.442695, %v3085_v25 }
 0x7f9   : > { %6576 = vpow2.f32 %v3090_v27 }
 0x7fc   : > { %v3083_v28 = vpop.xlane.xlu1 %3082 }
 0x7fd   : > { %v3087_v29 = vsub.f32 %v3071_v4, %v3083_v28 }
 0x7ff   : > { %v3094_v12 = vmul.f32 1.442695, %v3087_v29  ;;  %v3455_v29 = vsel %vm1498_vm3, %v5520_v24, 0 }
 0x801   : > { %6578 = vpow2.f32 %v3094_v12 }
 0x803   : > { %v6577_v31 = vpop.eup %6576 }
 0x804   : > { %v3099_v33 = vsel %vm1248_vm2, %v6577_v31, 0.0 }
 0x805   : > { %3100 = vadd.xlane.f32.xlu1 %v3099_v33 }
 0x80b   : > { %v6579_v34 = vpop.eup %6578 }
 0x80c   : > { %v3105_v35 = vsel %vm1248_vm2, %v6579_v34, 0.0 }
 0x80d   : > { %3106 = vadd.xlane.f32.xlu1 %v3105_v35 }
 0x82d   : > { %v2924_v36 = vpop.f32.mrb[76].mxu1 }
 0x82e   : > { %v3068_v37 = vmul.f32 0.35355338, %v2924_v36  ;;  %v6177_v39 = vpop.f32.mrb[77].mxu1 }
 0x82f   : > { %v2927_v40 = vpop.f32.mrb[78].mxu1  ;;  %v5519_v39 = vld [vmem:[%s7822_s5 + $0x18] sm:$0xf] }
 0x830   : > { %v6178_v41 = vpop.f32.mrb[79].mxu1  ;;  %v3072_v42 = vsel %vm1248_vm2, %v3068_v37, -inf }
 0x831   : > { %3073 = vmax.xlane.f32.xlu0 %v3072_v42 }
 0x835   : > { %v3016_v43 = vpop.f32.mrb[80].mxu1 }
 0x836   : > { %v3070_v45 = vmul.f32 0.35355338, %v3016_v43  ;;  %v6189_v46 = vpop.f32.mrb[81].mxu1  ;;  %v3409_v43 = vsel %vm1498_vm3, %v5519_v39, 0 }
 0x837   : > { %v3019_v32 = vpop.f32.mrb[82].mxu1 }
 0x838   : > { %v6190_v47 = vpop.f32.mrb[83].mxu1  ;;  %v3078_v48 = vsel %vm1248_vm2, %v3070_v45, -inf }
 0x839   : > { %3079 = vmax.xlane.f32.xlu0 %v3078_v48 }
 0x892   : > { %v3101_v49 = vpop.xlane.xlu1 %3100 }
 0x893   : > { %6580 = vrcp.f32 %v3101_v49 }
 0x89a   : > { %v3107_v52 = vpop.xlane.xlu1 %3106 }
 0x89b   : > { %6582 = vrcp.f32 %v3107_v52 }
 0x89d   : > { %v6581_v53 = vpop.eup %6580 }
 0x89e   : > { %v3113_v55 = vmul.f32 %v6581_v53, %v6577_v31 }
 0x8a0   : > { %v3117_v44 = vpack.c.bf16 %v3113_v55, %v3113_v55 }
 0x8a2   : > { %6206 = vmatmul.mubr.msk.bf16.vlgmr.msra.gmra.mrb[84].mxu0 %vm1248_vm2, %v3117_v44 }
 0x8a3   : > { %6216 = vmatpush3.bf16.msra.mxu0 %v3262_v56  ;;  %6217 = vmatprep.mubr.msk.bf16.mxu0 %vm6682_vm0, %v6681_v1 }
 0x8a4   : > { %6227 = vmatprep.subr.bf16.mxu0 %v6681_v1 }
 0x8a5   : > { %v6583_v57 = vpop.eup %6582 }
 0x8a6   : > { %v3115_v58 = vmul.f32 %v6583_v57, %v6579_v34 }
 0x8a8   : > { %v3119_v38 = vpack.c.bf16 %v3115_v58, %v3115_v58 }
 0x8aa   : > { %6218 = vmatmul.mubr.msk.bf16.vlgmr.msra.gmra.mrb[88].mxu0 %vm1248_vm2, %v3119_v38 }
 0x8ab   : > { %6229 = vmatprep.mubr.msk.bf16.mxu0 %vm6682_vm0, %v6681_v1  ;;  %6228 = vmatpush3.bf16.msra.mxu0 %v3363_v6 }
 0x8ac   : > { %6239 = vmatprep.subr.bf16.mxu0 %v6681_v1 }
 0x8be   : > { %v3074_v26 = vpop.xlane.xlu0 %3073 }
 0x8bf   : > { %v3084_v59 = vsub.f32 %v3068_v37, %v3074_v26 }
 0x8c1   : > { %v3088_v60 = vmul.f32 1.442695, %v3084_v59 }
 0x8c3   : > { %6584 = vpow2.f32 %v3088_v60 }
 0x8c6   : > { %v3080_v61 = vpop.xlane.xlu0 %3079 }
 0x8c7   : > { %v3086_v62 = vsub.f32 %v3070_v45, %v3080_v61 }
 0x8c9   : > { %v3092_v63 = vmul.f32 1.442695, %v3086_v62 }
 0x8cb   : > { %6586 = vpow2.f32 %v3092_v63 }
 0x8cd   : > { %v6585_v0 = vpop.eup %6584 }
 0x8ce   : > { %v3096_v2 = vsel %vm1248_vm2, %v6585_v0, 0.0 }
 0x8cf   : > { %3097 = vadd.xlane.f32.xlu0 %v3096_v2 }
 0x8d5   : > { %v6587_v3 = vpop.eup %6586 }
 0x8d6   : > { %v3102_v4 = vsel %vm1248_vm2, %v6587_v3, 0.0 }
 0x8d7   : > { %3103 = vadd.xlane.f32.xlu0 %v3102_v4 }
 0x95c   : > { %v3098_v8 = vpop.xlane.xlu0 %3097 }
 0x95d   : > { %6588 = vrcp.f32 %v3098_v8  ;;  %v5526_v8 = vld [vmem:[%s7823_s6 + $0x1] ss:$0 sm:$0xff] }
 0x964   : > { %v3104_v13 = vpop.xlane.xlu0 %3103 }
 0x965   : > { %6590 = vrcp.f32 %v3104_v13 }
 0x967   : > { %v6589_v14 = vpop.eup %6588 }
 0x968   : > { %v3112_v16 = vmul.f32 %v6589_v14, %v6585_v0  ;;  %v5391_v0 = vld [vmem:[%s7827_s10] ss:$0 sm:$0xff] }
 0x969   : > { %v2067_v10 = vadd.f32 %v5391_v0, %v7332_v30  ;;  %v6530_v30 = vld [vmem:[%s7820_s3 + $0x188] sm:$0xff]  }
 0x96a   : > { %v3116_v17 = vpack.c.bf16 %v3112_v16, %v3112_v16  ;;  %v6542_v0 = vld [vmem:[%s7820_s3 + $0x1e8] sm:$0xff]  }
 0x96b   : > { %v2072_v15 = vadd.f32 %v2067_v10, %v7125_v7  ;;  %v6528_v7 = vld [vmem:[%s7820_s3 + $0x180] sm:$0xff]   ;;  %v6550_v10 = vld [vmem:[%s7820_s3 + $0x228] sm:$0xff]  }
 0x96c   : > { %6200 = vmatmul.mubr.msk.bf16.vlgmr.msra.gmra.mrb[84].mxu1 %vm1248_vm2, %v3116_v17 }
 0x96d   : > { %6210 = vmatpush3.bf16.msra.mxu1 %v3216_v18  ;;  %6211 = vmatprep.mubr.msk.bf16.mxu1 %vm6682_vm0, %v6681_v1  ;;  %v2077_v20 = vmul.f32 %v2072_v15, %v2072_v15 }
 0x96e   : > { %6221 = vmatprep.subr.bf16.mxu1 %v6681_v1 }
 0x96f   : > { %v6591_v19 = vpop.eup %6590 }
 0x970   : > { %v3114_v21 = vmul.f32 %v6591_v19, %v6587_v3 }
 0x972   : > { %v3118_v22 = vpack.c.bf16 %v3114_v21, %v3114_v21  ;;  %v2073_v21 = vsel %vm528_vm1, %v2072_v15, 0.0 }
 0x974   : > { %6212 = vmatmul.mubr.msk.bf16.vlgmr.msra.gmra.mrb[88].mxu1 %vm1248_vm2, %v3118_v22  ;;  %v2078_v22 = vsel %vm528_vm1, %v2077_v20, 0.0 }
 0x975   : > { %v3206_v25 = vpop.f32.mrb[84].mxu0  ;;  %6222 = vmatpush3.bf16.msra.mxu1 %v3317_v23  ;;  %6223 = vmatprep.mubr.msk.bf16.mxu1 %vm6682_vm0, %v6681_v1  ;;  %v6531_v23 = vld [vmem:[%s7820_s3 + $0x198] sm:$0xff]  }
 0x976   : > { %v3305_v27 = vpack.c.bf16 %v3206_v25, %v3206_v25  ;;  %v6207_v28 = vpop.f32.mrb[85].mxu0  ;;  %6233 = vmatprep.subr.bf16.mxu1 %v6681_v1 }
 0x977   : > { %v3209_v12 = vpop.f32.mrb[86].mxu0 }
 0x978   : > { %v6208_v31 = vpop.f32.mrb[87].mxu0  ;;  %6230 = vmatmul.mubr.msk.bf16.vlgmr.msra.gmra.mrb[92].mxu0 %vm1248_vm2, %v3305_v27 }
 0x979   : > { %6240 = vmatpush3.bf16.msra.mxu0 %v3455_v29  ;;  %6241 = vmatprep.mubr.msk.bf16.mxu0 %vm6682_vm0, %v6681_v1 }
 0x97a   : > { %6253 = vmatprep.subr.bf16.mxu0 %v6681_v1 }
 0x97d   : > { %v3298_v33 = vpop.f32.mrb[88].mxu0 }
 0x97e   : > { %v3307_v34 = vpack.c.bf16 %v3298_v33, %v3298_v33  ;;  %v6219_v35 = vpop.f32.mrb[89].mxu0 }
 0x97f   : > { %v3301_v36 = vpop.f32.mrb[90].mxu0 }
 0x980   : > { %v6220_v37 = vpop.f32.mrb[91].mxu0  ;;  %6242 = vmatmul.mubr.msk.bf16.vlgmr.msra.gmra.mrb[96].mxu0 %vm1248_vm2, %v3307_v34 }
 0x981   : > { %6257 = vmatprep.mubr.msk.bf16.mxu0 %vm6682_vm0, %v6681_v1 }
 0xa3f   : > { %v3160_v40 = vpop.f32.mrb[84].mxu1 }
 0xa40   : > { %v3304_v41 = vpack.c.bf16 %v3160_v40, %v3160_v40  ;;  %v6201_v42 = vpop.f32.mrb[85].mxu1 }
 0xa41   : > { %v3163_v45 = vpop.f32.mrb[86].mxu1 }
 0xa42   : > { %v6202_v46 = vpop.f32.mrb[87].mxu1  ;;  %6224 = vmatmul.mubr.msk.bf16.vlgmr.msra.gmra.mrb[92].mxu1 %vm1248_vm2, %v3304_v41 }
 0xa43   : > { %6234 = vmatpush3.bf16.msra.mxu1 %v3409_v43  ;;  %6235 = vmatprep.mubr.msk.bf16.mxu1 %vm6682_vm0, %v6681_v1  ;;  %v5528_v43 = vld [vmem:[%s7828_s11 + $0x2] ss:$0 sm:$0xff] }
 0xa44   : > { %6245 = vmatprep.subr.bf16.mxu1 %v6681_v1  ;;  %v5530_v46 = vld [vmem:[%s7829_s12 + $0x2] ss:$0 sm:$0xff] }
 0xa47   : > { %v3252_v32 = vpop.f32.mrb[88].mxu1 }
 0xa48   : > { %v3306_v47 = vpack.c.bf16 %v3252_v32, %v3252_v32  ;;  %v6213_v48 = vpop.f32.mrb[89].mxu1 }
 0xa49   : > { %v3255_v49 = vpop.f32.mrb[90].mxu1  ;;  %v6532_v48 = vld [vmem:[%s7820_s3 + $0x1a0] sm:$0xff]  }
 0xa4a   : > { %v6214_v50 = vpop.f32.mrb[91].mxu1  ;;  %6236 = vmatmul.mubr.msk.bf16.vlgmr.msra.gmra.mrb[96].mxu1 %vm1248_vm2, %v3306_v47  ;;  %v6533_v49 = vld [vmem:[%s7820_s3 + $0x1b0] sm:$0xff]  }
 0xa4b   : > { %v3399_v51 = vpop.f32.mrb[92].mxu0  ;;  %6249 = vmatprep.mubr.msk.bf16.mxu1 %vm6682_vm0, %v6681_v1  ;;  %6246 = vmatpush3.bf16.msra.mxu1 %v6528_v7 }
 0xa4c   : > { %v6231_v52 = vpop.f32.mrb[93].mxu0  ;;  %v3498_v38 = vsel %vm528_vm1, %v3399_v51, 0.0  ;;  %6247 = vmatprep.subr.bf16.mxu1 %v6681_v1 }
 0xa4d   : > { %v3402_v53 = vpop.f32.mrb[94].mxu0 }
 0xa4e   : > { %v6232_v54 = vpop.f32.mrb[95].mxu0  ;;  %v6534_v53 = vld [vmem:[%s7820_s3 + $0x1a8] sm:$0xff]  }
 0xa4f   : > { %6248 = vmatpush3.bf16.msra.mxu1 %v6530_v30  ;;  %v6535_v54 = vld [vmem:[%s7820_s3 + $0x1b8] sm:$0xff]  }
 0xa50   : > { %6261 = vmatprep.subr.bf16.mxu1 %v6681_v1 }
 0xa53   : > { %v3491_v55 = vpop.f32.mrb[96].mxu0 }
 0xa54   : > { %v6243_v44 = vpop.f32.mrb[97].mxu0  ;;  %v3502_v6 = vsel %vm528_vm1, %v3491_v55, 0.0 }
 0xa55   : > { %v3494_v56 = vpop.f32.mrb[98].mxu0  ;;  %v5398_v44 = vld [vmem:[%s7828_s11 + $0x1] ss:$0 sm:$0xff] }
 0xa56   : > { %v6244_v57 = vpop.f32.mrb[99].mxu0  ;;  %v6536_v56 = vld [vmem:[%s7820_s3 + $0x1c0] sm:$0xff]  }
 0xa57   : > { %v6537_v57 = vld [vmem:[%s7820_s3 + $0x1d0] sm:$0xff]  }
 0xb15   : > { %v3353_v58 = vpop.f32.mrb[92].mxu1 }
 0xb16   : > { %v3497_v26 = vsel %vm528_vm1, %v3353_v58, 0.0  ;;  %v6225_v59 = vpop.f32.mrb[93].mxu1 }
 0xb17   : > { %v3499_v60 = vadd.f32 %v3498_v38, %v3497_v26  ;;  %v3356_v61 = vpop.f32.mrb[94].mxu1  ;;  %v5400_v38 = vld [vmem:[%s7829_s12 + $0x1] ss:$0 sm:$0xff]  ;;  %v6538_v26 = vld [vmem:[%s7820_s3 + $0x1c8] sm:$0xff]   ;;  %v6539_v59 = vld [vmem:[%s7820_s3 + $0x1d8] sm:$0xff]  }
 0xb18   : > { %v6226_v62 = vpop.f32.mrb[95].mxu1  ;;  %v6540_v61 = vld [vmem:[%s7820_s3 + $0x1e0] sm:$0xff]  }
 0xb19   : > { %v6541_v62 = vld [vmem:[%s7820_s3 + $0x1f0] sm:$0xff]  }
 0xb1d   : > { %v3445_v63 = vpop.f32.mrb[96].mxu1 }
 0xb1e   : > { %v3500_v2 = vsel %vm528_vm1, %v3445_v63, 0.0  ;;  %v6237_v3 = vpop.f32.mrb[97].mxu1 }
 0xb1f   : > { %v3501_v4 = vadd.f32 %v3500_v2, %v3499_v60  ;;  %v3448_v5 = vpop.f32.mrb[98].mxu1  ;;  %v6543_v2 = vld [vmem:[%s7820_s3 + $0x1f8] sm:$0xff]   ;;  %v6544_v3 = vld [vmem:[%s7820_s3 + $0x200] sm:$0xff]  }
 0xb20   : > { %v6238_v9 = vpop.f32.mrb[99].mxu1  ;;  %v6546_v5 = vld [vmem:[%s7820_s3 + $0x208] sm:$0xff]  }
 0xb21   : > { %v3503_v13 = vadd.f32 %v3502_v6, %v3501_v4  ;;  %v6545_v4 = vld [vmem:[%s7820_s3 + $0x210] sm:$0xff]   ;;  %v6547_v6 = vld [vmem:[%s7820_s3 + $0x218] sm:$0xff]  }
 0xb22   : > { %v6549_v9 = vld [vmem:[%s7820_s3 + $0x230] sm:$0xff]  }
 0xb23   : > { %v3512_v14 = vadd.f32 %v5526_v8, %v3503_v13  ;;  %v6548_v8 = vld [vmem:[%s7820_s3 + $0x220] sm:$0xff]   ;;  %v6551_v13 = vld [vmem:[%s7820_s3 + $0x238] sm:$0xff]  }
 0xb25   : > { %v3513_v16 = vadd.f32 %v3512_v14, %v7143_v11  ;;  %v6529_v11 = vld [vmem:[%s7820_s3 + $0x190] sm:$0xff]  }
 0xb26   : > { %6254 = vmatpush3.bf16.msra.mxu0 %v6529_v11 }
 0xb27   : > { %v3514_v17 = vsel %vm528_vm1, %v3513_v16, 0.0  ;;  %v3518_v18 = vmul.f32 %v3513_v16, %v3513_v16  ;;  %6255 = vmatprep.subr.bf16.mxu0 %v6681_v1 }
 0xb28   : > { %3515 = vadd.xlane.f32.xlu0 %v3514_v17 }
 0xb29   : > { %v3519_v19 = vsel %vm528_vm1, %v3518_v18, 0.0 }
 0xb2a   : > { %3520 = vadd.xlane.f32.xlu1 %v3519_v19  ;;  %6256 = vmatpush3.bf16.msra.mxu0 %v6531_v23 }
 0xb2b   : > { %6269 = vmatprep.subr.bf16.mxu0 %v6681_v1 }
 0xb2c   : > { %2074 = vadd.xlane.f32.xlu0 %v2073_v21 }
 0xb2e   : > { %2079 = vadd.xlane.f32.xlu1 %v2078_v22 }
 0xbb5   : > { %v3516_v24 = vpop.xlane.xlu0 %3515 }
 0xbb6   : > { %v3517_v25 = vmul.f32 0.03125, %v3516_v24 }
 0xbb7   : > { %v3521_v27 = vpop.xlane.xlu1 %3520 }
 0xbb8   : > { %v3523_v28 = vmul.f32 %v3517_v25, %v3517_v25  ;;  %v3522_v29 = vmul.f32 0.03125, %v3521_v27  ;;  %v3527_v41 = vsub.f32 %v3513_v16, %v3517_v25 }
 0xbb9   : > { %v2075_v12 = vpop.xlane.xlu0 %2074 }
 0xbba   : > { %v3524_v31 = vsub.f32 %v3522_v29, %v3523_v28  ;;  %v2076_v33 = vmul.f32 0.03125, %v2075_v12  ;;  %v5587_v28 = vld [vmem:[%s7821_s4 + $0x1c] ss:$0 sm:$0xff]  ;;  %v5588_v29 = vld [vmem:[%s7821_s4 + $0x1d] ss:$0 sm:$0xff] }
 0xbbb   : > { %v2080_v34 = vpop.xlane.xlu1 %2079 }
 0xbbc   : > { %v3525_v35 = vadd.f32 1e-05, %v3524_v31  ;;  %v2082_v36 = vmul.f32 %v2076_v33, %v2076_v33  ;;  %v2081_v37 = vmul.f32 0.03125, %v2080_v34  ;;  %v2086_v52 = vsub.f32 %v2072_v15, %v2076_v33 }
 0xbbe   : > { %6592 = vrsqrt.f32 %v3525_v35  ;;  %v2083_v39 = vsub.f32 %v2081_v37, %v2082_v36 }
 0xbc0   : > { %v2084_v40 = vadd.f32 1e-05, %v2083_v39 }
 0xbc2   : > { %6594 = vrsqrt.f32 %v2084_v40 }
 0xbc8   : > { %v6593_v42 = vpop.eup %6592 }
 0xbc9   : > { %v3528_v45 = vmul.f32 %v6593_v42, %v3527_v41 }
 0xbcb   : > { %v3537_v32 = vmul.f32 %v5528_v43, %v3528_v45  ;;  %v5551_v45 = vld [vmem:[%s7821_s4 + $0x18] ss:$0 sm:$0xff] }
 0xbcc   : > { %v6595_v51 = vpop.eup %6594 }
 0xbcd   : > { %v7467_v47 = vadd.f32 %v5530_v46, %v3537_v32  ;;  %v2087_v55 = vmul.f32 %v6595_v51, %v2086_v52  ;;  %v5552_v46 = vld [vmem:[%s7821_s4 + $0x19] ss:$0 sm:$0xff] }
 0xbcf   : > { %v3547_v50 = vpack.c.bf16 %v7467_v47, %v7467_v47  ;;  %v2096_v58 = vmul.f32 %v5398_v44, %v2087_v55 }
 0xbd1   : > { %6250 = vmatmul.mubr.msk.bf16.vlgmr.msra.gmra.mrb[100].mxu1 %vm528_vm1, %v3547_v50  ;;  %6258 = vmatmul.mubr.msk.bf16.vlgmr.msra.gmra.mrb[100].mxu0 %vm528_vm1, %v3547_v50  ;;  %v2105_v60 = vadd.f32 %v5400_v38, %v2096_v58 }
 0xbd2   : > { %6262 = vmatpush3.bf16.msra.mxu1 %v6532_v48  ;;  %6270 = vmatpush3.bf16.msra.mxu0 %v6533_v49  ;;  %v5589_v49 = vld [vmem:[%s7821_s4 + $0x1e] ss:$0 sm:$0xff] }
 0xbd3   : > { %6263 = vmatprep.subr.bf16.mxu1 %v6681_v1  ;;  %6271 = vmatprep.subr.bf16.mxu0 %v6681_v1  ;;  %v3548_v63 = vpack.c.bf16 %v2105_v60, %v2105_v60 }
 0xbd4   : > { %6265 = vmatprep.mubr.msk.bf16.mxu1 %vm6682_vm0, %v6681_v1  ;;  %6273 = vmatprep.mubr.msk.bf16.mxu0 %vm6682_vm0, %v6681_v1 }
 0xbd6   : > { %6264 = vmatpush3.bf16.msra.mxu1 %v6534_v53  ;;  %6272 = vmatpush3.bf16.msra.mxu0 %v6535_v54 }
 0xbd7   : > { %6277 = vmatprep.subr.bf16.mxu1 %v6681_v1  ;;  %6285 = vmatprep.subr.bf16.mxu0 %v6681_v1 }
 0xbd9   : > { %6266 = vmatmul.mubr.msk.bf16.vlgmr.msra.gmra.mrb[104].mxu1 %vm528_vm1, %v3547_v50  ;;  %6274 = vmatmul.mubr.msk.bf16.vlgmr.msra.gmra.mrb[104].mxu0 %vm528_vm1, %v3547_v50  ;;  %v5590_v50 = vld [vmem:[%s7821_s4 + $0x1f] ss:$0 sm:$0xff] }
 0xbda   : > { %6278 = vmatpush3.bf16.msra.mxu1 %v6536_v56  ;;  %6286 = vmatpush3.bf16.msra.mxu0 %v6537_v57 }
 0xbdb   : > { %6279 = vmatprep.subr.bf16.mxu1 %v6681_v1  ;;  %6287 = vmatprep.subr.bf16.mxu0 %v6681_v1 }
 0xbdc   : > { %6281 = vmatprep.mubr.msk.bf16.mxu1 %vm6682_vm0, %v6681_v1  ;;  %6289 = vmatprep.mubr.msk.bf16.mxu0 %vm6682_vm0, %v6681_v1 }
 0xbde   : > { %6280 = vmatpush3.bf16.msra.mxu1 %v6538_v26  ;;  %6288 = vmatpush3.bf16.msra.mxu0 %v6539_v59 }
 0xbdf   : > { %6293 = vmatprep.subr.bf16.mxu1 %v6681_v1  ;;  %6301 = vmatprep.subr.bf16.mxu0 %v6681_v1 }
 0xbe1   : > { %6282 = vmatmul.mubr.msk.bf16.vlgmr.msra.gmra.mrb[108].mxu1 %vm528_vm1, %v3548_v63  ;;  %6290 = vmatmul.mubr.msk.bf16.vlgmr.msra.gmra.mrb[108].mxu0 %vm528_vm1, %v3548_v63 }
 0xbe2   : > { %6294 = vmatpush3.bf16.msra.mxu1 %v6540_v61  ;;  %6302 = vmatpush3.bf16.msra.mxu0 %v6541_v62 }
 0xbe3   : > { %6295 = vmatprep.subr.bf16.mxu1 %v6681_v1  ;;  %6303 = vmatprep.subr.bf16.mxu0 %v6681_v1 }
 0xbe4   : > { %6297 = vmatprep.mubr.msk.bf16.mxu1 %vm6682_vm0, %v6681_v1  ;;  %6305 = vmatprep.mubr.msk.bf16.mxu0 %vm6682_vm0, %v6681_v1 }
 0xbe6   : > { %6296 = vmatpush3.bf16.msra.mxu1 %v6542_v0  ;;  %6304 = vmatpush3.bf16.msra.mxu0 %v6543_v2  ;;  %v5553_v0 = vld [vmem:[%s7821_s4 + $0x1a] ss:$0 sm:$0xff]  ;;  %v5554_v2 = vld [vmem:[%s7821_s4 + $0x1b] ss:$0 sm:$0xff] }
 0xbe7   : > { %6309 = vmatprep.subr.bf16.mxu1 %v6681_v1  ;;  %6317 = vmatprep.subr.bf16.mxu0 %v6681_v1 }
 0xbe9   : > { %6298 = vmatmul.mubr.msk.bf16.vlgmr.msra.gmra.mrb[112].mxu1 %vm528_vm1, %v3548_v63  ;;  %6306 = vmatmul.mubr.msk.bf16.vlgmr.msra.gmra.mrb[112].mxu0 %vm528_vm1, %v3548_v63 }
 0xbea   : > { %6310 = vmatpush3.bf16.msra.mxu1 %v6544_v3  ;;  %6318 = vmatpush3.bf16.msra.mxu0 %v6545_v4 }
 0xbeb   : > { %6311 = vmatprep.subr.bf16.mxu1 %v6681_v1  ;;  %6319 = vmatprep.subr.bf16.mxu0 %v6681_v1 }
 0xbec   : > { %6313 = vmatprep.mubr.msk.bf16.mxu1 %vm6682_vm0, %v6681_v1  ;;  %6321 = vmatprep.mubr.msk.bf16.mxu0 %vm6682_vm0, %v6681_v1 }
 0xbee   : > { %6312 = vmatpush3.bf16.msra.mxu1 %v6546_v5  ;;  %6320 = vmatpush3.bf16.msra.mxu0 %v6547_v6  ;;  %v5623_v5 = vld [vmem:[%s7821_s4 + $0x20] ss:$0 sm:$0xff]  ;;  %v5624_v6 = vld [vmem:[%s7821_s4 + $0x21] ss:$0 sm:$0xff] }
 0xbef   : > { %6325 = vmatprep.subr.bf16.mxu1 %v6681_v1  ;;  %6333 = vmatprep.subr.bf16.mxu0 %v6681_v1 }
 0xbf1   : > { %6314 = vmatmul.mubr.msk.bf16.vlgmr.msra.gmra.mrb[116].mxu1 %vm528_vm1, %v3548_v63  ;;  %6322 = vmatmul.mubr.msk.bf16.vlgmr.msra.gmra.mrb[116].mxu0 %vm528_vm1, %v3548_v63 }
 0xbf2   : > { %6326 = vmatpush3.bf16.msra.mxu1 %v6548_v8  ;;  %6334 = vmatpush3.bf16.msra.mxu0 %v6549_v9 }
 0xbf3   : > { %6327 = vmatprep.subr.bf16.mxu1 %v6681_v1  ;;  %6335 = vmatprep.subr.bf16.mxu0 %v6681_v1 }
 0xbf4   : > { %6329 = vmatprep.mubr.msk.bf16.mxu1 %vm6682_vm0, %v6681_v1  ;;  %6337 = vmatprep.mubr.msk.bf16.mxu0 %vm6682_vm0, %v6681_v1 }
 0xbf6   : > { %6328 = vmatpush3.bf16.msra.mxu1 %v6550_v10  ;;  %6336 = vmatpush3.bf16.msra.mxu0 %v6551_v13 }
 0xbf7   : > { %6341 = vmatprep.subr.bf16.mxu1 %v6681_v1  ;;  %6347 = vmatprep.subr.bf16.mxu0 %v6681_v1 }
 0xbf9   : > { %6330 = vmatmul.mubr.msk.bf16.vlgmr.msra.gmra.mrb[120].mxu1 %vm528_vm1, %v3548_v63  ;;  %6338 = vmatmul.mubr.msk.bf16.vlgmr.msra.gmra.mrb[120].mxu0 %vm528_vm1, %v3548_v63 }
 0xbfa   : > { %6343 = vmatprep.mubr.msk.bf16.mxu1 %vm6682_vm0, %v6681_v1  ;;  %6349 = vmatprep.mubr.msk.bf16.mxu0 %vm6682_vm0, %v6681_v1 }
 0xca4   : > { %v3644_v14 = vpop.f32.mrb[100].mxu1  ;;  %v3696_v15 = vpop.f32.mrb[100].mxu0 }
 0xca5   : > { %v6251_v16 = vpop.f32.mrb[101].mxu1  ;;  %v6259_v17 = vpop.f32.mrb[101].mxu0  ;;  %v3645_v51 = vadd.f32 %v5551_v45, %v3644_v14  ;;  %v3697_v52 = vadd.f32 %v5552_v46, %v3696_v15 }
 0xca6   : > { %v3647_v18 = vpop.f32.mrb[102].mxu1  ;;  %v3699_v19 = vpop.f32.mrb[102].mxu0 }
 0xca7   : > { %v6252_v20 = vpop.f32.mrb[103].mxu1  ;;  %v6260_v21 = vpop.f32.mrb[103].mxu0  ;;  %v3806_v26 = vpack.c.bf16 %v3645_v51, %v3645_v51  ;;  %v3807_v59 = vpack.c.bf16 %v3697_v52, %v3697_v52 }
 0xcac   : > { %v3748_v22 = vpop.f32.mrb[104].mxu1  ;;  %v3800_v7 = vpop.f32.mrb[104].mxu0 }
 0xcad   : > { %v6267_v11 = vpop.f32.mrb[105].mxu1  ;;  %v6275_v30 = vpop.f32.mrb[105].mxu0  ;;  %v3749_v8 = vadd.f32 %v5553_v0, %v3748_v22  ;;  %v3801_v9 = vadd.f32 %v5554_v2, %v3800_v7 }
 0xcae   : > { %v3751_v23 = vpop.f32.mrb[106].mxu1  ;;  %v3803_v24 = vpop.f32.mrb[106].mxu0 }
 0xcaf   : > { %v6268_v25 = vpop.f32.mrb[107].mxu1  ;;  %v6276_v27 = vpop.f32.mrb[107].mxu0  ;;  %v3808_v20 = vpack.c.bf16 %v3749_v8, %v3749_v8  ;;  %v3809_v21 = vpack.c.bf16 %v3801_v9, %v3801_v9 }
 0xcb4   : > { %v3905_v12 = vpop.f32.mrb[108].mxu1  ;;  %v3957_v31 = vpop.f32.mrb[108].mxu0 }
 0xcb5   : > { %v3906_v33 = vadd.f32 %v5587_v28, %v3905_v12  ;;  %v3958_v34 = vadd.f32 %v5588_v29, %v3957_v31  ;;  %v6283_v35 = vpop.f32.mrb[109].mxu1  ;;  %v6291_v36 = vpop.f32.mrb[109].mxu0 }
 0xcb6   : > { %v3908_v37 = vpop.f32.mrb[110].mxu1  ;;  %v3960_v39 = vpop.f32.mrb[110].mxu0 }
 0xcb7   : > { %v4067_v40 = vpack.c.bf16 %v3906_v33, %v3906_v33  ;;  %v4068_v41 = vpack.c.bf16 %v3958_v34, %v3958_v34  ;;  %v6284_v42 = vpop.f32.mrb[111].mxu1  ;;  %v6292_v43 = vpop.f32.mrb[111].mxu0 }
 0xcb9   : > { %v4333_v32 = vsel %vm1248_vm2, %v4067_v40, 0  ;;  %v4379_v48 = vsel %vm1248_vm2, %v4068_v41, 0 }
 0xcba   : > { %6342 = vmatpush3.bf16.xpose.msra.mxu1 %v4333_v32  ;;  %6348 = vmatpush3.bf16.xpose.msra.mxu0 %v4379_v48 }
 0xcbb   : > { %6353 = vmatprep.subr.bf16.mxu1 %v6681_v1  ;;  %6359 = vmatprep.subr.bf16.mxu0 %v6681_v1 }
 0xcbc   : > { %v4009_v53 = vpop.f32.mrb[112].mxu1  ;;  %v4061_v54 = vpop.f32.mrb[112].mxu0 }
 0xcbd   : > { %v4010_v55 = vadd.f32 %v5589_v49, %v4009_v53  ;;  %v4062_v44 = vadd.f32 %v5590_v50, %v4061_v54  ;;  %v6299_v56 = vpop.f32.mrb[113].mxu1  ;;  %v6307_v57 = vpop.f32.mrb[113].mxu0 }
 0xcbe   : > { %v4012_v58 = vpop.f32.mrb[114].mxu1  ;;  %v4064_v38 = vpop.f32.mrb[114].mxu0 }
 0xcbf   : > { %v4069_v60 = vpack.c.bf16 %v4010_v55, %v4010_v55  ;;  %v4070_v61 = vpack.c.bf16 %v4062_v44, %v4062_v44  ;;  %v6300_v62 = vpop.f32.mrb[115].mxu1  ;;  %v6308_v63 = vpop.f32.mrb[115].mxu0 }
 0xcc1   : > { %v4425_v3 = vsel %vm1248_vm2, %v4069_v60, 0  ;;  %v4471_v4 = vsel %vm1248_vm2, %v4070_v61, 0  ;;  %6344 = vmatmul.mubr.msk.bf16.vlgmr.msra.gmra.mrb[124].mxu1 %vm1248_vm2, %v3806_v26  ;;  %6350 = vmatmul.mubr.msk.bf16.vlgmr.msra.gmra.mrb[124].mxu0 %vm1248_vm2, %v3807_v59 }
 0xcc2   : > { %6354 = vmatpush3.bf16.xpose.msra.mxu1 %v4425_v3  ;;  %6360 = vmatpush3.bf16.xpose.msra.mxu0 %v4471_v4 }
 0xcc3   : > { %6355 = vmatprep.mubr.msk.bf16.mxu1 %vm6682_vm0, %v6681_v1  ;;  %6361 = vmatprep.mubr.msk.bf16.mxu0 %vm6682_vm0, %v6681_v1 }
 0xcc4   : > { %v4163_v10 = vpop.f32.mrb[116].mxu1  ;;  %v4215_v13 = vpop.f32.mrb[116].mxu0  ;;  %6365 = vmatprep.subr.bf16.mxu1 %v6681_v1  ;;  %6371 = vmatprep.subr.bf16.mxu0 %v6681_v1 }
 0xcc5   : > { %v4164_v14 = vadd.f32 %v5623_v5, %v4163_v10  ;;  %v4216_v15 = vadd.f32 %v5624_v6, %v4215_v13  ;;  %v6315_v16 = vpop.f32.mrb[117].mxu1  ;;  %v6323_v17 = vpop.f32.mrb[117].mxu0 }
 0xcc6   : > { %v4166_v18 = vpop.f32.mrb[118].mxu1  ;;  %v4218_v19 = vpop.f32.mrb[118].mxu0 }
 0xcc7   : > { %v4325_v22 = vpack.c.bf16 %v4164_v14, %v4164_v14  ;;  %v4326_v7 = vpack.c.bf16 %v4216_v15, %v4216_v15  ;;  %v6316_v11 = vpop.f32.mrb[119].mxu1  ;;  %v6324_v30 = vpop.f32.mrb[119].mxu0 }
 0xcc9   : > { %v4569_v23 = vsel %vm1498_vm3, %v4325_v22, 0  ;;  %v4615_v24 = vsel %vm1498_vm3, %v4326_v7, 0  ;;  %6356 = vmatmul.mubr.msk.bf16.vlgmr.msra.gmra.mrb[128].mxu1 %vm1248_vm2, %v3808_v20  ;;  %6362 = vmatmul.mubr.msk.bf16.vlgmr.msra.gmra.mrb[128].mxu0 %vm1248_vm2, %v3809_v21  ;;  %v5626_v20 = vld [vmem:[%s7821_s4 + $0x23] ss:$0 sm:$0xff]  ;;  %v5625_v21 = vld [vmem:[%s7821_s4 + $0x22] ss:$0 sm:$0xff] }
 0xcca   : > { %6366 = vmatpush3.bf16.msra.mxu1 %v4569_v23  ;;  %6372 = vmatpush3.bf16.msra.mxu0 %v4615_v24 }
 0xccb   : > { %6367 = vmatprep.mubr.msk.bf16.mxu1 %vm6682_vm0, %v6681_v1  ;;  %6373 = vmatprep.mubr.msk.bf16.mxu0 %vm6682_vm0, %v6681_v1 }
 0xccc   : > { %v7645_v25 = vpop.f32.mrb[120].mxu1  ;;  %v7647_v27 = vpop.f32.mrb[120].mxu0  ;;  %6377 = vmatprep.subr.bf16.mxu1 %v6681_v1  ;;  %6383 = vmatprep.subr.bf16.mxu0 %v6681_v1 }
 0xccd   : > { %v6331_v28 = vpop.f32.mrb[121].mxu1  ;;  %v6339_v29 = vpop.f32.mrb[121].mxu0  ;;  %v4320_v22 = vadd.f32 %v5626_v20, %v7647_v27  ;;  %v4268_v11 = vadd.f32 %v5625_v21, %v7645_v25 }
 0xcce   : > { %v4270_v12 = vpop.f32.mrb[122].mxu1  ;;  %v4322_v31 = vpop.f32.mrb[122].mxu0 }
 0xccf   : > { %v6332_v33 = vpop.f32.mrb[123].mxu1  ;;  %v6340_v34 = vpop.f32.mrb[123].mxu0  ;;  %v4328_v28 = vpack.c.bf16 %v4320_v22, %v4320_v22  ;;  %v4327_v12 = vpack.c.bf16 %v4268_v11, %v4268_v11 }
 0xcd1   : > { %v4661_v27 = vsel %vm1498_vm3, %v4327_v12, 0 }
 0xd94   : > { %v4369_v35 = vpop.f32.mrb[124].mxu1  ;;  %v4415_v36 = vpop.f32.mrb[124].mxu0 }
 0xd95   : > { %v4513_v37 = vmul.f32 0.35355338, %v4369_v35  ;;  %v4514_v39 = vmul.f32 0.35355338, %v4415_v36  ;;  %v6345_v40 = vpop.f32.mrb[125].mxu1  ;;  %v6351_v41 = vpop.f32.mrb[125].mxu0 }
 0xd96   : > { %v4372_v42 = vpop.f32.mrb[126].mxu1  ;;  %v4418_v43 = vpop.f32.mrb[126].mxu0  ;;  %v4707_v35 = vsel %vm1498_vm3, %v4328_v28, 0  ;;  %v5648_v36 = vld [vmem:[%s7822_s5 + $0x24] sm:$0xf] }
 0xd97   : > { %v6346_v45 = vpop.f32.mrb[127].mxu1  ;;  %v6352_v46 = vpop.f32.mrb[127].mxu0  ;;  %v4520_v32 = vsel %vm1248_vm2, %v4514_v39, -inf  ;;  %v4517_v48 = vsel %vm1248_vm2, %v4513_v37, -inf  ;;  %v5647_v40 = vld [vmem:[%s7822_s5 + $0x20] sm:$0xf] }
 0xd98   : > { %4521 = vmax.xlane.f32.xlu1 %v4520_v32  ;;  %4518 = vmax.xlane.f32.xlu0 %v4517_v48  ;;  %v4808_v43 = vsel %vm1498_vm3, %v5648_v36, 0  ;;  %v4762_v46 = vsel %vm1498_vm3, %v5647_v40, 0  ;;  %v5650_v32 = vld [vmem:[%s7822_s5 + $0x2c] sm:$0xf]  ;;  %v5649_v48 = vld [vmem:[%s7822_s5 + $0x28] sm:$0xf] }
 0xd99   : > { %v6552_v36 = vld [vmem:[%s7824_s7 + $0x10] sm:$0xff]  }
 0xd9c   : > { %v4461_v49 = vpop.f32.mrb[128].mxu1  ;;  %v4507_v50 = vpop.f32.mrb[128].mxu0 }
 0xd9d   : > { %v4515_v51 = vmul.f32 0.35355338, %v4461_v49  ;;  %v4516_v52 = vmul.f32 0.35355338, %v4507_v50  ;;  %v6357_v53 = vpop.f32.mrb[129].mxu1  ;;  %v6363_v54 = vpop.f32.mrb[129].mxu0 }
 0xd9e   : > { %v4464_v55 = vpop.f32.mrb[130].mxu1  ;;  %v4510_v44 = vpop.f32.mrb[130].mxu0  ;;  %v4900_v53 = vsel %vm1498_vm3, %v5650_v32, 0 }
 0xd9f   : > { %v6358_v56 = vpop.f32.mrb[131].mxu1  ;;  %v6364_v57 = vpop.f32.mrb[131].mxu0  ;;  %v4526_v58 = vsel %vm1248_vm2, %v4516_v52, -inf  ;;  %v4523_v38 = vsel %vm1248_vm2, %v4515_v51, -inf }
 0xda0   : > { %4527 = vmax.xlane.f32.xlu1 %v4526_v58  ;;  %4524 = vmax.xlane.f32.xlu0 %v4523_v38  ;;  %v4854_v56 = vsel %vm1498_vm3, %v5649_v48, 0 }
 0xe25   : > { %v4522_v26 = vpop.xlane.xlu1 %4521  ;;  %v4519_v59 = vpop.xlane.xlu0 %4518 }
 0xe26   : > { %v4530_v60 = vsub.f32 %v4514_v39, %v4522_v26  ;;  %v4529_v61 = vsub.f32 %v4513_v37, %v4519_v59 }
 0xe28   : > { %v4535_v62 = vmul.f32 1.442695, %v4530_v60  ;;  %v4533_v63 = vmul.f32 1.442695, %v4529_v61 }
 0xe2a   : > { %6596 = vpow2.f32 %v4535_v62 }
 0xe2b   : > { %6598 = vpow2.f32 %v4533_v63 }
 0xe2d   : > { %v4528_v0 = vpop.xlane.xlu1 %4527  ;;  %v4525_v2 = vpop.xlane.xlu0 %4524 }
 0xe2e   : > { %v4532_v3 = vsub.f32 %v4516_v52, %v4528_v0  ;;  %v4531_v4 = vsub.f32 %v4515_v51, %v4525_v2 }
 0xe30   : > { %v4539_v5 = vmul.f32 1.442695, %v4532_v3  ;;  %v4537_v6 = vmul.f32 1.442695, %v4531_v4 }
 0xe32   : > { %6600 = vpow2.f32 %v4539_v5 }
 0xe33   : > { %6602 = vpow2.f32 %v4537_v6 }
 0xe34   : > { %v6597_v8 = vpop.eup %6596 }
 0xe35   : > { %v6599_v9 = vpop.eup %6598  ;;  %v4544_v10 = vsel %vm1248_vm2, %v6597_v8, 0.0 }
 0xe36   : > { %4545 = vadd.xlane.f32.xlu1 %v4544_v10  ;;  %v4541_v13 = vsel %vm1248_vm2, %v6599_v9, 0.0 }
 0xe37   : > { %4542 = vadd.xlane.f32.xlu0 %v4541_v13 }
 0xe3c   : > { %v6601_v14 = vpop.eup %6600 }
 0xe3d   : > { %v6603_v15 = vpop.eup %6602  ;;  %v4550_v16 = vsel %vm1248_vm2, %v6601_v14, 0.0 }
 0xe3e   : > { %4551 = vadd.xlane.f32.xlu1 %v4550_v16  ;;  %v4547_v17 = vsel %vm1248_vm2, %v6603_v15, 0.0 }
 0xe3f   : > { %4548 = vadd.xlane.f32.xlu0 %v4547_v17 }
 0xec3   : > { %v4546_v18 = vpop.xlane.xlu1 %4545 }
 0xec4   : > { %6604 = vrcp.f32 %v4546_v18  ;;  %v4543_v19 = vpop.xlane.xlu0 %4542 }
 0xec5   : > { %6606 = vrcp.f32 %v4543_v19 }
 0xecb   : > { %v4552_v7 = vpop.xlane.xlu1 %4551 }
 0xecc   : > { %6608 = vrcp.f32 %v4552_v7  ;;  %v4549_v30 = vpop.xlane.xlu0 %4548 }
 0xecd   : > { %6610 = vrcp.f32 %v4549_v30 }
 0xece   : > { %v6605_v23 = vpop.eup %6604 }
 0xecf   : > { %v6607_v24 = vpop.eup %6606  ;;  %v4558_v29 = vmul.f32 %v6605_v23, %v6597_v8 }
 0xed0   : > { %v4557_v31 = vmul.f32 %v6607_v24, %v6599_v9 }
 0xed1   : > { %v4562_v33 = vpack.c.bf16 %v4558_v29, %v4558_v29  ;;  %v5656_v29 = vld [vmem:[%s7823_s6 + $0x2] ss:$0 sm:$0xff] }
 0xed2   : > { %v4561_v34 = vpack.c.bf16 %v4557_v31, %v4557_v31 }
 0xed3   : > { %6374 = vmatmul.mubr.msk.bf16.vlgmr.msra.gmra.mrb[132].mxu0 %vm1248_vm2, %v4562_v33 }
 0xed4   : > { %6368 = vmatmul.mubr.msk.bf16.vlgmr.msra.gmra.mrb[132].mxu1 %vm1248_vm2, %v4561_v34  ;;  %6384 = vmatpush3.bf16.msra.mxu0 %v4707_v35 }
 0xed5   : > { %6378 = vmatpush3.bf16.msra.mxu1 %v4661_v27  ;;  %6379 = vmatprep.mubr.msk.bf16.mxu1 %vm6682_vm0, %v6681_v1 }
 0xed6   : > { %v6609_v25 = vpop.eup %6608  ;;  %6385 = vmatprep.mubr.msk.bf16.mxu0 %vm6682_vm0, %v6681_v1  ;;  %6389 = vmatprep.subr.bf16.mxu1 %v6681_v1 }
 0xed7   : > { %v6611_v37 = vpop.eup %6610  ;;  %v4560_v39 = vmul.f32 %v6609_v25, %v6601_v14  ;;  %6395 = vmatprep.subr.bf16.mxu0 %v6681_v1 }
 0xed8   : > { %v4559_v41 = vmul.f32 %v6611_v37, %v6603_v15  ;;  %v6553_v37 = vld [vmem:[%s7824_s7 + $0x18] sm:$0xff]  }
 0xed9   : > { %v4564_v42 = vpack.c.bf16 %v4560_v39, %v4560_v39  ;;  %v6555_v39 = vld [vmem:[%s7826_s9 + $0x28] sm:$0xff]  }
 0xeda   : > { %v4563_v45 = vpack.c.bf16 %v4559_v41, %v4559_v41 }
 0xedb   : > { %6386 = vmatmul.mubr.msk.bf16.vlgmr.msra.gmra.mrb[136].mxu0 %vm1248_vm2, %v4564_v42 }
 0xedc   : > { %6380 = vmatmul.mubr.msk.bf16.vlgmr.msra.gmra.mrb[136].mxu1 %vm1248_vm2, %v4563_v45  ;;  %6396 = vmatpush3.bf16.msra.mxu0 %v4808_v43 }
 0xedd   : > { %6390 = vmatpush3.bf16.msra.mxu1 %v4762_v46  ;;  %6391 = vmatprep.mubr.msk.bf16.mxu1 %vm6682_vm0, %v6681_v1 }
 0xede   : > { %6397 = vmatprep.mubr.msk.bf16.mxu0 %vm6682_vm0, %v6681_v1  ;;  %6401 = vmatprep.subr.bf16.mxu1 %v6681_v1 }
 0xedf   : > { %6407 = vmatprep.subr.bf16.mxu0 %v6681_v1 }
 0xfa6   : > { %v4651_v49 = vpop.f32.mrb[132].mxu0 }
 0xfa7   : > { %v4605_v50 = vpop.f32.mrb[132].mxu1  ;;  %v4750_v51 = vpack.c.bf16 %v4651_v49, %v4651_v49  ;;  %v6375_v52 = vpop.f32.mrb[133].mxu0 }
 0xfa8   : > { %v4749_v54 = vpack.c.bf16 %v4605_v50, %v4605_v50  ;;  %v6369_v55 = vpop.f32.mrb[133].mxu1  ;;  %v4654_v44 = vpop.f32.mrb[134].mxu0  ;;  %v5658_v50 = vld [vmem:[%s7828_s11 + $0x3] ss:$0 sm:$0xff] }
 0xfa9   : > { %v4608_v57 = vpop.f32.mrb[134].mxu1  ;;  %v6376_v58 = vpop.f32.mrb[135].mxu0  ;;  %6398 = vmatmul.mubr.msk.bf16.vlgmr.msra.gmra.mrb[140].mxu0 %vm1248_vm2, %v4750_v51  ;;  %v5660_v52 = vld [vmem:[%s7829_s12 + $0x3] ss:$0 sm:$0xff]  ;;  %v6556_v44 = vld [vmem:[%s7826_s9 + $0x30] sm:$0xff]  }
 0xfaa   : > { %v6370_v38 = vpop.f32.mrb[135].mxu1  ;;  %6392 = vmatmul.mubr.msk.bf16.vlgmr.msra.gmra.mrb[140].mxu1 %vm1248_vm2, %v4749_v54  ;;  %6408 = vmatpush3.bf16.msra.mxu0 %v4900_v53  ;;  %v5666_v57 = vld [vmem:[%s7825_s8 + $0x1] ss:$0 sm:$0xff] }
 0xfab   : > { %6402 = vmatpush3.bf16.msra.mxu1 %v4854_v56  ;;  %6403 = vmatprep.mubr.msk.bf16.mxu1 %vm6682_vm0, %v6681_v1  ;;  %v6557_v56 = vld [vmem:[%s7826_s9 + $0x38] sm:$0xff]  }
 0xfac   : > { %6409 = vmatprep.mubr.msk.bf16.mxu0 %vm6682_vm0, %v6681_v1  ;;  %6413 = vmatprep.subr.bf16.mxu1 %v6681_v1 }
 0xfad   : > { %6421 = vmatprep.subr.bf16.mxu0 %v6681_v1 }
 0xfae   : > { %v4743_v26 = vpop.f32.mrb[136].mxu0 }
 0xfaf   : > { %v4697_v59 = vpop.f32.mrb[136].mxu1  ;;  %v4752_v60 = vpack.c.bf16 %v4743_v26, %v4743_v26  ;;  %v6387_v61 = vpop.f32.mrb[137].mxu0 }
 0xfb0   : > { %v4751_v62 = vpack.c.bf16 %v4697_v59, %v4697_v59  ;;  %v6381_v63 = vpop.f32.mrb[137].mxu1  ;;  %v4746_v0 = vpop.f32.mrb[138].mxu0 }
 0xfb1   : > { %v4700_v2 = vpop.f32.mrb[138].mxu1  ;;  %v6388_v3 = vpop.f32.mrb[139].mxu0  ;;  %6410 = vmatmul.mubr.msk.bf16.vlgmr.msra.gmra.mrb[144].mxu0 %vm1248_vm2, %v4752_v60 }
 0xfb2   : > { %v6382_v4 = vpop.f32.mrb[139].mxu1  ;;  %6404 = vmatmul.mubr.msk.bf16.vlgmr.msra.gmra.mrb[144].mxu1 %vm1248_vm2, %v4751_v62  ;;  %6429 = vmatprep.mubr.msk.bf16.mxu0 %vm6682_vm0, %v6681_v1 }
 0xfb3   : > { %6417 = vmatprep.mubr.msk.bf16.mxu1 %vm6682_vm0, %v6681_v1  ;;  %6414 = vmatpush3.bf16.msra.mxu1 %v6552_v36 }
 0xfb4   : > { %6415 = vmatprep.subr.bf16.mxu1 %v6681_v1 }
 0xfb7   : > { %6416 = vmatpush3.bf16.msra.mxu1 %v6553_v37 }
0x107c   : > { %v4844_v5 = vpop.f32.mrb[140].mxu0 }
0x107d   : > { %v4798_v6 = vpop.f32.mrb[140].mxu1  ;;  %v4943_v8 = vsel %vm528_vm1, %v4844_v5, 0.0  ;;  %v6399_v9 = vpop.f32.mrb[141].mxu0 }
0x107e   : > { %v4942_v10 = vsel %vm528_vm1, %v4798_v6, 0.0  ;;  %v6393_v13 = vpop.f32.mrb[141].mxu1  ;;  %v4847_v14 = vpop.f32.mrb[142].mxu0 }
0x107f   : > { %v4944_v15 = vadd.f32 %v4943_v8, %v4942_v10  ;;  %v4801_v16 = vpop.f32.mrb[142].mxu1  ;;  %v6400_v17 = vpop.f32.mrb[143].mxu0 }
0x1080   : > { %v6394_v18 = vpop.f32.mrb[143].mxu1 }
0x1084   : > { %v4936_v19 = vpop.f32.mrb[144].mxu0 }
0x1085   : > { %v4890_v20 = vpop.f32.mrb[144].mxu1  ;;  %v6411_v21 = vpop.f32.mrb[145].mxu0  ;;  %v4947_v28 = vsel %vm528_vm1, %v4936_v19, 0.0 }
0x1086   : > { %v4945_v22 = vsel %vm528_vm1, %v4890_v20, 0.0  ;;  %v6405_v7 = vpop.f32.mrb[145].mxu1  ;;  %v4939_v11 = vpop.f32.mrb[146].mxu0  ;;  %v5686_v21 = vld [vmem:[%s7828_s11 + $0x4] ss:$0 sm:$0xff] }
0x1087   : > { %v4946_v30 = vadd.f32 %v4945_v22, %v4944_v15  ;;  %v4893_v23 = vpop.f32.mrb[146].mxu1  ;;  %v6412_v24 = vpop.f32.mrb[147].mxu0  ;;  %v5688_v7 = vld [vmem:[%s7829_s12 + $0x4] ss:$0 sm:$0xff] }
0x1088   : > { %v6406_v12 = vpop.f32.mrb[147].mxu1 }
0x1089   : > { %v4948_v31 = vadd.f32 %v4947_v28, %v4946_v30 }
0x108b   : > { %v4957_v33 = vadd.f32 %v5656_v29, %v4948_v31 }
0x108d   : > { %v4958_v34 = vadd.f32 %v4957_v33, %v7467_v47  ;;  %v6554_v47 = vld [vmem:[%s7826_s9 + $0x20] sm:$0xff]  }
0x108e   : > { %6422 = vmatpush3.bf16.msra.mxu0 %v6554_v47 }
0x108f   : > { %v4959_v35 = vsel %vm528_vm1, %v4958_v34, 0.0  ;;  %v4963_v27 = vmul.f32 %v4958_v34, %v4958_v34  ;;  %6423 = vmatprep.subr.bf16.mxu0 %v6681_v1 }
0x1090   : > { %4960 = vadd.xlane.f32.xlu0 %v4959_v35 }
0x1091   : > { %v4964_v25 = vsel %vm528_vm1, %v4963_v27, 0.0 }
0x1092   : > { %4965 = vadd.xlane.f32.xlu1 %v4964_v25  ;;  %6424 = vmatpush3.bf16.msra.mxu0 %v6555_v39 }
0x1093   : > { %6425 = vmatprep.subr.bf16.mxu0 %v6681_v1 }
0x1096   : > { %6426 = vmatpush3.bf16.msra.mxu0 %v6556_v44 }
0x1097   : > { %6427 = vmatprep.subr.bf16.mxu0 %v6681_v1  ;;  %v5679_v1 = vld [vmem:[%s7827_s10 + $0x1] ss:$0 sm:$0xff] }
0x109a   : > { %6428 = vmatpush3.bf16.msra.mxu0 %v6557_v56 }
0x111d   : > { %v4961_v40 = vpop.xlane.xlu0 %4960 }
0x111e   : > { %v4962_v41 = vmul.f32 0.03125, %v4961_v40 }
0x111f   : > { %v4966_v42 = vpop.xlane.xlu1 %4965 }
0x1120   : > { %v4968_v43 = vmul.f32 %v4962_v41, %v4962_v41  ;;  %v4967_v45 = vmul.f32 0.03125, %v4966_v42  ;;  %v4972_v48 = vsub.f32 %v4958_v34, %v4962_v41 }
0x1122   : > { %v4969_v46 = vsub.f32 %v4967_v45, %v4968_v43 }
0x1124   : > { %v4970_v32 = vadd.f32 1e-05, %v4969_v46 }
0x1126   : > { %6612 = vrsqrt.f32 %v4970_v32 }
0x1130   : > { %v6613_v49 = vpop.eup %6612 }
0x1131   : > { %v4973_v51 = vmul.f32 %v6613_v49, %v4972_v48 }
0x1133   : > { %v4982_v53 = vmul.f32 %v5658_v50, %v4973_v51 }
0x1135   : > { %v4991_v54 = vadd.f32 %v5660_v52, %v4982_v53 }
0x1137   : > { %v4992_v55 = vpack.c.bf16 %v4991_v54, %v4991_v54 }
0x1139   : > { %6418 = vmatmul.mubr.msk.bf16.vlgmr.msra.gmra.mrb[148].mxu1 %vm528_vm1, %v4992_v55 }
0x120c   : > { %v5055_v58 = vpop.f32.mrb[148].mxu1 }
0x120d   : > { %v5056_v38 = vadd.f32 %v5666_v57, %v5055_v58  ;;  %v6419_v26 = vpop.f32.mrb[149].mxu1 }
0x120e   : > { %v5058_v59 = vpop.f32.mrb[150].mxu1 }
0x120f   : > { %v5061_v60 = vmax.f32 %v5056_v38, 0.0  ;;  %v6420_v61 = vpop.f32.mrb[151].mxu1 }
0x1211   : > { %v5062_v62 = vpack.c.bf16 %v5061_v60, %v5061_v60 }
0x1213   : > { %6430 = vmatmul.mubr.msk.bf16.vlgmr.msra.gmra.mrb[148].mxu0 %vm2028_vm4, %v5062_v62 }
0x12e6   : > { %v5141_v63 = vpop.f32.mrb[148].mxu0 }
0x12e7   : > { %v5142_v0 = vadd.f32 %v5679_v1, %v5141_v63  ;;  %v6431_v2 = vpop.f32.mrb[149].mxu0 }
0x12e8   : > { %v5144_v3 = vpop.f32.mrb[150].mxu0 }
0x12e9   : > { %v5147_v4 = vadd.f32 %v5142_v0, %v4991_v54  ;;  %v6432_v5 = vpop.f32.mrb[151].mxu0 }
0x12eb   : > { %v5148_v6 = vsel %vm528_vm1, %v5147_v4, 0.0  ;;  %v5152_v8 = vmul.f32 %v5147_v4, %v5147_v4 }
0x12ec   : > { %5149 = vadd.xlane.f32.xlu0 %v5148_v6 }
0x12ed   : > { %v5153_v9 = vsel %vm528_vm1, %v5152_v8, 0.0 }
0x12ee   : > { %5154 = vadd.xlane.f32.xlu1 %v5153_v9 }
0x1379   : > { %v5150_v10 = vpop.xlane.xlu0 %5149 }
0x137a   : > { %v5151_v13 = vmul.f32 0.03125, %v5150_v10 }
0x137b   : > { %v5155_v14 = vpop.xlane.xlu1 %5154 }
0x137c   : > { %v5157_v15 = vmul.f32 %v5151_v13, %v5151_v13  ;;  %v5156_v16 = vmul.f32 0.03125, %v5155_v14  ;;  %v5161_v19 = vsub.f32 %v5147_v4, %v5151_v13 }
0x137e   : > { %v5158_v17 = vsub.f32 %v5156_v16, %v5157_v15 }
0x1380   : > { %v5159_v18 = vadd.f32 1e-05, %v5158_v17 }
0x1382   : > { %6614 = vrsqrt.f32 %v5159_v18 }
0x138c   : > { %v6615_v20 = vpop.eup %6614 }
0x138d   : > { %v5162_v22 = vmul.f32 %v6615_v20, %v5161_v19 }
0x138f   : > { %v5171_v11 = vmul.f32 %v5686_v21, %v5162_v22 }
0x1391   : > { %v5180_v30 = vadd.f32 %v5688_v7, %v5171_v11 }
0x1393   : > { %5181 = vst.msk [vmem:[%s455_s15] sm:$0xff] %vm528_vm1, %v5180_v30 }
0x1394   : > { %6630 = shalt.err (!%p6627_p3)
}
0x1395   : > { %s6631_s1 = scalar_lea.hbm %s7774_s2, 128  ;;  %s6635_s0 = scalar_lea.hbm %s7830_s13, 256 }
0x1396   : > { %p6632_p4 = scmp.ne.s32.totalorder %s7774_s2, %s6631_s1  ;;  %p6636_p9 = scmp.lt.u32.totalorder %s7774_s2, %s7830_s13 }
0x1397   : > { %p6637_p10 = scmp.lt.u32.totalorder %s6635_s0, %s6631_s1  ;;  %p6639_p12 = scmp.lt.u32.totalorder %s6631_s1, %s7774_s2 }
0x1398   : > { %p6633_p7 = pnand %p6632_p4, %p6792_p5 }
0x1399   : > { %p6638_p11 = por %p6637_p10, %p6636_p9 }
0x139a   : > { %p6634_p8 = pneg %p6633_p7 }
0x139b   : > { %p6640_p13 = por %p6639_p12, %p6638_p11 }
0x139d   : > { %p6641_p0 = pnand %p6640_p13, %p6634_p8 }
0x139f   : > { %6644 = shalt.err (!%p6641_p0)
}
0x13a0   : > { %6433 = dma.vmem_to_hbm [thread:$0]  (%p6792_p5), %s7776_s21, 128, %s7774_s2, %s5183_s23  }
0x13a1 PF: > { %p6439_p1 = scmp.ge.s32.totalorder %s6679_s28, 2  ;;  %s5208_s17 = sand.u32 1, %s6667_s25  }
0x13a2   : > { %s5209_s29 = scalar_lea.sflag [#allocation3], %s5208_s17 }
0x13a3   : > { %p6436_p2 = pnand %p6439_p1, %p6796_p6 }
0x13a5   : > { %6662 = dma.done.wait (!%p6436_p2), %s5209_s29, 128  }
0x13a6   : > { %6664 = vsyncadd (!%p6436_p2), %s5209_s29, 4294967168  ;;  %s7842_s22 = sld [smem:[#allocation5_spill]]  ;;  %p23_p3 = scmp.ge.s32.totalorder %s6779_s14, 4  }
0x13a7   : > { %s7843_s25 = smov %s6671_s26  ;;  %s7844_s26 = smov %s6675_s27 }
0x13a8   : > { %s7846_s28 = smov %s6779_s14  ;;  %25 = sbr.rel (!%p23_p3) target bundleno = 7 (0x7), region = 145 }
0x13ac   : > { %s7845_s27 = smov %s7842_s22 }
0x13af   :  { %5214 = vsyncpa [#allocation3], 1 }
0x13b0   :  { %5216 = vsyncpa [#allocation3 + $0x1], 1 }

</bundles_post_ra>
